<compile_context>
chip_gen: v5e
topology: v5e:2x2
jax: 0.10.0
libtpu: 0.0.40
codegen_flags: <defaults>
</compile_context>

<pallas_src>
import functools
import math

import jax
import jax.numpy as jnp
from jax import lax
from jax.experimental import pallas as pl
from jax.experimental.pallas import tpu as pltpu


# ---------------------------------------------------------------------------
# small math helpers
# ---------------------------------------------------------------------------
def _layernorm(x, gamma, beta, eps=1e-5):
    mu = jnp.mean(x, axis=-1, keepdims=True)
    var = jnp.mean((x - mu) ** 2, axis=-1, keepdims=True)
    return (x - mu) * lax.rsqrt(var + eps) * gamma + beta


def _gelu_erf(x):
    # PyTorch nn.GELU() default (exact erf) -- used by the pure-JAX reference.
    return 0.5 * x * (1.0 + lax.erf(x * (1.0 / math.sqrt(2.0))))


def _gelu_tanh(x):
    # tanh approximation: runs on the otherwise-idle EUP slot instead of a long
    # VALU erf polynomial; max deviation from exact GELU ~1e-3.
    c = math.sqrt(2.0 / math.pi)
    return 0.5 * x * (1.0 + jnp.tanh(c * (x + 0.044715 * x * x * x)))


# ---------------------------------------------------------------------------
# Pallas kernel: one (TB, N, C) multi-patch token block per grid step
# ---------------------------------------------------------------------------
def ste_kernel(x_ref, pe_ref, wqkv_ref, bqkv_ref, wproj_ref, bproj_ref,
               wfc1_ref, bfc1_ref, wfc2_ref, bfc2_ref,
               g1_ref, be1_ref, g2_ref, be2_ref, o_ref,
               *, head_num, head_dim, mm_dtype):
    TB, N, C = x_ref.shape
    H, hd = head_num, head_dim

    def mm(a, b):
        # cast only at the MXU boundary; accumulate in f32
        return jnp.dot(a.astype(mm_dtype), b.astype(mm_dtype),
                       preferred_element_type=jnp.float32)

    def bmm(a, b, dims):
        return lax.dot_general(a.astype(mm_dtype), b.astype(mm_dtype), dims,
                               preferred_element_type=jnp.float32)

    # positional embedding add (non-relative branch), broadcast over TB patches
    x = x_ref[...].astype(jnp.float32) + pe_ref[...][None]        # (TB, N, C)
    xf = x.reshape(TB * N, C)                                     # fused-M activations

    # ---- MHSA: single fused QKV projection --------------------------------
    # (TB*N, C) @ (C, 3C); 1/sqrt(hd) was folded into the q columns in the wrapper.
    qkv = mm(xf, wqkv_ref[...]) + bqkv_ref[...]                   # (TB*N, 3C)

    # stack heads into the batch dim -> one batched attention over H*TB
    def head_stack(base):
        return jnp.concatenate(
            [qkv[:, base + h * hd: base + (h + 1) * hd].reshape(TB, N, hd)
             for h in range(H)], axis=0)                          # (H*TB, N, hd)

    qh = head_stack(0)
    kh = head_stack(C)
    vh = head_stack(2 * C)

    s = bmm(qh, kh, (((2,), (2,)), ((0,), (0,))))                 # (H*TB, N, N)
    s = s - jnp.max(s, axis=-1, keepdims=True)
    p = jnp.exp(s)
    p = p * pl.reciprocal(jnp.sum(p, axis=-1, keepdims=True), approx=True)
    pv = bmm(p, vh, (((2,), (1,)), ((0,), (0,))))                 # (H*TB, N, hd)

    # repack heads into channels, single (TB*N, C) @ (C, C) output projection
    ctx = jnp.concatenate(
        [pv[h * TB:(h + 1) * TB].reshape(TB * N, hd) for h in range(H)],
        axis=-1)                                                  # (TB*N, C)
    attn = mm(ctx, wproj_ref[...]) + bproj_ref[...]

    # ---- post-norm residual 1 ----
    y = _layernorm(xf + attn, g1_ref[...], be1_ref[...])

    # ---- MLP ----
    hmid = _gelu_tanh(mm(y, wfc1_ref[...]) + bfc1_ref[...])
    m = mm(hmid, wfc2_ref[...]) + bfc2_ref[...]

    # ---- post-norm residual 2 ----
    z = _layernorm(y + m, g2_ref[...], be2_ref[...])

    # TODO(synk): at production C (>=128), switch the out store to a lane-dense
    # (TB, N*C) slab to avoid masked vst at C=32; skipped at this toy width.
    o_ref[...] = z.reshape(TB, N, C).astype(o_ref.dtype)


# ---------------------------------------------------------------------------
# generation-aware grid / tile selection
# ---------------------------------------------------------------------------
def _device_kind():
    try:
        return jax.devices()[0].device_kind.lower()
    except Exception:
        return ""


def _pick_grid(bp, n, c, itemsize):
    """Return (TB, grid_steps, padded_Bp)."""
    kind = _device_kind()
    if "v7" in kind:
        budget = 16 << 20          # 64 MiB physical VMEM (32 MiB scoped default)
    elif any(t in kind for t in ("v5e", "v5 lite", "v6")):
        budget = 40 << 20          # 128 MiB physical VMEM, single TensorCore
    else:
        budget = 8 << 20           # conservative for unknown / older parts
    per_patch = n * c * itemsize
    max_tb = max(1, budget // (4 * per_patch))       # in + out blocks, double-buffered

    single_tc = any(t in kind for t in ("v5e", "v5 lite", "v6"))
    # single-TC: one big step (grid is just a loop, per-step overhead ~0.35us);
    # megacore (v7x/v5p/v4): >=2 steps per TensorCore so DMA overlaps compute.
    min_steps = 1 if single_tc else min(bp, 4)
    tb = max(1, min(max_tb, pl.cdiv(bp, min_steps)))
    steps = pl.cdiv(bp, tb)
    if not single_tc and steps > 1 and steps % 2:
        steps += 1                                   # even split across both cores
    return tb, steps, steps * tb


# ---------------------------------------------------------------------------
# wrapper: NCHW glue (unfold / rearrange), weight prep, pallas_call
# ---------------------------------------------------------------------------
def ste_forward(x, params, *, patch_size, head_num, matmul_dtype=None):
    if matmul_dtype is None:
        matmul_dtype = jnp.bfloat16   # MXU-native on v5e/v6e/v7x; f32 accumulation
    bs, c, h, w = x.shape
    ps = patch_size
    pnh, pnw = h // ps, w // ps
    N = ps * ps
    Bp = bs * pnh * pnw
    hd = c // head_num
    scale = hd ** (-0.5)
    itemsize = jnp.dtype(x.dtype).itemsize

    # unfold + Rearrange('b c pnh pnw psh psw -> (b pnh pnw) psh psw c') + flatten
    xt = x.reshape(bs, c, pnh, ps, pnw, ps).transpose(0, 2, 4, 3, 5, 1)
    xt = xt.reshape(Bp, N, c)

    # full (N, C) positional embedding: pe0 varies over psh, pe1 over psw
    pe_full = jnp.concatenate(
        [jnp.repeat(params["pe0"], ps, axis=0),
         jnp.tile(params["pe1"], (ps, 1))], axis=-1)              # (N, C)

    # fold the 1/sqrt(hd) attention scale into the q columns of the fused QKV
    col_scale = jnp.concatenate(
        [jnp.full((c,), scale, jnp.float32), jnp.ones((2 * c,), jnp.float32)])
    wqkv = params["wqkv"] * col_scale[None, :]
    bqkv = params["bqkv"] * col_scale[None, :]

    TB, steps, Bp_pad = _pick_grid(Bp, N, c, itemsize)
    if Bp_pad != Bp:
        xt = jnp.pad(xt, ((0, Bp_pad - Bp), (0, 0), (0, 0)))

    kern = functools.partial(ste_kernel, head_num=head_num, head_dim=hd,
                             mm_dtype=matmul_dtype)

    def full_spec(arr):
        nd = arr.ndim
        return pl.BlockSpec(arr.shape, lambda b, _nd=nd: (0,) * _nd)

    args = (xt, pe_full, wqkv, bqkv, params["wproj"], params["bproj"],
            params["wfc1"], params["bfc1"], params["wfc2"], params["bfc2"],
            params["g1"], params["be1"], params["g2"], params["be2"])

    in_specs = [pl.BlockSpec((TB, N, c), lambda b: (b, 0, 0))] + \
               [full_spec(a) for a in args[1:]]

    # explicit VMEM cap only once the working set outgrows the scoped default
    weight_bytes = sum(int(a.size) * a.dtype.itemsize for a in args[1:])
    block_bytes = 2 * 2 * TB * N * c * itemsize       # in + out, double-buffered
    cp = dict(dimension_semantics=("parallel",))
    if block_bytes + weight_bytes > (12 << 20):
        cap = (28 << 20) if "v7" in _device_kind() else (56 << 20)
        cp["vmem_limit_bytes"] = int(min(cap, 2 * (block_bytes + weight_bytes)))

    out = pl.pallas_call(
        kern,
        out_shape=jax.ShapeDtypeStruct((Bp_pad, N, c), x.dtype),
        grid=(steps,),
        in_specs=in_specs,
        out_specs=pl.BlockSpec((TB, N, c), lambda b: (b, 0, 0)),
        compiler_params=pltpu.CompilerParams(**cp),
    )(*args)

    # rearrange '(b pnh pnw) (psh psw) c -> b c (pnh psh) (pnw psw)'
    out = out[:Bp].reshape(bs, pnh, pnw, ps, ps, c).transpose(0, 5, 1, 3, 2, 4)
    return out.reshape(bs, c, h, w)


# ---------------------------------------------------------------------------
# pure-JAX reference (mirrors the PyTorch forward) for the sanity check
# ---------------------------------------------------------------------------
def ste_reference(x, params, *, patch_size, head_num):
    bs, c, h, w = x.shape
    ps = patch_size
    pnh, pnw = h // ps, w // ps
    N = ps * ps
    Bp = bs * pnh * pnw
    hd = c // head_num
    scale = hd ** (-0.5)

    xt = x.reshape(bs, c, pnh, ps, pnw, ps).transpose(0, 2, 4, 3, 5, 1).reshape(Bp, N, c)
    pe_full = jnp.concatenate(
        [jnp.repeat(params["pe0"], ps, axis=0),
         jnp.tile(params["pe1"], (ps, 1))], axis=-1)
    xt = xt + pe_full[None]

    qkv = xt @ params["wqkv"] + params["bqkv"]                    # (Bp, N, 3C)
    qkv = qkv.reshape(Bp, N, 3, head_num, hd).transpose(2, 0, 3, 1, 4)
    q, k, v = qkv[0] * scale, qkv[1], qkv[2]
    attn = jnp.einsum("bhnd,bhmd->bhnm", q, k)
    attn = jax.nn.softmax(attn, axis=-1)
    o = jnp.einsum("bhnm,bhmd->bhnd", attn, v).transpose(0, 2, 1, 3).reshape(Bp, N, c)
    o = o @ params["wproj"] + params["bproj"]

    y = _layernorm(xt + o, params["g1"], params["be1"])
    hmid = _gelu_erf(y @ params["wfc1"] + params["bfc1"])
    m = hmid @ params["wfc2"] + params["bfc2"]
    z = _layernorm(y + m, params["g2"], params["be2"])

    out = z.reshape(bs, pnh, pnw, ps, ps, c).transpose(0, 5, 1, 3, 2, 4)
    return out.reshape(bs, c, h, w)


# ---------------------------------------------------------------------------
if __name__ == "__main__":
    # module hyper-params (dropout=0 -> identity; relative=False; pre_norm=False)
    planes = 32        # C  (even, divisible by head_num)
    mlp_dim = 64
    head_num = 4
    patch_size = 8
    bs, h, w = 2, 16, 16

    key = jax.random.PRNGKey(0)
    ks = jax.random.split(key, 12)

    def nrm(k, shape, s=0.1):
        return (jax.random.normal(k, shape) * s).astype(jnp.float32)

    params = dict(
        pe0=nrm(ks[0], (patch_size, planes // 2)),      # pe[0]: varies over psh
        pe1=nrm(ks[1], (patch_size, planes // 2)),      # pe[1]: varies over psw
        wqkv=nrm(ks[2], (planes, 3 * planes)),
        bqkv=nrm(ks[3], (1, 3 * planes)),
        wproj=nrm(ks[4], (planes, planes)),
        bproj=nrm(ks[5], (1, planes)),
        wfc1=nrm(ks[6], (planes, mlp_dim)),
        bfc1=nrm(ks[7], (1, mlp_dim)),
        wfc2=nrm(ks[8], (mlp_dim, planes)),
        bfc2=nrm(ks[9], (1, planes)),
        g1=jnp.ones((1, planes), jnp.float32),
        be1=jnp.zeros((1, planes), jnp.float32),
        g2=jnp.ones((1, planes), jnp.float32),
        be2=jnp.zeros((1, planes), jnp.float32),
    )

    x = jax.random.normal(ks[10], (bs, planes, h, w), jnp.float32)

    ref = jax.block_until_ready(
        ste_reference(x, params, patch_size=patch_size, head_num=head_num))

    # f32-MXU path: tight structural check (only approx reciprocal + tanh GELU differ)
    out_f32 = jax.block_until_ready(
        ste_forward(x, params, patch_size=patch_size, head_num=head_num,
                    matmul_dtype=jnp.float32))
    assert out_f32.shape == (bs, planes, h, w)
    err_f32 = float(jnp.max(jnp.abs(out_f32 - ref)))
    assert err_f32 < 1e-2, f"f32-path mismatch vs reference: {err_f32}"

    # default path: bf16 MXU operands, f32 accumulation (looser numeric budget)
    out = jax.block_until_ready(
        ste_forward(x, params, patch_size=patch_size, head_num=head_num))
    assert out.shape == (bs, planes, h, w)
    err_bf16 = float(jnp.max(jnp.abs(out - ref)))
    assert err_bf16 < 5e-2, f"bf16-path mismatch vs reference: {err_bf16}"

    print("KERNEL_OK")
</pallas_src>

<mosaic_0001>
module attributes {stable_mosaic.version = 11 : i64} {
  func.func @ste_kernel(%arg0: i32, %arg1: memref<2x64x32xf32, #tpu.memory_space<vmem>>, %arg2: memref<64x32xf32, #tpu.memory_space<vmem>>, %arg3: memref<32x96xf32, #tpu.memory_space<vmem>>, %arg4: memref<1x96xf32, #tpu.memory_space<vmem>>, %arg5: memref<32x32xf32, #tpu.memory_space<vmem>>, %arg6: memref<1x32xf32, #tpu.memory_space<vmem>>, %arg7: memref<32x64xf32, #tpu.memory_space<vmem>>, %arg8: memref<1x64xf32, #tpu.memory_space<vmem>>, %arg9: memref<64x32xf32, #tpu.memory_space<vmem>>, %arg10: memref<1x32xf32, #tpu.memory_space<vmem>>, %arg11: memref<1x32xf32, #tpu.memory_space<vmem>>, %arg12: memref<1x32xf32, #tpu.memory_space<vmem>>, %arg13: memref<1x32xf32, #tpu.memory_space<vmem>>, %arg14: memref<1x32xf32, #tpu.memory_space<vmem>>, %arg15: memref<2x64x32xf32, #tpu.memory_space<vmem>>) attributes {dimension_semantics = [#tpu.dimension_semantics<parallel>], iteration_bounds = array<i64: 4>, scalar_prefetch = 0 : i64, scratch_operands = 0 : i64, tpu.core_type = #tpu.core_type<tc>, window_params = [{transform_indices = @transform_0, window_bounds = array<i64: 2, 64, 32>}, {pipeline_mode = #tpu.pipeline_mode<synchronous>, transform_indices = @transform_1, window_bounds = array<i64: 64, 32>}, {pipeline_mode = #tpu.pipeline_mode<synchronous>, transform_indices = @transform_2, window_bounds = array<i64: 32, 96>}, {pipeline_mode = #tpu.pipeline_mode<synchronous>, transform_indices = @transform_3, window_bounds = array<i64: 1, 96>}, {pipeline_mode = #tpu.pipeline_mode<synchronous>, transform_indices = @transform_4, window_bounds = array<i64: 32, 32>}, {pipeline_mode = #tpu.pipeline_mode<synchronous>, transform_indices = @transform_5, window_bounds = array<i64: 1, 32>}, {pipeline_mode = #tpu.pipeline_mode<synchronous>, transform_indices = @transform_6, window_bounds = array<i64: 32, 64>}, {pipeline_mode = #tpu.pipeline_mode<synchronous>, transform_indices = @transform_7, window_bounds = array<i64: 1, 64>}, {pipeline_mode = #tpu.pipeline_mode<synchronous>, transform_indices = @transform_8, window_bounds = array<i64: 64, 32>}, {pipeline_mode = #tpu.pipeline_mode<synchronous>, transform_indices = @transform_9, window_bounds = array<i64: 1, 32>}, {pipeline_mode = #tpu.pipeline_mode<synchronous>, transform_indices = @transform_10, window_bounds = array<i64: 1, 32>}, {pipeline_mode = #tpu.pipeline_mode<synchronous>, transform_indices = @transform_11, window_bounds = array<i64: 1, 32>}, {pipeline_mode = #tpu.pipeline_mode<synchronous>, transform_indices = @transform_12, window_bounds = array<i64: 1, 32>}, {pipeline_mode = #tpu.pipeline_mode<synchronous>, transform_indices = @transform_13, window_bounds = array<i64: 1, 32>}, {transform_indices = @transform_14, window_bounds = array<i64: 2, 64, 32>}]} {
    %c0 = arith.constant 0 : index
    %c0_0 = arith.constant 0 : index
    %c0_1 = arith.constant 0 : index
    %0 = vector.load %arg1[%c0, %c0_0, %c0_1] : memref<2x64x32xf32, #tpu.memory_space<vmem>>, vector<2x64x32xf32>
    %c0_2 = arith.constant 0 : index
    %c0_3 = arith.constant 0 : index
    %1 = vector.load %arg2[%c0_2, %c0_3] : memref<64x32xf32, #tpu.memory_space<vmem>>, vector<64x32xf32>
    %2 = vector.shape_cast %1 : vector<64x32xf32> to vector<1x64x32xf32>
    %3 = vector.broadcast %2 : vector<1x64x32xf32> to vector<2x64x32xf32>
    %4 = arith.addf %0, %3 : vector<2x64x32xf32>
    %5 = vector.shape_cast %4 : vector<2x64x32xf32> to vector<128x32xf32>
    %c0_4 = arith.constant 0 : index
    %c0_5 = arith.constant 0 : index
    %6 = vector.load %arg3[%c0_4, %c0_5] : memref<32x96xf32, #tpu.memory_space<vmem>>, vector<32x96xf32>
    %cst = arith.constant dense<0.000000e+00> : vector<128x96xf32>
    %7 = tpu.matmul %5, %6, %cst {dimension_numbers = #tpu.dot_dimension_numbers<[1], [0], [0], [1], [0, 0, 1, 1], [], []>} : vector<128x32xf32>, vector<32x96xf32>, vector<128x96xf32> -> vector<128x96xf32>
    %c0_6 = arith.constant 0 : index
    %c0_7 = arith.constant 0 : index
    %8 = vector.load %arg4[%c0_6, %c0_7] : memref<1x96xf32, #tpu.memory_space<vmem>>, vector<1x96xf32>
    %9 = vector.broadcast %8 : vector<1x96xf32> to vector<128x96xf32>
    %10 = arith.addf %7, %9 : vector<128x96xf32>
    %11 = vector.extract_strided_slice %10 {offsets = [0, 0], sizes = [128, 8], strides = [1, 1]} : vector<128x96xf32> to vector<128x8xf32>
    %12 = vector.shape_cast %11 : vector<128x8xf32> to vector<2x64x8xf32>
    %13 = vector.extract_strided_slice %10 {offsets = [0, 8], sizes = [128, 8], strides = [1, 1]} : vector<128x96xf32> to vector<128x8xf32>
    %14 = vector.shape_cast %13 : vector<128x8xf32> to vector<2x64x8xf32>
    %15 = vector.extract_strided_slice %10 {offsets = [0, 16], sizes = [128, 8], strides = [1, 1]} : vector<128x96xf32> to vector<128x8xf32>
    %16 = vector.shape_cast %15 : vector<128x8xf32> to vector<2x64x8xf32>
    %17 = vector.extract_strided_slice %10 {offsets = [0, 24], sizes = [128, 8], strides = [1, 1]} : vector<128x96xf32> to vector<128x8xf32>
    %18 = vector.shape_cast %17 : vector<128x8xf32> to vector<2x64x8xf32>
    %19 = tpu.concatenate %12, %14, %16, %18 in 0 : vector<2x64x8xf32>, vector<2x64x8xf32>, vector<2x64x8xf32>, vector<2x64x8xf32> -> vector<8x64x8xf32>
    %20 = vector.extract_strided_slice %10 {offsets = [0, 32], sizes = [128, 8], strides = [1, 1]} : vector<128x96xf32> to vector<128x8xf32>
    %21 = vector.shape_cast %20 : vector<128x8xf32> to vector<2x64x8xf32>
    %22 = vector.extract_strided_slice %10 {offsets = [0, 40], sizes = [128, 8], strides = [1, 1]} : vector<128x96xf32> to vector<128x8xf32>
    %23 = vector.shape_cast %22 : vector<128x8xf32> to vector<2x64x8xf32>
    %24 = vector.extract_strided_slice %10 {offsets = [0, 48], sizes = [128, 8], strides = [1, 1]} : vector<128x96xf32> to vector<128x8xf32>
    %25 = vector.shape_cast %24 : vector<128x8xf32> to vector<2x64x8xf32>
    %26 = vector.extract_strided_slice %10 {offsets = [0, 56], sizes = [128, 8], strides = [1, 1]} : vector<128x96xf32> to vector<128x8xf32>
    %27 = vector.shape_cast %26 : vector<128x8xf32> to vector<2x64x8xf32>
    %28 = tpu.concatenate %21, %23, %25, %27 in 0 : vector<2x64x8xf32>, vector<2x64x8xf32>, vector<2x64x8xf32>, vector<2x64x8xf32> -> vector<8x64x8xf32>
    %29 = vector.extract_strided_slice %10 {offsets = [0, 64], sizes = [128, 8], strides = [1, 1]} : vector<128x96xf32> to vector<128x8xf32>
    %30 = vector.shape_cast %29 : vector<128x8xf32> to vector<2x64x8xf32>
    %31 = vector.extract_strided_slice %10 {offsets = [0, 72], sizes = [128, 8], strides = [1, 1]} : vector<128x96xf32> to vector<128x8xf32>
    %32 = vector.shape_cast %31 : vector<128x8xf32> to vector<2x64x8xf32>
    %33 = vector.extract_strided_slice %10 {offsets = [0, 80], sizes = [128, 8], strides = [1, 1]} : vector<128x96xf32> to vector<128x8xf32>
    %34 = vector.shape_cast %33 : vector<128x8xf32> to vector<2x64x8xf32>
    %35 = vector.extract_strided_slice %10 {offsets = [0, 88], sizes = [128, 8], strides = [1, 1]} : vector<128x96xf32> to vector<128x8xf32>
    %36 = vector.shape_cast %35 : vector<128x8xf32> to vector<2x64x8xf32>
    %37 = tpu.concatenate %30, %32, %34, %36 in 0 : vector<2x64x8xf32>, vector<2x64x8xf32>, vector<2x64x8xf32>, vector<2x64x8xf32> -> vector<8x64x8xf32>
    %cst_8 = arith.constant dense<0.000000e+00> : vector<8x64x64xf32>
    %38 = tpu.matmul %19, %28, %cst_8 {dimension_numbers = #tpu.dot_dimension_numbers<[2], [2], [1], [1], [0, 0, 0, 1, 1, 1], [0], [0]>} : vector<8x64x8xf32>, vector<8x64x8xf32>, vector<8x64x64xf32> -> vector<8x64x64xf32>
    %cst_9 = arith.constant dense<0xFF800000> : vector<8x64xf32>
    %39 = vector.multi_reduction <maximumf>, %38, %cst_9 [2] : vector<8x64x64xf32> to vector<8x64xf32>
    %40 = vector.shape_cast %39 : vector<8x64xf32> to vector<8x64x1xf32>
    %41 = vector.broadcast %40 : vector<8x64x1xf32> to vector<8x64x64xf32>
    %42 = arith.subf %38, %41 : vector<8x64x64xf32>
    %43 = math.exp %42 : vector<8x64x64xf32>
    %cst_10 = arith.constant dense<0.000000e+00> : vector<8x64xf32>
    %44 = vector.multi_reduction <add>, %43, %cst_10 [2] : vector<8x64x64xf32> to vector<8x64xf32>
    %45 = vector.shape_cast %44 : vector<8x64xf32> to vector<8x64x1xf32>
    %46 = tpu.reciprocal %45 {approx = true} : vector<8x64x1xf32> -> vector<8x64x1xf32>
    %47 = vector.broadcast %46 : vector<8x64x1xf32> to vector<8x64x64xf32>
    %48 = arith.mulf %43, %47 : vector<8x64x64xf32>
    %cst_11 = arith.constant dense<0.000000e+00> : vector<8x64x8xf32>
    %49 = tpu.matmul %48, %37, %cst_11 {dimension_numbers = #tpu.dot_dimension_numbers<[2], [1], [1], [2], [0, 0, 0, 1, 1, 2], [0], [0]>} : vector<8x64x64xf32>, vector<8x64x8xf32>, vector<8x64x8xf32> -> vector<8x64x8xf32>
    %50 = vector.extract_strided_slice %49 {offsets = [0, 0, 0], sizes = [2, 64, 8], strides = [1, 1, 1]} : vector<8x64x8xf32> to vector<2x64x8xf32>
    %51 = vector.shape_cast %50 : vector<2x64x8xf32> to vector<128x8xf32>
    %52 = vector.extract_strided_slice %49 {offsets = [2, 0, 0], sizes = [2, 64, 8], strides = [1, 1, 1]} : vector<8x64x8xf32> to vector<2x64x8xf32>
    %53 = vector.shape_cast %52 : vector<2x64x8xf32> to vector<128x8xf32>
    %54 = vector.extract_strided_slice %49 {offsets = [4, 0, 0], sizes = [2, 64, 8], strides = [1, 1, 1]} : vector<8x64x8xf32> to vector<2x64x8xf32>
    %55 = vector.shape_cast %54 : vector<2x64x8xf32> to vector<128x8xf32>
    %56 = vector.extract_strided_slice %49 {offsets = [6, 0, 0], sizes = [2, 64, 8], strides = [1, 1, 1]} : vector<8x64x8xf32> to vector<2x64x8xf32>
    %57 = vector.shape_cast %56 : vector<2x64x8xf32> to vector<128x8xf32>
    %58 = tpu.concatenate %51, %53, %55, %57 in 1 : vector<128x8xf32>, vector<128x8xf32>, vector<128x8xf32>, vector<128x8xf32> -> vector<128x32xf32>
    %c0_12 = arith.constant 0 : index
    %c0_13 = arith.constant 0 : index
    %59 = vector.load %arg5[%c0_12, %c0_13] : memref<32x32xf32, #tpu.memory_space<vmem>>, vector<32x32xf32>
    %cst_14 = arith.constant dense<0.000000e+00> : vector<128x32xf32>
    %60 = tpu.matmul %58, %59, %cst_14 {dimension_numbers = #tpu.dot_dimension_numbers<[1], [0], [0], [1], [0, 0, 1, 1], [], []>} : vector<128x32xf32>, vector<32x32xf32>, vector<128x32xf32> -> vector<128x32xf32>
    %c0_15 = arith.constant 0 : index
    %c0_16 = arith.constant 0 : index
    %61 = vector.load %arg6[%c0_15, %c0_16] : memref<1x32xf32, #tpu.memory_space<vmem>>, vector<1x32xf32>
    %62 = vector.broadcast %61 : vector<1x32xf32> to vector<128x32xf32>
    %63 = arith.addf %60, %62 : vector<128x32xf32>
    %64 = arith.addf %5, %63 : vector<128x32xf32>
    %c0_17 = arith.constant 0 : index
    %c0_18 = arith.constant 0 : index
    %65 = vector.load %arg11[%c0_17, %c0_18] : memref<1x32xf32, #tpu.memory_space<vmem>>, vector<1x32xf32>
    %c0_19 = arith.constant 0 : index
    %c0_20 = arith.constant 0 : index
    %66 = vector.load %arg12[%c0_19, %c0_20] : memref<1x32xf32, #tpu.memory_space<vmem>>, vector<1x32xf32>
    %cst_21 = arith.constant dense<0.000000e+00> : vector<128xf32>
    %67 = vector.multi_reduction <add>, %64, %cst_21 [1] : vector<128x32xf32> to vector<128xf32>
    %68 = vector.shape_cast %67 : vector<128xf32> to vector<128x1xf32>
    %cst_22 = arith.constant 3.200000e+01 : f32
    %69 = vector.broadcast %cst_22 : f32 to vector<128x1xf32>
    %70 = arith.divf %68, %69 : vector<128x1xf32>
    %71 = vector.broadcast %70 : vector<128x1xf32> to vector<128x32xf32>
    %72 = arith.subf %64, %71 : vector<128x32xf32>
    %73 = arith.mulf %72, %72 : vector<128x32xf32>
    %cst_23 = arith.constant dense<0.000000e+00> : vector<128xf32>
    %74 = vector.multi_reduction <add>, %73, %cst_23 [1] : vector<128x32xf32> to vector<128xf32>
    %75 = vector.shape_cast %74 : vector<128xf32> to vector<128x1xf32>
    %cst_24 = arith.constant 3.200000e+01 : f32
    %76 = vector.broadcast %cst_24 : f32 to vector<128x1xf32>
    %77 = arith.divf %75, %76 : vector<128x1xf32>
    %78 = vector.broadcast %70 : vector<128x1xf32> to vector<128x32xf32>
    %79 = arith.subf %64, %78 : vector<128x32xf32>
    %cst_25 = arith.constant 9.99999974E-6 : f32
    %80 = vector.broadcast %cst_25 : f32 to vector<128x1xf32>
    %81 = arith.addf %77, %80 : vector<128x1xf32>
    %82 = math.rsqrt %81 : vector<128x1xf32>
    %83 = vector.broadcast %82 : vector<128x1xf32> to vector<128x32xf32>
    %84 = arith.mulf %79, %83 : vector<128x32xf32>
    %85 = vector.broadcast %65 : vector<1x32xf32> to vector<128x32xf32>
    %86 = arith.mulf %84, %85 : vector<128x32xf32>
    %87 = vector.broadcast %66 : vector<1x32xf32> to vector<128x32xf32>
    %88 = arith.addf %86, %87 : vector<128x32xf32>
    %c0_26 = arith.constant 0 : index
    %c0_27 = arith.constant 0 : index
    %89 = vector.load %arg7[%c0_26, %c0_27] : memref<32x64xf32, #tpu.memory_space<vmem>>, vector<32x64xf32>
    %cst_28 = arith.constant dense<0.000000e+00> : vector<128x64xf32>
    %90 = tpu.matmul %88, %89, %cst_28 {dimension_numbers = #tpu.dot_dimension_numbers<[1], [0], [0], [1], [0, 0, 1, 1], [], []>} : vector<128x32xf32>, vector<32x64xf32>, vector<128x64xf32> -> vector<128x64xf32>
    %c0_29 = arith.constant 0 : index
    %c0_30 = arith.constant 0 : index
    %91 = vector.load %arg8[%c0_29, %c0_30] : memref<1x64xf32, #tpu.memory_space<vmem>>, vector<1x64xf32>
    %92 = vector.broadcast %91 : vector<1x64xf32> to vector<128x64xf32>
    %93 = arith.addf %90, %92 : vector<128x64xf32>
    %cst_31 = arith.constant 5.000000e-01 : f32
    %94 = vector.broadcast %cst_31 : f32 to vector<128x64xf32>
    %95 = arith.mulf %94, %93 : vector<128x64xf32>
    %cst_32 = arith.constant 4.471500e-02 : f32
    %96 = vector.broadcast %cst_32 : f32 to vector<128x64xf32>
    %97 = arith.mulf %96, %93 : vector<128x64xf32>
    %98 = arith.mulf %97, %93 : vector<128x64xf32>
    %99 = arith.mulf %98, %93 : vector<128x64xf32>
    %100 = arith.addf %93, %99 : vector<128x64xf32>
    %cst_33 = arith.constant 0.797884583 : f32
    %101 = vector.broadcast %cst_33 : f32 to vector<128x64xf32>
    %102 = arith.mulf %101, %100 : vector<128x64xf32>
    %103 = math.tanh %102 : vector<128x64xf32>
    %cst_34 = arith.constant 1.000000e+00 : f32
    %104 = vector.broadcast %cst_34 : f32 to vector<128x64xf32>
    %105 = arith.addf %104, %103 : vector<128x64xf32>
    %106 = arith.mulf %95, %105 : vector<128x64xf32>
    %c0_35 = arith.constant 0 : index
    %c0_36 = arith.constant 0 : index
    %107 = vector.load %arg9[%c0_35, %c0_36] : memref<64x32xf32, #tpu.memory_space<vmem>>, vector<64x32xf32>
    %cst_37 = arith.constant dense<0.000000e+00> : vector<128x32xf32>
    %108 = tpu.matmul %106, %107, %cst_37 {dimension_numbers = #tpu.dot_dimension_numbers<[1], [0], [0], [1], [0, 0, 1, 1], [], []>} : vector<128x64xf32>, vector<64x32xf32>, vector<128x32xf32> -> vector<128x32xf32>
    %c0_38 = arith.constant 0 : index
    %c0_39 = arith.constant 0 : index
    %109 = vector.load %arg10[%c0_38, %c0_39] : memref<1x32xf32, #tpu.memory_space<vmem>>, vector<1x32xf32>
    %110 = vector.broadcast %109 : vector<1x32xf32> to vector<128x32xf32>
    %111 = arith.addf %108, %110 : vector<128x32xf32>
    %112 = arith.addf %88, %111 : vector<128x32xf32>
    %c0_40 = arith.constant 0 : index
    %c0_41 = arith.constant 0 : index
    %113 = vector.load %arg13[%c0_40, %c0_41] : memref<1x32xf32, #tpu.memory_space<vmem>>, vector<1x32xf32>
    %c0_42 = arith.constant 0 : index
    %c0_43 = arith.constant 0 : index
    %114 = vector.load %arg14[%c0_42, %c0_43] : memref<1x32xf32, #tpu.memory_space<vmem>>, vector<1x32xf32>
    %cst_44 = arith.constant dense<0.000000e+00> : vector<128xf32>
    %115 = vector.multi_reduction <add>, %112, %cst_44 [1] : vector<128x32xf32> to vector<128xf32>
    %116 = vector.shape_cast %115 : vector<128xf32> to vector<128x1xf32>
    %cst_45 = arith.constant 3.200000e+01 : f32
    %117 = vector.broadcast %cst_45 : f32 to vector<128x1xf32>
    %118 = arith.divf %116, %117 : vector<128x1xf32>
    %119 = vector.broadcast %118 : vector<128x1xf32> to vector<128x32xf32>
    %120 = arith.subf %112, %119 : vector<128x32xf32>
    %121 = arith.mulf %120, %120 : vector<128x32xf32>
    %cst_46 = arith.constant dense<0.000000e+00> : vector<128xf32>
    %122 = vector.multi_reduction <add>, %121, %cst_46 [1] : vector<128x32xf32> to vector<128xf32>
    %123 = vector.shape_cast %122 : vector<128xf32> to vector<128x1xf32>
    %cst_47 = arith.constant 3.200000e+01 : f32
    %124 = vector.broadcast %cst_47 : f32 to vector<128x1xf32>
    %125 = arith.divf %123, %124 : vector<128x1xf32>
    %126 = vector.broadcast %118 : vector<128x1xf32> to vector<128x32xf32>
    %127 = arith.subf %112, %126 : vector<128x32xf32>
    %cst_48 = arith.constant 9.99999974E-6 : f32
    %128 = vector.broadcast %cst_48 : f32 to vector<128x1xf32>
    %129 = arith.addf %125, %128 : vector<128x1xf32>
    %130 = math.rsqrt %129 : vector<128x1xf32>
    %131 = vector.broadcast %130 : vector<128x1xf32> to vector<128x32xf32>
    %132 = arith.mulf %127, %131 : vector<128x32xf32>
    %133 = vector.broadcast %113 : vector<1x32xf32> to vector<128x32xf32>
    %134 = arith.mulf %132, %133 : vector<128x32xf32>
    %135 = vector.broadcast %114 : vector<1x32xf32> to vector<128x32xf32>
    %136 = arith.addf %134, %135 : vector<128x32xf32>
    %137 = vector.shape_cast %136 : vector<128x32xf32> to vector<2x64x32xf32>
    %c0_49 = arith.constant 0 : index
    %c0_50 = arith.constant 0 : index
    %c0_51 = arith.constant 0 : index
    %138 = vector.load %arg15[%c0_49, %c0_50, %c0_51] : memref<2x64x32xf32, #tpu.memory_space<vmem>>, vector<2x64x32xf32>
    tpu.vector_store %arg15[%c0_49, %c0_50, %c0_51], %137 {strides = array<i32>} : memref<2x64x32xf32, #tpu.memory_space<vmem>>, vector<2x64x32xf32>,
    return
  }
  func.func @transform_0(%arg0: i32) -> (i32, i32, i32) {
    %c0_i32 = arith.constant 0 : i32
    %c0_i32_0 = arith.constant 0 : i32
    %c0_i32_1 = arith.constant 0 : i32
    return %arg0, %c0_i32, %c0_i32_0 : i32, i32, i32
  }
  func.func @transform_1(%arg0: i32) -> (i32, i32) {
    %c0_i32 = arith.constant 0 : i32
    %c0_i32_0 = arith.constant 0 : i32
    %c0_i32_1 = arith.constant 0 : i32
    return %c0_i32, %c0_i32_0 : i32, i32
  }
  func.func @transform_2(%arg0: i32) -> (i32, i32) {
    %c0_i32 = arith.constant 0 : i32
    %c0_i32_0 = arith.constant 0 : i32
    %c0_i32_1 = arith.constant 0 : i32
    return %c0_i32, %c0_i32_0 : i32, i32
  }
  func.func @transform_3(%arg0: i32) -> (i32, i32) {
    %c0_i32 = arith.constant 0 : i32
    %c0_i32_0 = arith.constant 0 : i32
    %c0_i32_1 = arith.constant 0 : i32
    return %c0_i32, %c0_i32_0 : i32, i32
  }
  func.func @transform_4(%arg0: i32) -> (i32, i32) {
    %c0_i32 = arith.constant 0 : i32
    %c0_i32_0 = arith.constant 0 : i32
    %c0_i32_1 = arith.constant 0 : i32
    return %c0_i32, %c0_i32_0 : i32, i32
  }
  func.func @transform_5(%arg0: i32) -> (i32, i32) {
    %c0_i32 = arith.constant 0 : i32
    %c0_i32_0 = arith.constant 0 : i32
    %c0_i32_1 = arith.constant 0 : i32
    return %c0_i32, %c0_i32_0 : i32, i32
  }
  func.func @transform_6(%arg0: i32) -> (i32, i32) {
    %c0_i32 = arith.constant 0 : i32
    %c0_i32_0 = arith.constant 0 : i32
    %c0_i32_1 = arith.constant 0 : i32
    return %c0_i32, %c0_i32_0 : i32, i32
  }
  func.func @transform_7(%arg0: i32) -> (i32, i32) {
    %c0_i32 = arith.constant 0 : i32
    %c0_i32_0 = arith.constant 0 : i32
    %c0_i32_1 = arith.constant 0 : i32
    return %c0_i32, %c0_i32_0 : i32, i32
  }
  func.func @transform_8(%arg0: i32) -> (i32, i32) {
    %c0_i32 = arith.constant 0 : i32
    %c0_i32_0 = arith.constant 0 : i32
    %c0_i32_1 = arith.constant 0 : i32
    return %c0_i32, %c0_i32_0 : i32, i32
  }
  func.func @transform_9(%arg0: i32) -> (i32, i32) {
    %c0_i32 = arith.constant 0 : i32
    %c0_i32_0 = arith.constant 0 : i32
    %c0_i32_1 = arith.constant 0 : i32
    return %c0_i32, %c0_i32_0 : i32, i32
  }
  func.func @transform_10(%arg0: i32) -> (i32, i32) {
    %c0_i32 = arith.constant 0 : i32
    %c0_i32_0 = arith.constant 0 : i32
    %c0_i32_1 = arith.constant 0 : i32
    return %c0_i32, %c0_i32_0 : i32, i32
  }
  func.func @transform_11(%arg0: i32) -> (i32, i32) {
    %c0_i32 = arith.constant 0 : i32
    %c0_i32_0 = arith.constant 0 : i32
    %c0_i32_1 = arith.constant 0 : i32
    return %c0_i32, %c0_i32_0 : i32, i32
  }
  func.func @transform_12(%arg0: i32) -> (i32, i32) {
    %c0_i32 = arith.constant 0 : i32
    %c0_i32_0 = arith.constant 0 : i32
    %c0_i32_1 = arith.constant 0 : i32
    return %c0_i32, %c0_i32_0 : i32, i32
  }
  func.func @transform_13(%arg0: i32) -> (i32, i32) {
    %c0_i32 = arith.constant 0 : i32
    %c0_i32_0 = arith.constant 0 : i32
    %c0_i32_1 = arith.constant 0 : i32
    return %c0_i32, %c0_i32_0 : i32, i32
  }
  func.func @transform_14(%arg0: i32) -> (i32, i32, i32) {
    %c0_i32 = arith.constant 0 : i32
    %c0_i32_0 = arith.constant 0 : i32
    %c0_i32_1 = arith.constant 0 : i32
    return %arg0, %c0_i32, %c0_i32_0 : i32, i32, i32
  }
}

</mosaic_0001>

<bundles_post_ra>
// kernel: tpu_custom_call.1
= control target key start
LH: loop header
LB: loop body
LE: loop exit
PB: predicated region body
PF: predicated region fallthrough
CT: control target
= control target key end

     0   :  { %s5452_s29 = smov 0   ;;  %s8201_s0 = inlined_call_operand.vmem [shape: f32[8,64,32], index: 0, kind: input, shape index: {}]   ;;  %s8202_s1 = inlined_call_operand.vmem [shape: f32[64,32], index: 1, kind: input, shape index: {}]   ;;  %s8203_s2 = inlined_call_operand.vmem [shape: f32[32,96], index: 2, kind: input, shape index: {}]   ;;  %s8204_s3 = inlined_call_operand.vmem [shape: f32[1,96], index: 3, kind: input, shape index: {}]   ;;  %s8205_s4 = inlined_call_operand.vmem [shape: f32[32,32], index: 4, kind: input, shape index: {}]   ;;  %s8206_s5 = inlined_call_operand.vmem [shape: f32[1,32], index: 5, kind: input, shape index: {}]   ;;  %s8207_s6 = inlined_call_operand.vmem [shape: f32[32,64], index: 6, kind: input, shape index: {}]   ;;  %s8208_s7 = inlined_call_operand.vmem [shape: f32[1,64], index: 7, kind: input, shape index: {}]   ;;  %s8209_s8 = inlined_call_operand.vmem [shape: f32[64,32], index: 8, kind: input, shape index: {}]   ;;  %s8210_s9 = inlined_call_operand.vmem [shape: f32[1,32], index: 9, kind: input, shape index: {}]   ;;  %s8211_s10 = inlined_call_operand.vmem [shape: f32[1,32], index: 10, kind: input, shape index: {}]   ;;  %s8212_s11 = inlined_call_operand.vmem [shape: f32[1,32], index: 11, kind: input, shape index: {}]   ;;  %s8213_s12 = inlined_call_operand.vmem [shape: f32[1,32], index: 12, kind: input, shape index: {}]   ;;  %s8214_s13 = inlined_call_operand.vmem [shape: f32[1,32], index: 13, kind: input, shape index: {}]   ;;  %s8215_s14 = inlined_call_operand.vmem [shape: f32[8,64,32], index: 14, kind: output, shape index: {}]  }
   0x1 LB: > { %s4530_s30 = sadd.s32 4294967295, %s5366_s29   ;;  %p4534_p0 = scmp.ge.s32.totalorder %s5366_s29, 1  ;;  %s5366_s29 = sphi %s5452_s29, %s24_s29  }
   0x2   : > { %p414_p1 = scmp.lt.s32.totalorder %s5366_s29, 5 }
   0x4   : > { %p415_p2 = pnand %p4534_p0, %p414_p1 }
   0x6   : > { %418 = sbr.rel (%p415_p2) target bundleno = 2752 (0xac0), region = 76 }
   0xb   : > { %v519_v0 = vld [vmem:[%s8203_s2 + $0x18] sm:$0xff]  ;;  %v518_v1 = vld [vmem:[%s8203_s2 + $0x10] sm:$0xff]  ;;  %s4535_s19 = sshll.u32 %s4530_s30, 1  ;;  %v517_v2 = vld [vmem:[%s8203_s2 + $0x8] sm:$0xff]  ;;  %vm524_vm0 = vcmask 261120   ;;  %s5368_s20 = smov 112  }
   0xc   : > { %585 = vmatpush.msra.mxu0 %v519_v0  ;;  %p463_p3 = scmp.lt.s32.totalorder %s4535_s19, 7  ;;  %4801 = vmatpush.msra.mxu1 %v519_v0  ;;  %v516_v3 = vld [vmem:[%s8203_s2] sm:$0xff]  ;;  %v494_v5 = vld [vmem:[%s8202_s1 + $0x10] sm:$0xff]  ;;  %v495_v10 = vld [vmem:[%s8202_s1 + $0x18] sm:$0xff]  ;;  %s5370_s21 = smov 120   ;;  %vm766_vm1 = vcmask 64512  }
   0xd   : > { %v492_v4 = vld [vmem:[%s8202_s1] sm:$0xff]  ;;  %v493_v13 = vld [vmem:[%s8202_s1 + $0x8] sm:$0xff]  ;;  %v498_v27 = vld [vmem:[%s8202_s1 + $0x30] sm:$0xff]  ;;  %s5371_s22 = smov 104   ;;  %s5372_s23 = smov 64   ;;  %vm1463_vm2 = vcmask 523264  }
   0xe   : > { %586 = vmatpush.msra.mxu0 %v518_v1  ;;  %s8458_s19 = smov (!%p463_p3, %s4535_s19), 7  ;;  %4802 = vmatpush.msra.mxu1 %v518_v1  ;;  %v496_v18 = vld [vmem:[%s8202_s1 + $0x20] sm:$0xff]  ;;  %v497_v23 = vld [vmem:[%s8202_s1 + $0x28] sm:$0xff]  ;;  %v499_v32 = vld [vmem:[%s8202_s1 + $0x38] sm:$0xff]  ;;  %s5373_s24 = smov 8   ;;  %vm3088_vm3 = vcmask 130048  }
   0xf   : > { %s4799_s26 = sshll.u32 %s8458_s19, 6  ;;  %v5589_v44 = vld [vmem:[%s8204_s3] ss:$0 sm:$0xff]  ;;  %s5374_s25 = smov 24   ;;  %vm3105_vm4 = vcmask 195584  }
  0x10   : > { %587 = vmatpush.msra.mxu0 %v517_v2  ;;  %4803 = vmatpush.msra.mxu1 %v517_v2  ;;  %s5486_s16 = scalar_lea.vmem %s8201_s0, %s4799_s26  ;;  %s5375_s27 = smov 16  }
  0x11   : > { %v476_v6 = vld [vmem:[%s5486_s16] sm:$0xff]  ;;  %v486_v7 = vld [vmem:[%s5486_s16 + $0x50] sm:$0xff]  ;;  %v487_v11 = vld [vmem:[%s5486_s16 + $0x58] sm:$0xff] }
  0x12   : > { %588 = vmatpush.msra.mxu0 %v516_v3  ;;  %4804 = vmatpush.msra.mxu1 %v516_v3  ;;  %v5490_v8 = vadd.f32 %v492_v4, %v476_v6  ;;  %v5492_v9 = vadd.f32 %v494_v5, %v486_v7  ;;  %v477_v12 = vld [vmem:[%s5486_s16 + $0x8] sm:$0xff]  ;;  %v5506_v14 = vadd.f32 %v495_v10, %v487_v11  ;;  %v478_v16 = vld [vmem:[%s5486_s16 + $0x10] sm:$0xff]  ;;  %v488_v17 = vld [vmem:[%s5486_s16 + $0x60] sm:$0xff] }
  0x13   : > { %v5508_v15 = vadd.f32 %v493_v13, %v477_v12  ;;  %v5519_v19 = vadd.f32 %v494_v5, %v478_v16  ;;  %v5521_v20 = vadd.f32 %v496_v18, %v488_v17  ;;  %v479_v21 = vld [vmem:[%s5486_s16 + $0x18] sm:$0xff]  ;;  %v489_v22 = vld [vmem:[%s5486_s16 + $0x68] sm:$0xff]  ;;  %v490_v26 = vld [vmem:[%s5486_s16 + $0x70] sm:$0xff] }
  0x14   : > { %8301 = vst [vmem:[#allocation2_spill] sm:$0xff] %v5490_v8  ;;  %4541 = vmatmul.msk.f32.vlgmr.msra.gmra.mxu0 %vm524_vm0, %v5490_v8  ;;  %4551 = vmatmul.msk.f32.vlgmr.msra.gmra.mxu1 %vm524_vm0, %v5492_v9  ;;  %v5532_v24 = vadd.f32 %v495_v10, %v479_v21  ;;  %v5534_v25 = vadd.f32 %v497_v23, %v489_v22  ;;  %v480_v28 = vld [vmem:[%s5486_s16 + $0x20] sm:$0xff]  ;;  %v491_v31 = vld [vmem:[%s5486_s16 + $0x78] sm:$0xff]  ;;  %v481_v33 = vld [vmem:[%s5486_s16 + $0x28] sm:$0xff] }
  0x15   : > { %8302 = vst [vmem:[#allocation3_spill] sm:$0xff] %v5492_v9  ;;  %v5545_v29 = vadd.f32 %v498_v27, %v490_v26  ;;  %v5547_v30 = vadd.f32 %v496_v18, %v480_v28  ;;  %v5558_v34 = vadd.f32 %v499_v32, %v491_v31  ;;  %v5560_v35 = vadd.f32 %v497_v23, %v481_v33  ;;  %v482_v36 = vld [vmem:[%s5486_s16 + $0x30] sm:$0xff]  ;;  %v483_v38 = vld [vmem:[%s5486_s16 + $0x38] sm:$0xff]  ;;  %v484_v40 = vld [vmem:[%s5486_s16 + $0x40] sm:$0xff] }
  0x16   : > { %8303 = vst [vmem:[#allocation4_spill] sm:$0xff] %v5506_v14  ;;  %v5567_v37 = vadd.f32 %v498_v27, %v482_v36  ;;  %v5572_v39 = vadd.f32 %v499_v32, %v483_v38  ;;  %v5577_v41 = vadd.f32 %v492_v4, %v484_v40  ;;  %v485_v42 = vld [vmem:[%s5486_s16 + $0x48] sm:$0xff]  ;;  %s5369_s16 = smov 96  }
  0x17   : > { %8304 = vst [vmem:[#allocation5_spill] sm:$0xff] %v5508_v15  ;;  %v5582_v43 = vadd.f32 %v493_v13, %v485_v42 }
  0x18   : > { %8305 = vst [vmem:[#allocation6_spill] sm:$0xff] %v5519_v19 }
  0x19   : > { %8306 = vst [vmem:[#allocation7_spill] sm:$0xff] %v5521_v20 }
  0x1a   : > { %8307 = vst [vmem:[#allocation8_spill] sm:$0xff] %v5532_v24 }
  0x1b   : > { %8308 = vst [vmem:[#allocation9_spill] sm:$0xff] %v5534_v25 }
  0x1c   : > { %4552 = vmatmul.msk.f32.gmra.mxu1 %vm524_vm0, %v5506_v14  ;;  %4542 = vmatmul.msk.f32.gmra.mxu0 %vm524_vm0, %v5508_v15  ;;  %8309 = vst [vmem:[#allocation10_spill] sm:$0xff] %v5545_v29 }
  0x1d   : > { %8310 = vst [vmem:[#allocation11_spill] sm:$0xff] %v5547_v30 }
  0x1e   : > { %8311 = vst [vmem:[#allocation12_spill] sm:$0xff] %v5558_v34 }
  0x1f   : > { %8312 = vst [vmem:[#allocation13_spill] sm:$0xff] %v5560_v35 }
  0x20   : > { %8313 = vst [vmem:[#allocation14_spill] sm:$0xff] %v5567_v37 }
  0x21   : > { %8314 = vst [vmem:[#allocation15_spill] sm:$0xff] %v5572_v39 }
  0x22   : > { %8315 = vst [vmem:[#allocation16_spill] sm:$0xff] %v5577_v41 }
  0x23   : > { %8316 = vst [vmem:[#allocation17_spill] sm:$0xff] %v5582_v43 }
  0x24   : > { %4543 = vmatmul.msk.f32.gmra.mxu0 %vm524_vm0, %v5519_v19  ;;  %4553 = vmatmul.msk.f32.gmra.mxu1 %vm524_vm0, %v5521_v20 }
  0x2c   : > { %4544 = vmatmul.msk.f32.gmra.mxu0 %vm524_vm0, %v5532_v24  ;;  %4554 = vmatmul.msk.f32.gmra.mxu1 %vm524_vm0, %v5534_v25 }
  0x34   : > { %4555 = vmatmul.msk.f32.gmra.mxu1 %vm524_vm0, %v5545_v29  ;;  %4545 = vmatmul.msk.f32.gmra.mxu0 %vm524_vm0, %v5547_v30 }
  0x3c   : > { %4556 = vmatmul.msk.f32.gmra.mxu1 %vm524_vm0, %v5558_v34  ;;  %4546 = vmatmul.msk.f32.gmra.mxu0 %vm524_vm0, %v5560_v35 }
  0x44   : > { %4547 = vmatmul.msk.f32.gmra.mxu0 %vm524_vm0, %v5567_v37 }
  0x4c   : > { %4548 = vmatmul.msk.f32.gmra.mxu0 %vm524_vm0, %v5572_v39 }
  0x54   : > { %4549 = vmatmul.msk.f32.gmra.mxu0 %vm524_vm0, %v5577_v41 }
  0x5c   : > { %4550 = vmatmul.msk.f32.gmra.mxu0 %vm524_vm0, %v5582_v43 }
  0x91   : > { %v590_v45 = vpop.f32.mrf.mxu0  ;;  %v620_v47 = vpop.f32.mrf.mxu1 }
  0x92   : > { %v5592_v46 = vadd.f32 %v5589_v44, %v590_v45  ;;  %v5601_v48 = vadd.f32 %v5589_v44, %v620_v47 }
  0x94   : > { %686 = vrot.lane.b32.xlu0 %v5592_v46, %s5368_s20  ;;  %750 = vrot.lane.b32.xlu1 %v5592_v46, %s5369_s16  ;;  %8317 = vst [vmem:[#allocation18_spill] sm:$0xff] %v5601_v48 }
  0x95   : > { %654 = vrot.lane.b32.xlu2 %v5592_v46, %s5370_s21 }
  0x99   : > { %v623_v49 = vpop.f32.mrf.mxu1  ;;  %v593_v51 = vpop.f32.mrf.mxu0 }
  0x9a   : > { %v5610_v50 = vadd.f32 %v5589_v44, %v623_v49  ;;  %v5619_v52 = vadd.f32 %v5589_v44, %v593_v51 }
  0x9c   : > { %706 = vrot.lane.b32.xlu0 %v5601_v48, %s5368_s20  ;;  %674 = vrot.lane.b32.xlu1 %v5601_v48, %s5370_s21  ;;  %8318 = vst [vmem:[#allocation19_spill] sm:$0xff] %v5610_v50 }
  0x9d   : > { %844 = vrot.lane.b32.xlu2 %v5601_v48, %s5369_s16 }
  0xa1   : > { %v596_v53 = vpop.f32.mrf.mxu0  ;;  %v626_v54 = vpop.f32.mrf.mxu1 }
  0xa2   : > { %v5628_v55 = vadd.f32 %v5589_v44, %v596_v53  ;;  %v5631_v56 = vadd.f32 %v5589_v44, %v626_v54 }
  0xa4   : > { %738 = vrot.lane.b32.xlu0 %v5601_v48, %s5371_s22  ;;  %846 = vrot.lane.b32.xlu1 %v5610_v50, %s5369_s16  ;;  %8319 = vst [vmem:[#allocation20_spill] sm:$0xff] %v5631_v56 }
  0xa5   : > { %718 = vrot.lane.b32.xlu2 %v5592_v46, %s5371_s22 }
  0xa9   : > { %v629_v57 = vpop.f32.mrf.mxu1  ;;  %v599_v58 = vpop.f32.mrf.mxu0 }
  0xaa   : > { %v5652_v59 = vadd.f32 %v5589_v44, %v599_v58  ;;  %v5661_v61 = vadd.f32 %v5589_v44, %v629_v57 }
  0xac   : > { %656 = vrot.lane.b32.xlu0 %v5619_v52, %s5370_s21  ;;  %676 = vrot.lane.b32.xlu1 %v5610_v50, %s5370_s21  ;;  %8320 = vst [vmem:[#allocation21_spill] sm:$0xff] %v5661_v61 }
  0xad   : > { %752 = vrot.lane.b32.xlu2 %v5619_v52, %s5369_s16 }
  0xb1   : > { %v632_v60 = vpop.f32.mrf.mxu1  ;;  %v602_v62 = vpop.f32.mrf.mxu0 }
  0xb2   : > { %v5679_v2 = vadd.f32 %v5589_v44, %v602_v62  ;;  %v5702_v7 = vadd.f32 %v5589_v44, %v632_v60 }
  0xb4   : > { %848 = vrot.lane.b32.xlu0 %v5631_v56, %s5369_s16  ;;  %658 = vrot.lane.b32.xlu1 %v5628_v55, %s5370_s21  ;;  %8321 = vst [vmem:[#allocation22_spill] sm:$0xff] %v5702_v7 }
  0xb5   : > { %688 = vrot.lane.b32.xlu2 %v5619_v52, %s5368_s20 }
  0xb9   : > { %v635_v63 = vpop.f32.mrf.mxu1  ;;  %v605_v1 = vpop.f32.mrf.mxu0 }
  0xba   : > { %v5670_v0 = vadd.f32 %v5589_v44, %v635_v63  ;;  %v5682_v3 = vadd.f32 %v5589_v44, %v605_v1 }
  0xbc   : > { %678 = vrot.lane.b32.xlu0 %v5631_v56, %s5370_s21  ;;  %754 = vrot.lane.b32.xlu1 %v5628_v55, %s5369_s16  ;;  %v4838_v36 = vpack.i.bf16 %v5679_v2, %v5682_v3 }
  0xbd   : > { %720 = vrot.lane.b32.xlu2 %v5619_v52, %s5371_s22 }
  0xc1   : > { %v608_v4 = vpop.f32.mrf.mxu0 }
  0xc2   : > { %v5699_v6 = vadd.f32 %v5589_v44, %v608_v4 }
  0xc4   : > { %742 = vrot.lane.b32.xlu0 %v5631_v56, %s5371_s22  ;;  %690 = vrot.lane.b32.xlu1 %v5628_v55, %s5368_s20 }
  0xc5   : > { %708 = vrot.lane.b32.xlu2 %v5610_v50, %s5368_s20 }
  0xc9   : > { %v611_v11 = vpop.f32.mrf.mxu0 }
  0xca   : > { %v5721_v13 = vadd.f32 %v5589_v44, %v611_v11 }
  0xcc   : > { %756 = vrot.lane.b32.xlu0 %v5652_v59, %s5369_s16  ;;  %710 = vrot.lane.b32.xlu1 %v5631_v56, %s5368_s20  ;;  %v4843_v26 = vpack.i.bf16 %v5699_v6, %v5721_v13 }
  0xcd   : > { %740 = vrot.lane.b32.xlu2 %v5610_v50, %s5371_s22 }
  0xd1   : > { %v614_v31 = vpop.f32.mrf.mxu0 }
  0xd2   : > { %v5761_v33 = vadd.f32 %v5589_v44, %v614_v31 }
  0xd4   : > { %692 = vrot.lane.b32.xlu0 %v5652_v59, %s5368_s20  ;;  %712 = vrot.lane.b32.xlu1 %v5661_v61, %s5368_s20  ;;  %8324 = vst [vmem:[#allocation25_spill] sm:$0xff] %v5761_v33 }
  0xd5   : > { %722 = vrot.lane.b32.xlu2 %v5628_v55, %s5371_s22 }
  0xd9   : > { %v617_v45 = vpop.f32.mrf.mxu0 }
  0xda   : > { %v5789_v53 = vadd.f32 %v5589_v44, %v617_v45 }
  0xdc   : > { %684 = vrot.lane.b32.xlu0 %v5670_v0, %s5370_s21  ;;  %744 = vrot.lane.b32.xlu1 %v5661_v61, %s5371_s22  ;;  %8327 = vst [vmem:[#allocation28_spill] sm:$0xff] %v5789_v53 }
  0xdd   : > { %660 = vrot.lane.b32.xlu2 %v5652_v59, %s5370_s21 }
  0xe4   : > { %728 = vrot.lane.b32.xlu0 %v5682_v3, %s5371_s22  ;;  %662 = vrot.lane.b32.xlu1 %v5679_v2, %s5370_s21 }
  0xe5   : > { %850 = vrot.lane.b32.xlu2 %v5661_v61, %s5369_s16 }
  0xec   : > { %716 = vrot.lane.b32.xlu0 %v5670_v0, %s5368_s20  ;;  %758 = vrot.lane.b32.xlu1 %v5679_v2, %s5369_s16 }
  0xed   : > { %680 = vrot.lane.b32.xlu2 %v5661_v61, %s5370_s21 }
  0xef   : > { %v5696_v5 = vpop.permute.xlu2 %654 }
  0xf4   : > { %666 = vrot.lane.b32.xlu0 %v5699_v6, %s5370_s21  ;;  %852 = vrot.lane.b32.xlu1 %v5702_v7, %s5369_s16 }
  0xf5   : > { %724 = vrot.lane.b32.xlu2 %v5652_v59, %s5371_s22 }
  0xf7   : > { %v5710_v10 = vpop.permute.xlu2 %844 }
  0xfc   : > { %762 = vrot.lane.b32.xlu0 %v5699_v6, %s5369_s16  ;;  %682 = vrot.lane.b32.xlu1 %v5702_v7, %s5370_s21 }
  0xfd   : > { %694 = vrot.lane.b32.xlu2 %v5679_v2, %s5368_s20 }
  0xff   : > { %v5718_v12 = vpop.permute.xlu2 %718 }
 0x104   : > { %668 = vrot.lane.b32.xlu0 %v5721_v13, %s5370_s21  ;;  %726 = vrot.lane.b32.xlu1 %v5679_v2, %s5371_s22 }
 0x105   : > { %746 = vrot.lane.b32.xlu2 %v5702_v7, %s5371_s22 }
 0x106   : > { %v5729_v16 = vpop.permute.xlu0 %686  ;;  %v5731_v17 = vpop.permute.xlu1 %750 }
 0x107   : > { %v5733_v18 = vpop.permute.xlu2 %752 }
 0x10c   : > { %700 = vrot.lane.b32.xlu0 %v5721_v13, %s5368_s20  ;;  %714 = vrot.lane.b32.xlu1 %v5702_v7, %s5368_s20 }
 0x10d   : > { %760 = vrot.lane.b32.xlu2 %v5682_v3, %s5369_s16 }
 0x10e   : > { %v5741_v21 = vpop.permute.xlu0 %706  ;;  %v5743_v22 = vpop.permute.xlu1 %674 }
 0x10f   : > { %8322 = vst [vmem:[#allocation23_spill] sm:$0xff] %v5741_v21  ;;  %v5745_v23 = vpop.permute.xlu2 %688 }
 0x114   : > { %4844 = vrot.lane.b32.xlu0 %v4843_v26, %s5372_s23  ;;  %664 = vrot.lane.b32.xlu1 %v5682_v3, %s5370_s21 }
 0x115   : > { %696 = vrot.lane.b32.xlu2 %v5682_v3, %s5368_s20 }
 0x116   : > { %v5754_v27 = vpop.permute.xlu0 %738  ;;  %v5756_v28 = vpop.permute.xlu1 %846 }
 0x117   : > { %8323 = vst [vmem:[#allocation24_spill] sm:$0xff] %v5754_v27  ;;  %v5758_v32 = vpop.permute.xlu2 %720 }
 0x11c   : > { %840 = vrot.lane.b32.xlu0 %v5761_v33, %s5369_s16  ;;  %854 = vrot.lane.b32.xlu1 %v5670_v0, %s5369_s16 }
 0x11d   : > { %4839 = vrot.lane.b32.xlu2 %v4838_v36, %s5372_s23 }
 0x11e   : > { %v5770_v38 = vpop.permute.xlu0 %656  ;;  %v5772_v40 = vpop.permute.xlu1 %676 }
 0x11f   : > { %v5774_v42 = vpop.permute.xlu2 %708 }
 0x120   : > { %8325 = vst [vmem:[#allocation26_spill] sm:$0xff] %v5774_v42 }
 0x124   : > { %734 = vrot.lane.b32.xlu0 %v5761_v33, %s5371_s22  ;;  %748 = vrot.lane.b32.xlu1 %v5670_v0, %s5371_s22 }
 0x125   : > { %698 = vrot.lane.b32.xlu2 %v5699_v6, %s5368_s20 }
 0x126   : > { %v5782_v47 = vpop.permute.xlu0 %848  ;;  %v5784_v49 = vpop.permute.xlu1 %658 }
 0x127   : > { %v5786_v51 = vpop.permute.xlu2 %740 }
 0x128   : > { %8326 = vst [vmem:[#allocation27_spill] sm:$0xff] %v5786_v51 }
 0x12c   : > { %842 = vrot.lane.b32.xlu0 %v5789_v53, %s5369_s16  ;;  %732 = vrot.lane.b32.xlu1 %v5721_v13, %s5371_s22 }
 0x12d   : > { %730 = vrot.lane.b32.xlu2 %v5699_v6, %s5371_s22 }
 0x12e   : > { %v5797_v54 = vpop.permute.xlu0 %678  ;;  %v5799_v57 = vpop.permute.xlu1 %754 }
 0x12f   : > { %v5801_v58 = vpop.permute.xlu2 %722 }
 0x130   : > { %8328 = vst [vmem:[#allocation29_spill] sm:$0xff] %v5801_v58 }
 0x134   : > { %670 = vrot.lane.b32.xlu1 %v5761_v33, %s5370_s21  ;;  %929 = vrot.lane.b32.xlu0 %v5696_v5, %s5369_s16 }
 0x135   : > { %764 = vrot.lane.b32.xlu2 %v5721_v13, %s5369_s16 }
 0x136   : > { %v5809_v44 = vpop.permute.xlu0 %742  ;;  %v5811_v60 = vpop.permute.xlu1 %690 }
 0x137   : > { %8329 = vst [vmem:[#allocation30_spill] sm:$0xff] %v5809_v44  ;;  %v5813_v62 = vpop.permute.xlu2 %660 }
 0x13c   : > { %702 = vrot.lane.b32.xlu1 %v5761_v33, %s5368_s20  ;;  %1107 = vrot.lane.b32.xlu0 %v5729_v16, %s5369_s16 }
 0x13d   : > { %704 = vrot.lane.b32.xlu2 %v5789_v53, %s5368_s20 }
 0x13e   : > { %v5821_v63 = vpop.permute.xlu0 %756  ;;  %v5823_v1 = vpop.permute.xlu1 %710 }
 0x13f   : > { %8330 = vst [vmem:[#allocation31_spill] sm:$0xff] %v5823_v1  ;;  %v5825_v4 = vpop.permute.xlu2 %850 }
 0x144   : > { %672 = vrot.lane.b32.xlu1 %v5789_v53, %s5370_s21  ;;  %931 = vrot.lane.b32.xlu0 %v5770_v38, %s5369_s16 }
 0x145   : > { %1022 = vrot.lane.b32.xlu2 %v5743_v22, %s5369_s16 }
 0x146   : > { %v5833_v11 = vpop.permute.xlu0 %692  ;;  %v5835_v26 = vpop.permute.xlu1 %712 }
 0x147   : > { %8331 = vst [vmem:[#allocation32_spill] sm:$0xff] %v5835_v26  ;;  %v5837_v31 = vpop.permute.xlu2 %680 }
 0x14c   : > { %736 = vrot.lane.b32.xlu1 %v5789_v53, %s5371_s22  ;;  %1287 = vrot.lane.b32.xlu0 %v5758_v32, %s5369_s16 }
 0x14d   : > { %1109 = vrot.lane.b32.xlu2 %v5745_v23, %s5369_s16 }
 0x14e   : > { %v5845_v36 = vpop.permute.xlu0 %684  ;;  %v5847_v45 = vpop.permute.xlu1 %744 }
 0x14f   : > { %8332 = vst [vmem:[#allocation33_spill] sm:$0xff] %v5847_v45  ;;  %v5849_v34 = vpop.permute.xlu2 %724 }
 0x150   : > { %8333 = vst [vmem:[#allocation34_spill] sm:$0xff] %v5849_v34 }
 0x154   : > { %1285 = vrot.lane.b32.xlu1 %v5718_v12, %s5369_s16  ;;  %1380 = vrot.lane.b32.xlu0 %v5786_v51, %s5369_s16 }
 0x155   : > { %1024 = vrot.lane.b32.xlu2 %v5772_v40, %s5369_s16 }
 0x156   : > { %v5857_v29 = vpop.permute.xlu0 %728  ;;  %v5859_v25 = vpop.permute.xlu1 %662 }
 0x157   : > { %8334 = vst [vmem:[#allocation35_spill] sm:$0xff] %v5857_v29  ;;  %v5861_v20 = vpop.permute.xlu2 %694 }
 0x15c   : > { %1200 = vrot.lane.b32.xlu1 %v5741_v21, %s5369_s16  ;;  %1289 = vrot.lane.b32.xlu0 %v5801_v58, %s5369_s16 }
 0x15d   : > { %1202 = vrot.lane.b32.xlu2 %v5774_v42, %s5369_s16 }
 0x15e   : > { %v5869_v14 = vpop.permute.xlu0 %716  ;;  %v759_v9 = vpop.permute.xlu1 %758 }
 0x15f   : > { %8335 = vst [vmem:[#allocation36_spill] sm:$0xff] %v5869_v14  ;;  %v5871_v43 = vpop.permute.xlu2 %746 }
 0x160   : > { %8336 = vst [vmem:[#allocation37_spill] sm:$0xff] %v5871_v43 }
 0x164   : > { %1378 = vrot.lane.b32.xlu1 %v5754_v27, %s5369_s16  ;;  %1204 = vrot.lane.b32.xlu0 %v5823_v1, %s5369_s16 }
 0x165   : > { %1111 = vrot.lane.b32.xlu2 %v5811_v60, %s5369_s16 }
 0x166   : > { %v5879_v41 = vpop.permute.xlu0 %666  ;;  %v5881_v39 = vpop.permute.xlu1 %852 }
 0x167   : > { %8337 = vst [vmem:[#allocation38_spill] sm:$0xff] %v5879_v41  ;;  %v761_v37 = vpop.permute.xlu2 %760 }
 0x16c   : > { %933 = vrot.lane.b32.xlu1 %v5784_v49, %s5369_s16  ;;  %1028 = vrot.lane.b32.xlu0 %v5837_v31, %s5369_s16 }
 0x16d   : > { %935 = vrot.lane.b32.xlu2 %v5813_v62, %s5369_s16 }
 0x16e   : > { %v763_v35 = vpop.permute.xlu0 %762  ;;  %v5889_v30 = vpop.permute.xlu1 %682 }
 0x16f   : > { %v5891_v24 = vpop.permute.xlu2 %696 }
 0x170   : > { %8338 = vst [vmem:[#allocation39_spill] sm:$0xff] %v5891_v24 }
 0x174   : > { %1026 = vrot.lane.b32.xlu1 %v5797_v54, %s5369_s16  ;;  %1291 = vrot.lane.b32.xlu0 %v5849_v34, %s5369_s16 }
 0x175   : > { %1113 = vrot.lane.b32.xlu2 %v5833_v11, %s5369_s16 }
 0x176   : > { %v5899_v19 = vpop.permute.xlu0 %668  ;;  %v5901_v15 = vpop.permute.xlu1 %726 }
 0x177   : > { %8339 = vst [vmem:[#allocation40_spill] sm:$0xff] %v5899_v19  ;;  %v5903_v8 = vpop.permute.xlu2 %4839 }
 0x178   : > { %8340 = vst [vmem:[#allocation41_spill] sm:$0xff] %v5901_v15 }
 0x17c   : > { %1382 = vrot.lane.b32.xlu1 %v5809_v44, %s5369_s16  ;;  %1030 = vrot.lane.b32.xlu0 %v5889_v30, %s5369_s16 }
 0x17d   : > { %1206 = vrot.lane.b32.xlu2 %v5835_v26, %s5369_s16 }
 0x17e   : > { %v5911_v1 = vpop.permute.xlu0 %700  ;;  %v5913_v42 = vpop.permute.xlu1 %714 }
 0x17f   : > { %8341 = vst [vmem:[#allocation42_spill] sm:$0xff] %v5911_v1  ;;  %v5915_v21 = vpop.permute.xlu2 %698 }
 0x180   : > { %8342 = vst [vmem:[#allocation43_spill] sm:$0xff] %v5913_v42 }
 0x181   : > { %8343 = vst [vmem:[#allocation44_spill] sm:$0xff] %v5915_v21 }
 0x184   : > { %937 = vrot.lane.b32.xlu1 %v5859_v25, %s5369_s16  ;;  %1386 = vrot.lane.b32.xlu0 %v5871_v43, %s5369_s16 }
 0x185   : > { %1384 = vrot.lane.b32.xlu2 %v5847_v45, %s5369_s16 }
 0x186   : > { %v5923_v44 = vpop.permute.xlu0 %4844  ;;  %v5925_v51 = vpop.permute.xlu1 %664 }
 0x187   : > { %v5927_v26 = vpop.permute.xlu2 %730 }
 0x188   : > { %8344 = vst [vmem:[#allocation45_spill] sm:$0xff] %v5927_v26 }
 0x18c   : > { %1208 = vrot.lane.b32.xlu1 %v5913_v42, %s5369_s16  ;;  %939 = vrot.lane.b32.xlu0 %v5925_v51, %s5369_s16 }
 0x18d   : > { %1115 = vrot.lane.b32.xlu2 %v5861_v20, %s5369_s16 }
 0x18e   : > { %v5935_v43 = vpop.permute.xlu0 %840  ;;  %v855_v27 = vpop.permute.xlu1 %854 }
 0x18f   : > { %v765_v45 = vpop.permute.xlu2 %764  ;;  %4805 = vmatpush.xpose.msk.msra.mxu2 %vm766_vm1, %v855_v27 }
 0x190   : > { %4557 = vmatpush.xpose.msk.msrb.mxu1 %vm766_vm1, %v765_v45 }
 0x193   : > { %4806 = vmatpush.xpose.msk.msra.mxu2 %vm766_vm1, %v5881_v39 }
 0x194   : > { %4558 = vmatpush.xpose.msk.msrb.mxu1 %vm766_vm1, %v763_v35  ;;  %1032 = vrot.lane.b32.xlu0 %v5845_v36, %s5369_s16 }
 0x195   : > { %1293 = vrot.lane.b32.xlu2 %v5901_v15, %s5369_s16  ;;  %1117 = vrot.lane.b32.xlu1 %v5891_v24, %s5369_s16 }
 0x196   : > { %v5948_v42 = vpop.permute.xlu0 %734  ;;  %v5950_v34 = vpop.permute.xlu1 %748 }
 0x197   : > { %8345 = vst [vmem:[#allocation46_spill] sm:$0xff] %v5948_v42  ;;  %v5952_v58 = vpop.permute.xlu2 %704  ;;  %4807 = vmatpush.xpose.msk.msra.mxu2 %vm766_vm1, %v5825_v4 }
 0x198   : > { %8346 = vst [vmem:[#allocation47_spill] sm:$0xff] %v5950_v34  ;;  %4559 = vmatpush.xpose.msk.msrb.mxu1 %vm766_vm1, %v761_v37 }
 0x199   : > { %8347 = vst [vmem:[#allocation48_spill] sm:$0xff] %v5952_v58 }
 0x19b   : > { %4808 = vmatpush.xpose.msk.msra.mxu2 %vm766_vm1, %v5782_v47 }
 0x19c   : > { %4560 = vmatpush.xpose.msk.msrb.mxu1 %vm766_vm1, %v759_v9  ;;  %1119 = vrot.lane.b32.xlu0 %v5915_v21, %s5369_s16 }
 0x19d   : > { %1210 = vrot.lane.b32.xlu2 %v5869_v14, %s5369_s16  ;;  %1295 = vrot.lane.b32.xlu1 %v5857_v29, %s5369_s16 }
 0x19e   : > { %v843_v35 = vpop.permute.xlu0 %842  ;;  %v5966_v45 = vpop.permute.xlu1 %732 }
 0x19f   : > { %8348 = vst [vmem:[#allocation49_spill] sm:$0xff] %v5966_v45  ;;  %v5968_v15 = vpop.permute.xlu2 %1022  ;;  %4809 = vmatpush.xpose.msk.msra.mxu2 %vm766_vm1, %v5756_v28 }
 0x1a0   : > { %4561 = vmatpush.xpose.msk.msrb.mxu1 %vm766_vm1, %v5821_v63 }
 0x1a3   : > { %4810 = vmatpush.xpose.msk.msra.mxu2 %vm766_vm1, %v5710_v10 }
 0x1a4   : > { %4562 = vmatpush.xpose.msk.msrb.mxu1 %vm766_vm1, %v5799_v57  ;;  %943 = vrot.lane.b32.xlu0 %v5899_v19, %s5369_s16 }
 0x1a5   : > { %941 = vrot.lane.b32.xlu2 %v5879_v41, %s5369_s16  ;;  %1388 = vrot.lane.b32.xlu1 %v5950_v34, %s5369_s16 }
 0x1a6   : > { %v5984_v9 = vpop.permute.xlu1 %670  ;;  %v5986_v37 = vpop.permute.xlu0 %929 }
 0x1a7   : > { %v5988_v63 = vpop.permute.xlu2 %1109  ;;  %4811 = vmatpush.xpose.msk.msra.mxu2 %vm766_vm1, %v843_v35 }
 0x1a8   : > { %4563 = vmatpush.xpose.msk.msrb.mxu1 %vm766_vm1, %v5733_v18 }
 0x1ab   : > { %4812 = vmatpush.xpose.msk.msra.mxu2 %vm766_vm1, %v5935_v43 }
 0x1ac   : > { %4564 = vmatpush.xpose.msk.msrb.mxu1 %vm766_vm1, %v5731_v17  ;;  %1121 = vrot.lane.b32.xlu0 %v5911_v1, %s5369_s16 }
 0x1ad   : > { %1297 = vrot.lane.b32.xlu1 %v5927_v26, %s5369_s16 }
 0x1ae   : > { %v6002_v57 = vpop.permute.xlu1 %702  ;;  %v6004_v14 = vpop.permute.xlu0 %1107  ;;  %4585 = vmatmul.msk.f32.vlgmr.msra.gmra.mxu2 %vm766_vm1, %v5631_v56 }
 0x1af   : > { %8349 = vst [vmem:[#allocation50_spill] sm:$0xff] %v6002_v57  ;;  %4565 = vmatmul.msk.f32.vlgmr.msrb.gmra.mxu1 %vm766_vm1, %v5592_v46  ;;  %v6010_v18 = vpop.permute.xlu2 %1024  ;;  %1196 = vrot.lane.b32.xlu2 %v6002_v57, %s5369_s16 }
 0x1b0   : > { %4573 = vmatpush.xpose.msk.msra.mxu1 %vm766_vm1, %v855_v27 }
 0x1b4   : > { %4574 = vmatpush.xpose.msk.msra.mxu1 %vm766_vm1, %v5881_v39  ;;  %1018 = vrot.lane.b32.xlu0 %v5984_v9, %s5369_s16 }
 0x1b5   : > { %1299 = vrot.lane.b32.xlu1 %v5966_v45, %s5369_s16 }
 0x1b6   : > { %v6022_v17 = vpop.permute.xlu1 %672  ;;  %v6024_v27 = vpop.permute.xlu0 %931  ;;  %4586 = vmatmul.msk.f32.gmra.mxu2 %vm766_vm1, %v5661_v61 }
 0x1b7   : > { %4566 = vmatmul.msk.f32.gmra.mxu1 %vm766_vm1, %v5619_v52  ;;  %v6030_v39 = vpop.permute.xlu2 %1202  ;;  %1020 = vrot.lane.b32.xlu2 %v6022_v17, %s5369_s16 }
 0x1b8   : > { %4575 = vmatpush.xpose.msk.msra.mxu1 %vm766_vm1, %v5825_v4  ;;  %v4848_v4 = vpack.i.bf16 %v5652_v59, %v5899_v19 }
 0x1bc   : > { %4576 = vmatpush.xpose.msk.msra.mxu1 %vm766_vm1, %v5782_v47  ;;  %1374 = vrot.lane.b32.xlu0 %v5948_v42, %s5369_s16 }
 0x1bd   : > { %4849 = vrot.lane.b32.xlu1 %v4848_v4, %s5372_s23  ;;  %v4868_v4 = vpack.i.bf16 %v5784_v49, %v5813_v62 }
 0x1be   : > { %v6043_v56 = vpop.permute.xlu1 %736  ;;  %v6045_v61 = vpop.permute.xlu0 %1287  ;;  %4587 = vmatmul.msk.f32.gmra.mxu2 %vm766_vm1, %v5702_v7 }
 0x1bf   : > { %8350 = vst [vmem:[#allocation51_spill] sm:$0xff] %v6043_v56  ;;  %4567 = vmatmul.msk.f32.gmra.mxu1 %vm766_vm1, %v5628_v55  ;;  %v6051_v47 = vpop.permute.xlu2 %1111  ;;  %1376 = vrot.lane.b32.xlu2 %v6043_v56, %s5369_s16 }
 0x1c0   : > { %4577 = vmatpush.xpose.msk.msra.mxu1 %vm766_vm1, %v5756_v28  ;;  %v4853_v28 = vpack.i.bf16 %v5628_v55, %v5879_v41 }
 0x1c4   : > { %4578 = vmatpush.xpose.msk.msra.mxu1 %vm766_vm1, %v5710_v10  ;;  %1198 = vrot.lane.b32.xlu0 %v5952_v58, %s5369_s16  ;;  %v4863_v10 = vpack.i.bf16 %v5592_v46, %v5859_v25  ;;  %v4883_v46 = vpack.i.bf16 %v5861_v20, %v5891_v24 }
 0x1c5   : > { %4854 = vrot.lane.b32.xlu1 %v4853_v28, %s5372_s23 }
 0x1c6   : > { %v6065_v7 = vpop.permute.xlu1 %1285  ;;  %v6067_v34 = vpop.permute.xlu0 %1380  ;;  %4588 = vmatmul.msk.f32.gmra.mxu2 %vm766_vm1, %v5670_v0 }
 0x1c7   : > { %4568 = vmatmul.msk.f32.gmra.mxu1 %vm766_vm1, %v5652_v59  ;;  %v6073_v55 = vpop.permute.xlu2 %935  ;;  %4869 = vrot.lane.b32.xlu2 %v4868_v4, %s5372_s23  ;;  %v4898_v59 = vpack.i.bf16 %v5927_v26, %v5889_v30 }
 0x1c8   : > { %4579 = vmatpush.xpose.msk.msra.mxu1 %vm766_vm1, %v843_v35  ;;  %v4858_v35 = vpack.i.bf16 %v5619_v52, %v5925_v51  ;;  %v4873_v52 = vpack.i.bf16 %v5696_v5, %v5770_v38 }
 0x1cc   : > { %4580 = vmatpush.xpose.msk.msra.mxu1 %vm766_vm1, %v5935_v43  ;;  %4864 = vrot.lane.b32.xlu0 %v4863_v10, %s5372_s23 }
 0x1cd   : > { %4859 = vrot.lane.b32.xlu1 %v4858_v35, %s5372_s23 }
 0x1ce   : > { %v6086_v28 = vpop.permute.xlu1 %1200  ;;  %v6088_v58 = vpop.permute.xlu0 %1289 }
 0x1cf   : > { %4569 = vmatmul.msk.f32.gmra.mxu1 %vm766_vm1, %v5679_v2  ;;  %4899 = vrot.lane.b32.xlu2 %v4898_v59, %s5372_s23  ;;  %v6093_v43 = vpop.permute.xlu2 %1113  ;;  %v4893_v2 = vpack.i.bf16 %v5833_v11, %v5670_v0  ;;  %v4878_v59 = vpack.i.bf16 %v5915_v21, %v5911_v1 }
 0x1d4   : > { %4884 = vrot.lane.b32.xlu0 %v4883_v46, %s5372_s23 }
 0x1d5   : > { %4874 = vrot.lane.b32.xlu1 %v4873_v52, %s5372_s23 }
 0x1d6   : > { %v6101_v4 = vpop.permute.xlu1 %1378  ;;  %v6103_v10 = vpop.permute.xlu0 %1204 }
 0x1d7   : > { %4570 = vmatmul.msk.f32.gmra.mxu1 %vm766_vm1, %v5682_v3  ;;  %v6109_v35 = vpop.permute.xlu2 %1206  ;;  %v4888_v3 = vpack.i.bf16 %v5966_v45, %v5845_v36 }
 0x1dc   : > { %4894 = vrot.lane.b32.xlu0 %v4893_v2, %s5372_s23 }
 0x1dd   : > { %4879 = vrot.lane.b32.xlu1 %v4878_v59, %s5372_s23 }
 0x1de   : > { %v934_v46 = vpop.permute.xlu1 %933  ;;  %v1029_v52 = vpop.permute.xlu0 %1028 }
 0x1df   : > { %4571 = vmatmul.msk.f32.gmra.mxu1 %vm766_vm1, %v5699_v6  ;;  %v1385_v26 = vpop.permute.xlu2 %1384 }
 0x1e5   : > { %4889 = vrot.lane.b32.xlu1 %v4888_v3, %s5372_s23 }
 0x1e6   : > { %v1027_v0 = vpop.permute.xlu1 %1026  ;;  %v6120_v57 = vpop.permute.xlu0 %1291 }
 0x1e7   : > { %4572 = vmatmul.msk.f32.gmra.mxu1 %vm766_vm1, %v5721_v13  ;;  %v1116_v1 = vpop.permute.xlu2 %1115 }
 0x1ee   : > { %v6124_v2 = vpop.permute.xlu1 %1382  ;;  %v1031_v59 = vpop.permute.xlu0 %1030 }
 0x1ef   : > { %4581 = vmatmul.msk.f32.vlgmr.msra.gmra.mxu1 %vm766_vm1, %v5761_v33  ;;  %v1294_v45 = vpop.permute.xlu2 %1293 }
 0x1f6   : > { %v938_v6 = vpop.permute.xlu1 %937  ;;  %v1387_v56 = vpop.permute.xlu0 %1386 }
 0x1f7   : > { %4582 = vmatmul.msk.f32.gmra.mxu1 %vm766_vm1, %v5789_v53  ;;  %v1211_v13 = vpop.permute.xlu2 %1210 }
 0x1fe   : > { %v6130_v3 = vpop.permute.xlu1 %1208  ;;  %v940_v29 = vpop.permute.xlu0 %939 }
 0x1ff   : > { %4583 = vmatmul.msk.f32.gmra.mxu1 %vm766_vm1, %v5601_v48  ;;  %v942_v33 = vpop.permute.xlu2 %941 }
 0x206   : > { %v1033_v21 = vpop.permute.xlu0 %1032 }
 0x207   : > { %v1118_v19 = vpop.permute.xlu1 %1117  ;;  %4584 = vmatmul.msk.f32.gmra.mxu1 %vm766_vm1, %v5610_v50 }
 0x208   : > { %4605 = vmatpush.xpose.msk.msrb.mxu1 %vm766_vm1, %v1033_v21 }
 0x209   : > { %v6140_v24 = vpop.permute.xlu2 %1196 }
 0x20c   : > { %4606 = vmatpush.xpose.msk.msrb.mxu1 %vm766_vm1, %v1031_v59 }
 0x20e   : > { %v1120_v42 = vpop.permute.xlu0 %1119 }
 0x20f   : > { %v1296_v53 = vpop.permute.xlu1 %1295 }
 0x210   : > { %4607 = vmatpush.xpose.msk.msrb.mxu1 %vm766_vm1, %v1029_v52 }
 0x211   : > { %v1021_v59 = vpop.permute.xlu2 %1020 }
 0x214   : > { %4608 = vmatpush.xpose.msk.msrb.mxu1 %vm766_vm1, %v1027_v0 }
 0x216   : > { %v944_v48 = vpop.permute.xlu0 %943 }
 0x217   : > { %v1389_v41 = vpop.permute.xlu1 %1388  ;;  %4589 = vmatpush.xpose.msk.msra.mxu3 %vm766_vm1, %v944_v48 }
 0x218   : > { %4609 = vmatpush.xpose.msk.msrb.mxu1 %vm766_vm1, %v6010_v18 }
 0x21b   : > { %4590 = vmatpush.xpose.msk.msra.mxu3 %vm766_vm1, %v942_v33 }
 0x21c   : > { %4610 = vmatpush.xpose.msk.msrb.mxu1 %vm766_vm1, %v5968_v15 }
 0x21e   : > { %v1122_v21 = vpop.permute.xlu0 %1121 }
 0x21f   : > { %v1298_v50 = vpop.permute.xlu1 %1297  ;;  %4591 = vmatpush.xpose.msk.msra.mxu3 %vm766_vm1, %v940_v29  ;;  %4621 = vmatpush.xpose.msk.msrb.mxu2 %vm766_vm1, %v1122_v21 }
 0x220   : > { %4611 = vmatpush.xpose.msk.msrb.mxu1 %vm766_vm1, %v1021_v59 }
 0x223   : > { %4592 = vmatpush.xpose.msk.msra.mxu3 %vm766_vm1, %v938_v6  ;;  %4622 = vmatpush.xpose.msk.msrb.mxu2 %vm766_vm1, %v1120_v42 }
 0x226   : > { %v1019_v48 = vpop.permute.xlu0 %1018 }
 0x227   : > { %v1300_v18 = vpop.permute.xlu1 %1299  ;;  %4593 = vmatpush.xpose.msk.msra.mxu3 %vm766_vm1, %v6073_v55  ;;  %4612 = vmatpush.xpose.msk.msrb.mxu1 %vm766_vm1, %v1019_v48 }
 0x228   : > { %4623 = vmatpush.xpose.msk.msrb.mxu2 %vm766_vm1, %v1118_v19  ;;  %4653 = vmatpush.xpose.msk.msrb.mxu0 %vm766_vm1, %v1300_v18 }
 0x22a   : > { %4613 = vmatmul.msk.f32.vlgmr.msrb.gmra.mxu1 %vm766_vm1, %v5984_v9 }
 0x22b   : > { %4669 = vmatpush.xpose.msk.msra.mxu1 %vm766_vm1, %v1389_v41  ;;  %4594 = vmatpush.xpose.msk.msra.mxu3 %vm766_vm1, %v934_v46 }
 0x22c   : > { %v6162_v15 = vpop.f32.mrf.mxu1  ;;  %4624 = vmatpush.xpose.msk.msrb.mxu2 %vm766_vm1, %v1116_v1  ;;  %4654 = vmatpush.xpose.msk.msrb.mxu0 %vm766_vm1, %v1298_v50 }
 0x22e   : > { %v6167_v29 = vpop.permute.xlu0 %1374 }
 0x22f   : > { %4670 = vmatpush.xpose.msk.msra.mxu1 %vm766_vm1, %v1387_v56  ;;  %v6169_v19 = vpop.permute.xlu1 %4849  ;;  %4595 = vmatpush.xpose.msk.msra.mxu3 %vm766_vm1, %v6024_v27 }
 0x230   : > { %4625 = vmatpush.xpose.msk.msrb.mxu2 %vm766_vm1, %v6093_v43  ;;  %4655 = vmatpush.xpose.msk.msrb.mxu0 %vm766_vm1, %v1296_v53  ;;  %v4851_v55 = vunpack.i.l.bf16 %v6169_v19 }
 0x231   : > { %v6177_v41 = vpop.f32.mrf.mxu2 }
 0x232   : > { %8351 = vst [vmem:[#allocation52_spill] sm:$0xff] %v6177_v41  ;;  %4614 = vmatmul.msk.f32.gmra.mxu1 %vm766_vm1, %v6022_v17  ;;  %v1500_v50 = vsel %vm1463_vm2, %v6177_v41, -inf }
 0x233   : > { %4671 = vmatpush.xpose.msk.msra.mxu1 %vm766_vm1, %v1385_v26  ;;  %1501 = vmax.xlane.f32.xlu1 %v1500_v50  ;;  %v1464_v26 = vsel %vm1463_vm2, %v6162_v15, -inf }
 0x234   : > { %4596 = vmatpush.xpose.msk.msra.mxu3 %vm766_vm1, %v5986_v37  ;;  %v6185_v56 = vpop.f32.mrf.mxu1  ;;  %4626 = vmatpush.xpose.msk.msrb.mxu2 %vm766_vm1, %v6051_v47 }
 0x235   : > { %4656 = vmatpush.xpose.msk.msrb.mxu0 %vm766_vm1, %v1294_v45  ;;  %v1467_v33 = vsel %vm1463_vm2, %v6185_v56, -inf  ;;  %v4846_v45 = vunpack.i.l.bf16 %v5923_v44 }
 0x236   : > { %1468 = vmax.xlane.f32.xlu0 %v1467_v33  ;;  %v6195_v42 = vpop.permute.xlu0 %1198 }
 0x237   : > { %4672 = vmatpush.xpose.msk.msra.mxu1 %vm766_vm1, %v6124_v2  ;;  %4597 = vmatmul.msk.f32.vlgmr.msra.gmra.mxu3 %vm766_vm1, %v5696_v5  ;;  %v4855_v53 = vpop.permute.xlu1 %4854 }
 0x238   : > { %4637 = vmatpush.xpose.msk.msrb.mxu3 %vm766_vm1, %v1211_v13  ;;  %4627 = vmatpush.xpose.msk.msrb.mxu2 %vm766_vm1, %v5988_v63 }
 0x239   : > { %4657 = vmatpush.xpose.msk.msrb.mxu0 %vm766_vm1, %v6120_v57  ;;  %v6207_v1 = vpop.f32.mrf.mxu2 }
 0x23a   : > { %8352 = vst [vmem:[#allocation53_spill] sm:$0xff] %v6207_v1  ;;  %4615 = vmatmul.msk.f32.gmra.mxu1 %vm766_vm1, %v5743_v22  ;;  %v1503_v5 = vsel %vm1463_vm2, %v6207_v1, -inf }
 0x23b   : > { %4673 = vmatpush.xpose.msk.msra.mxu1 %vm766_vm1, %v6067_v34  ;;  %1504 = vmax.xlane.f32.xlu2 %v1503_v5  ;;  %v4847_v34 = vunpack.i.h.bf16 %v5923_v44 }
 0x23c   : > { %4638 = vmatpush.xpose.msk.msrb.mxu3 %vm766_vm1, %v6130_v3  ;;  %1465 = vmax.xlane.f32.xlu1 %v1464_v26  ;;  %v6216_v37 = vpop.f32.mrf.mxu1 }
 0x23d   : > { %4628 = vmatpush.xpose.msk.msrb.mxu2 %vm766_vm1, %v6004_v14  ;;  %4658 = vmatpush.xpose.msk.msrb.mxu0 %vm766_vm1, %v6088_v58  ;;  %v4841_v14 = vunpack.i.l.bf16 %v5903_v8  ;;  %v1377_v58 = vpop.permute.xlu2 %1376  ;;  %v1470_v47 = vsel %vm1463_vm2, %v6216_v37, -inf }
 0x23e   : > { %v4865_v63 = vpop.permute.xlu0 %4864 }
 0x23f   : > { %4674 = vmatpush.xpose.msk.msra.mxu1 %vm766_vm1, %v6101_v4  ;;  %4598 = vmatmul.msk.f32.gmra.mxu3 %vm766_vm1, %v5770_v38  ;;  %v4860_v57 = vpop.permute.xlu1 %4859  ;;  %v4842_v38 = vunpack.i.h.bf16 %v5903_v8  ;;  %v4867_v0 = vunpack.i.h.bf16 %v4865_v63  ;;  %v4866_v2 = vunpack.i.l.bf16 %v4865_v63 }
 0x240   : > { %4639 = vmatpush.xpose.msk.msrb.mxu3 %vm766_vm1, %v6109_v35  ;;  %4629 = vmatmul.msk.f32.vlgmr.msrb.gmra.mxu2 %vm766_vm1, %v5729_v16  ;;  %v4856_v35 = vunpack.i.l.bf16 %v4855_v53 }
 0x241   : > { %2224 = vmatpush.msra.mxu2 %v4846_v45  ;;  %4659 = vmatpush.xpose.msk.msrb.mxu0 %vm766_vm1, %v6045_v61  ;;  %v6237_v44 = vpop.f32.mrf.mxu2  ;;  %v4852_v61 = vunpack.i.h.bf16 %v6169_v19  ;;  %v8354_v45 = vld [vmem:[#allocation29_spill] sm:$0xff] }
 0x242   : > { %8353 = vst [vmem:[#allocation54_spill] sm:$0xff] %v6237_v44  ;;  %4616 = vmatmul.msk.f32.gmra.mxu1 %vm766_vm1, %v5772_v40  ;;  %v1506_v27 = vsel %vm1463_vm2, %v6237_v44, -inf }
 0x243   : > { %2225 = vmatpush.msra.mxu2 %v4847_v34  ;;  %4675 = vmatpush.xpose.msk.msra.mxu1 %vm766_vm1, %v1377_v58 }
 0x244   : > { %4640 = vmatpush.xpose.msk.msrb.mxu3 %vm766_vm1, %v6103_v10  ;;  %1507 = vmax.xlane.f32.xlu2 %v1506_v27  ;;  %v6248_v43 = vpop.f32.mrf.mxu1  ;;  %v4857_v10 = vunpack.i.h.bf16 %v4855_v53  ;;  %v8357_v27 = vld [vmem:[#allocation39_spill] sm:$0xff] }
 0x245   : > { %2226 = vmatpush.msra.mxu2 %v4841_v14  ;;  %1471 = vmax.xlane.f32.xlu1 %v1470_v47  ;;  %v1473_v8 = vsel %vm1463_vm2, %v6248_v43, -inf  ;;  %v4870_v52 = vpop.permute.xlu2 %4869 }
 0x246   : > { %4660 = vmatpush.xpose.msk.msrb.mxu0 %vm766_vm1, %v6065_v7  ;;  %v4885_v4 = vpop.permute.xlu0 %4884  ;;  %1474 = vmax.xlane.f32.xlu0 %v1473_v8  ;;  %v4862_v7 = vunpack.i.h.bf16 %v4860_v57  ;;  %v4871_v6 = vunpack.i.l.bf16 %v4870_v52  ;;  %v4872_v13 = vunpack.i.h.bf16 %v4870_v52  ;;  %v8362_v8 = vld [vmem:[#allocation35_spill] sm:$0xff]  ;;  %v8367_v52 = vld [vmem:[#allocation24_spill] sm:$0xff] }
 0x247   : > { %2227 = vmatpush.msra.mxu2 %v4842_v38  ;;  %4676 = vmatpush.xpose.msk.msra.mxu1 %vm766_vm1, %v6167_v29  ;;  %v4875_v46 = vpop.permute.xlu1 %4874  ;;  %v4886_v50 = vunpack.i.l.bf16 %v4885_v4  ;;  %v4887_v53 = vunpack.i.h.bf16 %v4885_v4  ;;  %v8356_v38 = vld [vmem:[#allocation38_spill] sm:$0xff]  ;;  %v8363_v4 = vld [vmem:[#allocation51_spill] sm:$0xff] }
 0x248   : > { %4641 = vmatpush.xpose.msk.msrb.mxu3 %vm766_vm1, %v6030_v39  ;;  %4630 = vmatmul.msk.f32.gmra.mxu2 %vm766_vm1, %v5745_v23  ;;  %v4861_v39 = vunpack.i.l.bf16 %v4860_v57  ;;  %v4876_v18 = vunpack.i.l.bf16 %v4875_v46  ;;  %v4877_v19 = vunpack.i.h.bf16 %v4875_v46  ;;  %v8364_v46 = vld [vmem:[#allocation50_spill] sm:$0xff] }
 0x249   : > { %2228 = vmatpush.msra.mxu2 %v4852_v61  ;;  %4599 = vmatmul.msk.f32.gmra.mxu3 %vm766_vm1, %v5784_v49  ;;  %v8360_v61 = vld [vmem:[#allocation40_spill] sm:$0xff] }
 0x24a   : > { %2402 = vmatpush.msra.mxu0 %v4851_v55  ;;  %4617 = vmatmul.msk.f32.gmra.mxu1 %vm766_vm1, %v5797_v54  ;;  %v8361_v55 = vld [vmem:[#allocation44_spill] sm:$0xff] }
 0x24b   : > { %4661 = vmatmul.msk.f32.vlgmr.msrb.gmra.mxu0 %vm766_vm1, %v5718_v12  ;;  %2229 = vmatpush.msra.mxu2 %v4857_v10 }
 0x24c   : > { %2403 = vmatpush.msra.mxu0 %v4856_v35  ;;  %4642 = vmatpush.xpose.msk.msrb.mxu3 %vm766_vm1, %v6086_v28  ;;  %v6268_v49 = vpop.f32.mrf.mxu1 }
 0x24d   : > { %2230 = vmatpush.msra.mxu2 %v4862_v7  ;;  %v1476_v3 = vsel %vm1463_vm2, %v6268_v49, -inf  ;;  %v8365_v7 = vld [vmem:[#allocation42_spill] sm:$0xff] }
 0x24e   : > { %2404 = vmatpush.msra.mxu0 %v4861_v39  ;;  %1477 = vmax.xlane.f32.xlu2 %v1476_v3  ;;  %v4895_v28 = vpop.permute.xlu0 %4894  ;;  %v8366_v39 = vld [vmem:[#allocation45_spill] sm:$0xff] }
 0x24f   : > { %2231 = vmatpush.msra.mxu2 %v4867_v0  ;;  %v4880_v21 = vpop.permute.xlu1 %4879  ;;  %v4896_v59 = vunpack.i.l.bf16 %v4895_v28  ;;  %v4897_v34 = vunpack.i.h.bf16 %v4895_v28  ;;  %v8370_v3 = vld [vmem:[#allocation49_spill] sm:$0xff]  ;;  %v8371_v28 = vld [vmem:[#allocation27_spill] sm:$0xff] }
 0x250   : > { %2405 = vmatpush.msra.mxu0 %v4866_v2  ;;  %4643 = vmatpush.xpose.msk.msrb.mxu3 %vm766_vm1, %v6195_v42  ;;  %v4881_v48 = vunpack.i.l.bf16 %v4880_v21  ;;  %v4882_v29 = vunpack.i.h.bf16 %v4880_v21  ;;  %v4900_v42 = vpop.permute.xlu2 %4899 }
 0x251   : > { %4600 = vmatmul.msk.f32.gmra.mxu3 %vm766_vm1, %v5813_v62  ;;  %4631 = vmatmul.msk.f32.gmra.mxu2 %vm766_vm1, %v5811_v60  ;;  %v4902_v63 = vunpack.i.h.bf16 %v4900_v42  ;;  %v4901_v57 = vunpack.i.l.bf16 %v4900_v42  ;;  %v8380_v42 = vld [vmem:[#allocation47_spill] sm:$0xff] }
 0x252   : > { %2406 = vmatpush.msra.mxu0 %v4871_v6  ;;  %2580 = vmatpush.msrb.mxu2 %v4881_v48  ;;  %v8369_v6 = vld [vmem:[#allocation48_spill] sm:$0xff]  ;;  %v8374_v48 = vld [vmem:[#allocation30_spill] sm:$0xff] }
 0x253   : > { %4662 = vmatmul.msk.f32.gmra.mxu0 %vm766_vm1, %v5758_v32  ;;  %4618 = vmatmul.msk.f32.gmra.mxu1 %vm766_vm1, %v5837_v31 }
 0x254   : > { %2407 = vmatpush.msra.mxu0 %v4872_v13  ;;  %4644 = vmatpush.xpose.msk.msrb.mxu3 %vm766_vm1, %v6140_v24  ;;  %v6284_v62 = vpop.f32.mrf.mxu1 }
 0x255   : > { %2581 = vmatpush.msrb.mxu2 %v4882_v29  ;;  %v1479_v33 = vsel %vm1463_vm2, %v6284_v62, -inf  ;;  %v8376_v29 = vld [vmem:[#allocation33_spill] sm:$0xff] }
 0x256   : > { %2408 = vmatpush.msra.mxu0 %v4876_v18  ;;  %1480 = vmax.xlane.f32.xlu1 %v1479_v33  ;;  %v8375_v18 = vld [vmem:[#allocation26_spill] sm:$0xff]  ;;  %v8379_v33 = vld [vmem:[#allocation32_spill] sm:$0xff] }
 0x257   : > { %2582 = vmatpush.msrb.mxu2 %v4886_v50  ;;  %v4890_v24 = vpop.permute.xlu1 %4889  ;;  %v8378_v50 = vld [vmem:[#allocation37_spill] sm:$0xff] }
 0x258   : > { %2313 = vmatpush.msra.mxu3 %v4896_v59  ;;  %2409 = vmatpush.msra.mxu0 %v4877_v19  ;;  %v4892_v5 = vunpack.i.h.bf16 %v4890_v24  ;;  %v4891_v26 = vunpack.i.l.bf16 %v4890_v24  ;;  %v8373_v59 = vld [vmem:[#allocation23_spill] sm:$0xff] }
 0x259   : > { %4601 = vmatmul.msk.f32.gmra.mxu3 %vm766_vm1, %v5859_v25  ;;  %4632 = vmatmul.msk.f32.gmra.mxu2 %vm766_vm1, %v5833_v11  ;;  %v8355_v11 = vld [vmem:[#allocation34_spill] sm:$0xff]  ;;  %v8377_v19 = vld [vmem:[#allocation31_spill] sm:$0xff] }
 0x25a   : > { %2583 = vmatpush.msrb.mxu2 %v4887_v53  ;;  %2491 = vmatpush.msrb.mxu1 %v4891_v26  ;;  %v8382_v24 = vld [vmem:[#allocation43_spill] sm:$0xff] }
 0x25b   : > { %4663 = vmatmul.msk.f32.gmra.mxu0 %vm766_vm1, %v8354_v45  ;;  %4619 = vmatmul.msk.f32.gmra.mxu1 %vm766_vm1, %v5889_v30 }
 0x25c   : > { %2758 = vmatpush.msrb.mxu0 %v4892_v5  ;;  %2584 = vmatpush.msrb.mxu2 %v4897_v34  ;;  %v6296_v14 = vpop.f32.mrf.mxu1 }
 0x25d   : > { %2492 = vmatpush.msrb.mxu1 %v4901_v57  ;;  %v1482_v25 = vsel %vm1463_vm2, %v6296_v14, -inf  ;;  %v8383_v57 = vld [vmem:[#allocation36_spill] sm:$0xff] }
 0x25e   : > { %2759 = vmatpush.msrb.mxu0 %v4902_v63  ;;  %1483 = vmax.xlane.f32.xlu1 %v1482_v25 }
 0x261   : > { %4602 = vmatmul.msk.f32.gmra.mxu3 %vm766_vm1, %v5925_v51  ;;  %4633 = vmatmul.msk.f32.gmra.mxu2 %vm766_vm1, %v5861_v20  ;;  %v8358_v51 = vld [vmem:[#allocation41_spill] sm:$0xff]  ;;  %v8359_v20 = vld [vmem:[#allocation46_spill] sm:$0xff] }
 0x263   : > { %4664 = vmatmul.msk.f32.gmra.mxu0 %vm766_vm1, %v8355_v11  ;;  %4620 = vmatmul.msk.f32.gmra.mxu1 %vm766_vm1, %v5845_v36 }
 0x264   : > { %v6308_v30 = vpop.f32.mrf.mxu1 }
 0x265   : > { %v1485_v58 = vsel %vm1463_vm2, %v6308_v30, -inf }
 0x266   : > { %1486 = vmax.xlane.f32.xlu2 %v1485_v58 }
 0x269   : > { %4603 = vmatmul.msk.f32.gmra.mxu3 %vm766_vm1, %v8356_v38  ;;  %4634 = vmatmul.msk.f32.gmra.mxu2 %vm766_vm1, %v8357_v27 }
 0x26b   : > { %4665 = vmatmul.msk.f32.gmra.mxu0 %vm766_vm1, %v8358_v51  ;;  %4677 = vmatmul.msk.f32.vlgmr.msra.gmra.mxu1 %vm766_vm1, %v8359_v20 }
 0x26c   : > { %v6320_v47 = vpop.f32.mrf.mxu1 }
 0x26d   : > { %v1488_v36 = vsel %vm1463_vm2, %v6320_v47, -inf }
 0x26e   : > { %1489 = vmax.xlane.f32.xlu2 %v1488_v36 }
 0x271   : > { %4604 = vmatmul.msk.f32.gmra.mxu3 %vm766_vm1, %v8360_v61  ;;  %4635 = vmatmul.msk.f32.gmra.mxu2 %vm766_vm1, %v8361_v55  ;;  %v6395_v55 = vpop.f32.mrf.mxu2 }
 0x273   : > { %4666 = vmatmul.msk.f32.gmra.mxu0 %vm766_vm1, %v8362_v8  ;;  %4678 = vmatmul.msk.f32.gmra.mxu1 %vm766_vm1, %v8363_v4 }
 0x274   : > { %v6332_v10 = vpop.f32.mrf.mxu1 }
 0x275   : > { %v1491_v35 = vsel %vm1463_vm2, %v6332_v10, -inf }
 0x276   : > { %1492 = vmax.xlane.f32.xlu1 %v1491_v35 }
 0x279   : > { %4645 = vmatmul.msk.f32.vlgmr.msrb.gmra.mxu3 %vm766_vm1, %v8364_v46  ;;  %4636 = vmatmul.msk.f32.gmra.mxu2 %vm766_vm1, %v8365_v7 }
 0x27b   : > { %4667 = vmatmul.msk.f32.gmra.mxu0 %vm766_vm1, %v8366_v39  ;;  %4679 = vmatmul.msk.f32.gmra.mxu1 %vm766_vm1, %v8367_v52 }
 0x27c   : > { %v6344_v0 = vpop.f32.mrf.mxu1 }
 0x27d   : > { %8368 = vst [vmem:[#allocation29_spill] sm:$0xff] %v6344_v0  ;;  %v1494_v2 = vsel %vm1463_vm2, %v6344_v0, -inf }
 0x27e   : > { %1495 = vmax.xlane.f32.xlu1 %v1494_v2 }
 0x281   : > { %4646 = vmatmul.msk.f32.gmra.mxu3 %vm766_vm1, %v8369_v6 }
 0x283   : > { %4668 = vmatmul.msk.f32.gmra.mxu0 %vm766_vm1, %v8370_v3  ;;  %4680 = vmatmul.msk.f32.gmra.mxu1 %vm766_vm1, %v8371_v28 }
 0x284   : > { %v6354_v13 = vpop.f32.mrf.mxu1 }
 0x285   : > { %8372 = vst [vmem:[#allocation34_spill] sm:$0xff] %v6354_v13  ;;  %v1497_v21 = vsel %vm1463_vm2, %v6354_v13, -inf }
 0x286   : > { %1498 = vmax.xlane.f32.xlu1 %v1497_v21 }
 0x289   : > { %4647 = vmatmul.msk.f32.gmra.mxu3 %vm766_vm1, %v8373_v59 }
 0x28b   : > { %4681 = vmatmul.msk.f32.gmra.mxu1 %vm766_vm1, %v8374_v48 }
 0x291   : > { %4648 = vmatmul.msk.f32.gmra.mxu3 %vm766_vm1, %v8375_v18 }
 0x293   : > { %4682 = vmatmul.msk.f32.gmra.mxu1 %vm766_vm1, %v8376_v29 }
 0x299   : > { %4649 = vmatmul.msk.f32.gmra.mxu3 %vm766_vm1, %v8377_v19 }
 0x29b   : > { %4683 = vmatmul.msk.f32.gmra.mxu1 %vm766_vm1, %v8378_v50 }
 0x2a1   : > { %4650 = vmatmul.msk.f32.gmra.mxu3 %vm766_vm1, %v8379_v33 }
 0x2a3   : > { %4684 = vmatmul.msk.f32.gmra.mxu1 %vm766_vm1, %v8380_v42 }
 0x2a6   : > { %v6374_v53 = vpop.xlane.xlu1 %1501 }
 0x2a7   : > { %8381 = vst [vmem:[#allocation38_spill] sm:$0xff] %v6374_v53  ;;  %v6378_v5 = vpop.f32.mrf.mxu1 }
 0x2a8   : > { %v1536_v26 = vsel %vm1463_vm2, %v6378_v5, -inf }
 0x2a9   : > { %4651 = vmatmul.msk.f32.gmra.mxu3 %vm766_vm1, %v8382_v24  ;;  %1537 = vmax.xlane.f32.xlu2 %v1536_v26  ;;  %v1469_v4 = vpop.xlane.xlu0 %1468 }
 0x2ae   : > { %v6389_v27 = vpop.xlane.xlu2 %1504 }
 0x2af   : > { %v1466_v34 = vpop.xlane.xlu1 %1465  ;;  %v6385_v25 = vpop.f32.mrf.mxu1  ;;  %8384 = vst [vmem:[#allocation39_spill] sm:$0xff] %v6389_v27 }
 0x2b0   : > { %v1656_v63 = vsub.f32 %v6162_v15, %v1466_v34  ;;  %v1539_v58 = vsel %vm1463_vm2, %v6385_v25, -inf }
 0x2b1   : > { %4652 = vmatmul.msk.f32.gmra.mxu3 %vm766_vm1, %v8383_v57  ;;  %1540 = vmax.xlane.f32.xlu2 %v1539_v58 }
 0x2b2   : > { %v1720_v38 = vmul.f32 1.442695, %v1656_v63 }
 0x2b4   : > { %5006 = vpow2.f32 %v1720_v38 }
 0x2b7   : > { %v6401_v7 = vpop.xlane.xlu2 %1507  ;;  %v6413_v63 = vpop.f32.mrf.mxu1 }
 0x2b8   : > { %8385 = vst [vmem:[#allocation41_spill] sm:$0xff] %v6401_v7 }
 0x2ba   : > { %v6391_v36 = vpop.eup %5006  ;;  %v6393_v61 = vpop.f32.mrf.mxu3 }
 0x2bb   : > { %v1848_v15 = vsel %vm1463_vm2, %v6391_v36, 0.0  ;;  %v1512_v35 = vsel %vm1463_vm2, %v6393_v61, -inf }
 0x2bc   : > { %1849 = vadd.xlane.f32.xlu1 %v1848_v15  ;;  %1513 = vmax.xlane.f32.xlu2 %v1512_v35  ;;  %v1542_v15 = vsel %vm1463_vm2, %v6413_v63, -inf }
 0x2c1   : > { %v1478_v34 = vpop.xlane.xlu2 %1477 }
 0x2c2   : > { %v6403_v39 = vpop.f32.mrf.mxu3  ;;  %v1660_v58 = vsub.f32 %v6268_v49, %v1478_v34 }
 0x2c3   : > { %v6405_v2 = vpop.f32.mrf.mxu2  ;;  %v1515_v34 = vsel %vm1463_vm2, %v6403_v39, -inf }
 0x2c4   : > { %v1560_v3 = vsel %vm1463_vm2, %v6405_v2, -inf }
 0x2c5   : > { %1561 = vmax.xlane.f32.xlu2 %v1560_v3  ;;  %v1728_v3 = vmul.f32 1.442695, %v1660_v58  ;;  %v1657_v58 = vsub.f32 %v6185_v56, %v1469_v4  ;;  %v1472_v4 = vpop.xlane.xlu1 %1471 }
 0x2c7   : > { %5008 = vpow2.f32 %v1728_v3  ;;  %v6437_v3 = vpop.f32.mrf.mxu1  ;;  %v1722_v48 = vmul.f32 1.442695, %v1657_v58 }
 0x2c8   : > { %v6409_v21 = vpop.f32.mrf.mxu0  ;;  %8386 = vst [vmem:[#allocation40_spill] sm:$0xff] %v6437_v3  ;;  %v1545_v50 = vsel %vm1463_vm2, %v6437_v3, -inf }
 0x2c9   : > { %v1608_v26 = vsel %vm1463_vm2, %v6409_v21, -inf  ;;  %5010 = vpow2.f32 %v1722_v48 }
 0x2ca   : > { %1609 = vmax.xlane.f32.xlu0 %v1608_v26 }
 0x2cb   : > { %v6426_v46 = vpop.f32.mrf.mxu2 }
 0x2cc   : > { %v6416_v38 = vpop.f32.mrf.mxu3 }
 0x2cd   : > { %1543 = vmax.xlane.f32.xlu2 %v1542_v15  ;;  %v1563_v15 = vsel %vm1463_vm2, %v6426_v46, -inf  ;;  %v1518_v58 = vsel %vm1463_vm2, %v6416_v38, -inf }
 0x2d0   : > { %v6420_v35 = vpop.f32.mrf.mxu0 }
 0x2d1   : > { %v1611_v20 = vsel %vm1463_vm2, %v6420_v35, -inf }
 0x2d2   : > { %1612 = vmax.xlane.f32.xlu0 %v1611_v20  ;;  %v6435_v20 = vpop.eup %5008 }
 0x2d4   : > { %v6424_v26 = vpop.f32.mrf.mxu3 }
 0x2d5   : > { %v1521_v49 = vsel %vm1463_vm2, %v6424_v26, -inf  ;;  %1516 = vmax.xlane.f32.xlu2 %v1515_v34  ;;  %v6447_v34 = vpop.eup %5010 }
 0x2d6   : > { %1522 = vmax.xlane.f32.xlu1 %v1521_v49  ;;  %v1860_v49 = vsel %vm1463_vm2, %v6435_v20, 0.0  ;;  %v1851_v52 = vsel %vm1463_vm2, %v6447_v34, 0.0 }
 0x2d8   : > { %v6439_v59 = vpop.f32.mrf.mxu0 }
 0x2d9   : > { %v1614_v56 = vsel %vm1463_vm2, %v6439_v59, -inf  ;;  %v1487_v6 = vpop.xlane.xlu2 %1486 }
 0x2da   : > { %1564 = vmax.xlane.f32.xlu0 %v1563_v15  ;;  %v1658_v15 = vsub.f32 %v6216_v37, %v1472_v4  ;;  %v1475_v37 = vpop.xlane.xlu0 %1474 }
 0x2db   : > { %v1659_v18 = vsub.f32 %v6248_v43, %v1475_v37  ;;  %v1481_v43 = vpop.xlane.xlu1 %1480 }
 0x2dc   : > { %v1724_v48 = vmul.f32 1.442695, %v1658_v15 }
 0x2dd   : > { %1546 = vmax.xlane.f32.xlu2 %v1545_v50  ;;  %v6454_v50 = vpop.f32.mrf.mxu2 }
 0x2de   : > { %1861 = vadd.xlane.f32.xlu1 %v1860_v49  ;;  %5012 = vpow2.f32 %v1724_v48 }
 0x2e0   : > { %v6456_v49 = vpop.f32.mrf.mxu0 }
 0x2e1   : > { %v1617_v28 = vsel %vm1463_vm2, %v6456_v49, -inf  ;;  %v6508_v7 = vpop.xlane.xlu2 %1489 }
 0x2e2   : > { %1615 = vmax.xlane.f32.xlu0 %v1614_v56  ;;  %v1566_v56 = vsel %vm1463_vm2, %v6454_v50, -inf }
 0x2e4   : > { %v6464_v4 = vpop.eup %5012 }
 0x2e5   : > { %1519 = vmax.xlane.f32.xlu2 %v1518_v58  ;;  %v6462_v58 = vpop.f32.mrf.mxu1  ;;  %v1854_v48 = vsel %vm1463_vm2, %v6464_v4, 0.0 }
 0x2e6   : > { %8387 = vst [vmem:[#allocation44_spill] sm:$0xff] %v6462_v58  ;;  %v1548_v15 = vsel %vm1463_vm2, %v6462_v58, -inf }
 0x2e8   : > { %v6476_v42 = vpop.f32.mrf.mxu0 }
 0x2ea   : > { %1852 = vadd.xlane.f32.xlu0 %v1851_v52  ;;  %v4908_v52 = vpack.i.bf16 %v8362_v8, %v5837_v31  ;;  %v1620_v8 = vsel %vm1463_vm2, %v6476_v42, -inf }
 0x2ed   : > { %1567 = vmax.xlane.f32.xlu2 %v1566_v56  ;;  %v1726_v56 = vmul.f32 1.442695, %v1659_v18  ;;  %v6482_v37 = vpop.f32.mrf.mxu1 }
 0x2ee   : > { %8388 = vst [vmem:[#allocation35_spill] sm:$0xff] %v6482_v37 }
 0x2ef   : > { %5014 = vpow2.f32 %v1726_v56 }
 0x2f0   : > { %v6502_v57 = vpop.f32.mrf.mxu0 }
 0x2f1   : > { %v1623_v19 = vsel %vm1463_vm2, %v6502_v57, -inf }
 0x2f2   : > { %1618 = vmax.xlane.f32.xlu0 %v1617_v28  ;;  %v6474_v28 = vpop.f32.mrf.mxu2 }
 0x2f3   : > { %v1569_v31 = vsel %vm1463_vm2, %v6474_v28, -inf }
 0x2f5   : > { %1549 = vmax.xlane.f32.xlu2 %v1548_v15  ;;  %v1551_v15 = vsel %vm1463_vm2, %v6482_v37, -inf  ;;  %v6498_v24 = vpop.f32.mrf.mxu1 }
 0x2f6   : > { %8390 = vst [vmem:[#allocation45_spill] sm:$0xff] %v6498_v24 }
 0x2f7   : > { %4909 = vrot.lane.b32.xlu1 %v4908_v52, %s5372_s23  ;;  %v6484_v52 = vpop.eup %5014 }
 0x2f8   : > { %v1857_v18 = vsel %vm1463_vm2, %v6484_v52, 0.0  ;;  %v6517_v27 = vpop.f32.mrf.mxu0 }
 0x2f9   : > { %8392 = vst [vmem:[#allocation55_spill] sm:$0xff] %v6517_v27 }
 0x2fa   : > { %1855 = vadd.xlane.f32.xlu0 %v1854_v48  ;;  %v6490_v48 = vpop.f32.mrf.mxu3  ;;  %v6492_v56 = vpop.f32.mrf.mxu2 }
 0x2fb   : > { %8389 = vst [vmem:[#allocation42_spill] sm:$0xff] %v6492_v56  ;;  %v1524_v29 = vsel %vm1463_vm2, %v6490_v48, -inf }
 0x2fd   : > { %1570 = vmax.xlane.f32.xlu2 %v1569_v31  ;;  %v1484_v31 = vpop.xlane.xlu1 %1483 }
 0x302   : > { %1621 = vmax.xlane.f32.xlu0 %v1620_v8  ;;  %v1572_v8 = vsel %vm1463_vm2, %v6492_v56, -inf  ;;  %v6513_v33 = vpop.f32.mrf.mxu2 }
 0x303   : > { %8391 = vst [vmem:[#allocation49_spill] sm:$0xff] %v6513_v33 }
 0x305   : > { %1552 = vmax.xlane.f32.xlu2 %v1551_v15  ;;  %v6500_v15 = vpop.f32.mrf.mxu3  ;;  %v6504_v44 = vpop.xlane.xlu1 %1492 }
 0x306   : > { %v1527_v37 = vsel %vm1463_vm2, %v6500_v15, -inf }
 0x30a   : > { %1858 = vadd.xlane.f32.xlu0 %v1857_v18  ;;  %v1554_v18 = vsel %vm1463_vm2, %v6498_v24, -inf  ;;  %v6532_v53 = vpop.f32.mrf.mxu2 }
 0x30b   : > { %8393 = vst [vmem:[#allocation56_spill] sm:$0xff] %v6532_v53 }
 0x30d   : > { %1573 = vmax.xlane.f32.xlu2 %v1572_v8  ;;  %v1661_v8 = vsub.f32 %v6284_v62, %v1481_v43  ;;  %v6515_v1 = vpop.f32.mrf.mxu3  ;;  %v6521_v24 = vpop.xlane.xlu1 %1495  ;;  %v1662_v62 = vsub.f32 %v6296_v14, %v1484_v31  ;;  %v1626_v43 = vsel %vm1463_vm2, %v6517_v27, -inf  ;;  %v1663_v14 = vsub.f32 %v6308_v30, %v1487_v6 }
 0x312   : > { %1525 = vmax.xlane.f32.xlu0 %v1524_v29  ;;  %v1730_v29 = vmul.f32 1.442695, %v1661_v8  ;;  %v1732_v8 = vmul.f32 1.442695, %v1662_v62 }
 0x314   : > { %5016 = vpow2.f32 %v1730_v29 }
 0x315   : > { %1555 = vmax.xlane.f32.xlu2 %v1554_v18  ;;  %5018 = vpow2.f32 %v1732_v8  ;;  %v6537_v31 = vpop.xlane.xlu1 %1498 }
 0x316   : > { %8394 = vst [vmem:[#allocation57_spill] sm:$0xff] %v6537_v31 }
 0x31a   : > { %1624 = vmax.xlane.f32.xlu0 %v1623_v19  ;;  %v1530_v19 = vsel %vm1463_vm2, %v6515_v1, -inf  ;;  %v6530_v41 = vpop.eup %5016 }
 0x31b   : > { %v1863_v62 = vsel %vm1463_vm2, %v6530_v41, 0.0  ;;  %v6545_v58 = vpop.eup %5018 }
 0x31c   : > { %v6523_v18 = vpop.xlane.xlu2 %1537  ;;  %v1866_v8 = vsel %vm1463_vm2, %v6545_v58, 0.0 }
 0x31d   : > { %1528 = vmax.xlane.f32.xlu2 %v1527_v37  ;;  %v1575_v37 = vsel %vm1463_vm2, %v6513_v33, -inf  ;;  %v6547_v33 = vpop.f32.mrf.mxu3  ;;  %v1680_v3 = vsub.f32 %v6378_v5, %v6523_v18 }
 0x31e   : > { %v1533_v30 = vsel %vm1463_vm2, %v6547_v33, -inf }
 0x321   : > { %1627 = vmax.xlane.f32.xlu1 %v1626_v43  ;;  %v1734_v43 = vmul.f32 1.442695, %v1663_v14 }
 0x322   : > { %1531 = vmax.xlane.f32.xlu0 %v1530_v19  ;;  %v1578_v19 = vsel %vm1463_vm2, %v6532_v53, -inf  ;;  %v6556_v53 = vpop.f32.mrf.mxu2 }
 0x323   : > { %5020 = vpow2.f32 %v1734_v43  ;;  %8395 = vst [vmem:[#allocation58_spill] sm:$0xff] %v6556_v53  ;;  %v1581_v31 = vsel %vm1463_vm2, %v6556_v53, -inf  ;;  %v1664_v53 = vsub.f32 %v6320_v47, %v6508_v7  ;;  %v1768_v47 = vmul.f32 1.442695, %v1680_v3 }
 0x324   : > { %v6539_v29 = vpop.xlane.xlu2 %1540 }
 0x325   : > { %1576 = vmax.xlane.f32.xlu2 %v1575_v37 }
 0x329   : > { %1864 = vadd.xlane.f32.xlu1 %v1863_v62  ;;  %v6554_v14 = vpop.eup %5020 }
 0x32a   : > { %1579 = vmax.xlane.f32.xlu0 %v1578_v19  ;;  %v1869_v56 = vsel %vm1463_vm2, %v6554_v14, 0.0 }
 0x32f   : > { %v1850_v6 = vpop.xlane.xlu1 %1849  ;;  %v1514_v37 = vpop.xlane.xlu2 %1513 }
 0x330   : > { %5022 = vrcp.f32 %v1850_v6  ;;  %v1672_v19 = vsub.f32 %v6393_v61, %v1514_v37  ;;  %v8396_v61 = vld [vmem:[#allocation22_spill] sm:$0xff] }
 0x331   : > { %1867 = vadd.xlane.f32.xlu1 %v1866_v8  ;;  %v4903_v6 = vpack.i.bf16 %v5811_v60, %v8396_v61 }
 0x332   : > { %1534 = vmax.xlane.f32.xlu0 %v1533_v30  ;;  %v1752_v62 = vmul.f32 1.442695, %v1672_v19 }
 0x334   : > { %5024 = vpow2.f32 %v1752_v62  ;;  %v8397_v62 = vld [vmem:[#allocation21_spill] sm:$0xff] }
 0x336   : > { %v5023_v13 = vpop.eup %5022 }
 0x337   : > { %v2104_v43 = vmul.f32 %v5023_v13, %v6391_v36 }
 0x338   : > { %v1562_v30 = vpop.xlane.xlu2 %1561 }
 0x339   : > { %1870 = vadd.xlane.f32.xlu1 %v1869_v56  ;;  %4685 = vmatmul.msk.f32.vlgmr.msra.gmra.mxu2 %vm1463_vm2, %v2104_v43  ;;  %v4913_v43 = vpack.i.bf16 %v5745_v23, %v8397_v62  ;;  %v1688_v62 = vsub.f32 %v6405_v2, %v1562_v30 }
 0x33a   : > { %1582 = vmax.xlane.f32.xlu0 %v1581_v31  ;;  %v6566_v37 = vpop.eup %5024 }
 0x33b   : > { %v1896_v13 = vsel %vm1463_vm2, %v6566_v37, 0.0  ;;  %v1784_v18 = vmul.f32 1.442695, %v1688_v62 }
 0x33d   : > { %v1610_v8 = vpop.xlane.xlu0 %1609  ;;  %4904 = vrot.lane.b32.xlu2 %v4903_v6, %s5372_s23  ;;  %v1736_v6 = vmul.f32 1.442695, %v1664_v53 }
 0x340   : > { %v6571_v36 = vpop.xlane.xlu2 %1543 }
 0x341   : > { %1897 = vadd.xlane.f32.xlu1 %v1896_v13 }
 0x345   : > { %v6573_v19 = vpop.xlane.xlu0 %1612 }
 0x348   : > { %v1517_v56 = vpop.xlane.xlu2 %1516 }
 0x349   : > { %v1673_v31 = vsub.f32 %v6403_v39, %v1517_v56  ;;  %v1523_v56 = vpop.xlane.xlu1 %1522 }
 0x34b   : > { %v1754_v60 = vmul.f32 1.442695, %v1673_v31 }
 0x34d   : > { %v1565_v61 = vpop.xlane.xlu0 %1564  ;;  %5026 = vpow2.f32 %v1754_v60 }
 0x34e   : > { %4914 = vrot.lane.b32.xlu0 %v4913_v43, %s5372_s23  ;;  %5028 = vpow2.f32 %v1736_v6 }
 0x34f   : > { %5030 = vpow2.f32 %v1768_v47 }
 0x350   : > { %v6581_v13 = vpop.xlane.xlu2 %1546 }
 0x351   : > { %8398 = vst [vmem:[#allocation22_spill] sm:$0xff] %v6581_v13  ;;  %v1862_v43 = vpop.xlane.xlu1 %1861 }
 0x353   : > { %v6587_v39 = vpop.eup %5026 }
 0x354   : > { %v1899_v23 = vsel %vm1463_vm2, %v6587_v39, 0.0  ;;  %v6593_v31 = vpop.eup %5028 }
 0x355   : > { %v6585_v27 = vpop.xlane.xlu0 %1615  ;;  %1900 = vadd.xlane.f32.xlu1 %v1899_v23  ;;  %8399 = vst [vmem:[#allocation21_spill] sm:$0xff] %v6593_v31  ;;  %v1872_v5 = vsel %vm1463_vm2, %v6593_v31, 0.0  ;;  %v6600_v6 = vpop.eup %5030  ;;  %v1704_v23 = vsub.f32 %v6409_v21, %v1610_v8 }
 0x356   : > { %v1920_v2 = vsel %vm1463_vm2, %v6600_v6, 0.0 }
 0x357   : > { %v1816_v30 = vmul.f32 1.442695, %v1704_v23 }
 0x358   : > { %v6591_v7 = vpop.xlane.xlu2 %1519 }
 0x35d   : > { %v1853_v53 = vpop.xlane.xlu0 %1852  ;;  %1873 = vadd.xlane.f32.xlu1 %v1872_v5 }
 0x35e   : > { %5032 = vrcp.f32 %v1853_v53 }
 0x35f   : > { %5034 = vpow2.f32 %v1784_v18 }
 0x360   : > { %v6598_v60 = vpop.xlane.xlu2 %1567  ;;  %5036 = vpow2.f32 %v1816_v30 }
 0x364   : > { %v5033_v3 = vpop.eup %5032 }
 0x365   : > { %v6603_v13 = vpop.xlane.xlu0 %1618  ;;  %v2105_v47 = vmul.f32 %v5033_v3, %v6447_v34  ;;  %v6611_v0 = vpop.eup %5034  ;;  %v1689_v34 = vsub.f32 %v6426_v46, %v1565_v61  ;;  %v4928_v46 = vpack.i.bf16 %v8355_v11, %v5772_v40 }
 0x366   : > { %1921 = vadd.xlane.f32.xlu2 %v1920_v2  ;;  %v1944_v8 = vsel %vm1463_vm2, %v6611_v0, 0.0  ;;  %v6618_v23 = vpop.eup %5036  ;;  %v1675_v2 = vsub.f32 %v6424_v26, %v1523_v56 }
 0x367   : > { %4686 = vmatmul.msk.f32.gmra.mxu2 %vm1463_vm2, %v2105_v47  ;;  %v1786_v18 = vmul.f32 1.442695, %v1689_v34  ;;  %v1992_v61 = vsel %vm1463_vm2, %v6618_v23, 0.0 }
 0x368   : > { %v6609_v62 = vpop.xlane.xlu2 %1549  ;;  %v1758_v30 = vmul.f32 1.442695, %v1675_v2 }
 0x369   : > { %v4910_v53 = vpop.permute.xlu1 %4909 }
 0x36a   : > { %v4912_v5 = vunpack.i.h.bf16 %v4910_v53  ;;  %v4911_v31 = vunpack.i.l.bf16 %v4910_v53 }
 0x36c   : > { %2493 = vmatpush.msrb.mxu1 %v4911_v31  ;;  %2760 = vmatpush.msrb.mxu0 %v4912_v5 }
 0x36d   : > { %v1856_v21 = vpop.xlane.xlu0 %1855 }
 0x36e   : > { %5038 = vrcp.f32 %v1856_v21  ;;  %1945 = vadd.xlane.f32.xlu2 %v1944_v8 }
 0x36f   : > { %5040 = vpow2.f32 %v1786_v18  ;;  %v4918_v18 = vpack.i.bf16 %v8358_v51, %v5797_v54  ;;  %v8400_v54 = vld [vmem:[#allocation20_spill] sm:$0xff] }
 0x370   : > { %v6616_v3 = vpop.xlane.xlu2 %1570  ;;  %5042 = vpow2.f32 %v1758_v30  ;;  %v4923_v51 = vpack.i.bf16 %v5729_v16, %v8400_v54 }
 0x374   : > { %v5039_v47 = vpop.eup %5038 }
 0x375   : > { %v6621_v53 = vpop.xlane.xlu0 %1621  ;;  %v2106_v31 = vmul.f32 %v5039_v47, %v6464_v4  ;;  %v6632_v26 = vpop.eup %5040 }
 0x376   : > { %4929 = vrot.lane.b32.xlu1 %v4928_v46, %s5372_s23  ;;  %v1947_v4 = vsel %vm1463_vm2, %v6632_v26, 0.0  ;;  %v6638_v11 = vpop.eup %5042 }
 0x377   : > { %4687 = vmatmul.msk.f32.gmra.mxu2 %vm1463_vm2, %v2106_v31  ;;  %v1905_v2 = vsel %vm1463_vm2, %v6638_v11, 0.0 }
 0x378   : > { %1993 = vadd.xlane.f32.xlu0 %v1992_v61  ;;  %v6630_v5 = vpop.xlane.xlu2 %1552 }
 0x37d   : > { %v1859_v56 = vpop.xlane.xlu0 %1858 }
 0x37e   : > { %5044 = vrcp.f32 %v1859_v56 }
 0x37f   : > { %5046 = vrcp.f32 %v1862_v43 }
 0x380   : > { %1948 = vadd.xlane.f32.xlu0 %v1947_v4  ;;  %v6636_v40 = vpop.xlane.xlu2 %1573 }
 0x384   : > { %v5045_v21 = vpop.eup %5044 }
 0x385   : > { %v1526_v34 = vpop.xlane.xlu0 %1525  ;;  %v2107_v8 = vmul.f32 %v5045_v21, %v6484_v52  ;;  %v5047_v46 = vpop.eup %5046 }
 0x386   : > { %v1676_v47 = vsub.f32 %v6490_v48, %v1526_v34  ;;  %4919 = vrot.lane.b32.xlu2 %v4918_v18, %s5372_s23  ;;  %v2108_v52 = vmul.f32 %v5047_v46, %v6435_v20  ;;  %v1509_v46 = vsel %vm1463_vm2, %v6395_v55, -inf }
 0x387   : > { %4688 = vmatmul.msk.f32.gmra.mxu2 %vm1463_vm2, %v2107_v8 }
 0x388   : > { %v1760_v31 = vmul.f32 1.442695, %v1676_v47  ;;  %1906 = vadd.xlane.f32.xlu0 %v1905_v2  ;;  %v6648_v43 = vpop.xlane.xlu2 %1555 }
 0x38a   : > { %5048 = vpow2.f32 %v1760_v31 }
 0x38d   : > { %v6650_v61 = vpop.xlane.xlu0 %1624 }
 0x38e   : > { %4924 = vrot.lane.b32.xlu2 %v4923_v51, %s5372_s23 }
 0x38f   : > { %4689 = vmatmul.msk.f32.gmra.mxu2 %vm1463_vm2, %v2108_v52 }
 0x390   : > { %v6656_v48 = vpop.eup %5048  ;;  %v1529_v56 = vpop.xlane.xlu2 %1528 }
 0x391   : > { %v1908_v30 = vsel %vm1463_vm2, %v6656_v48, 0.0  ;;  %v1677_v4 = vsub.f32 %v6500_v15, %v1529_v56 }
 0x392   : > { %1909 = vadd.xlane.f32.xlu0 %v1908_v30 }
 0x393   : > { %v1762_v21 = vmul.f32 1.442695, %v1677_v4 }
 0x394   : > { %v6662_v8 = vpop.xlane.xlu1 %1627 }
 0x395   : > { %v1532_v34 = vpop.xlane.xlu0 %1531  ;;  %5050 = vpow2.f32 %v1762_v21 }
 0x396   : > { %v1678_v20 = vsub.f32 %v6515_v1, %v1532_v34  ;;  %v1674_v34 = vsub.f32 %v6416_v38, %v6591_v7 }
 0x398   : > { %v1764_v16 = vmul.f32 1.442695, %v1678_v20  ;;  %v6665_v18 = vpop.xlane.xlu2 %1576  ;;  %v6683_v20 = vpop.f32.mrf.mxu0 }
 0x39a   : > { %5052 = vpow2.f32 %v1764_v16  ;;  %v1756_v16 = vmul.f32 1.442695, %v1674_v34 }
 0x39b   : > { %v6667_v47 = vpop.eup %5050 }
 0x39c   : > { %v1865_v2 = vpop.xlane.xlu1 %1864  ;;  %v1911_v31 = vsel %vm1463_vm2, %v6667_v47, 0.0 }
 0x39d   : > { %5054 = vrcp.f32 %v1865_v2  ;;  %1912 = vadd.xlane.f32.xlu0 %v1911_v31  ;;  %v6671_v15 = vpop.xlane.xlu0 %1579 }
 0x3a0   : > { %v4905_v52 = vpop.permute.xlu2 %4904  ;;  %v6675_v1 = vpop.eup %5052  ;;  %1510 = vmax.xlane.f32.xlu1 %v1509_v46 }
 0x3a1   : > { %v4907_v54 = vunpack.i.h.bf16 %v4905_v52  ;;  %v4906_v51 = vunpack.i.l.bf16 %v4905_v52  ;;  %v1914_v21 = vsel %vm1463_vm2, %v6675_v1, 0.0 }
 0x3a3   : > { %v5055_v30 = vpop.eup %5054  ;;  %2314 = vmatpush.msra.mxu3 %v4906_v51  ;;  %2585 = vmatpush.msrb.mxu2 %v4907_v54 }
 0x3a4   : > { %v1868_v56 = vpop.xlane.xlu1 %1867  ;;  %v2109_v4 = vmul.f32 %v5055_v30, %v6530_v41  ;;  %v1629_v41 = vsel %vm1463_vm2, %v6683_v20, -inf }
 0x3a5   : > { %5056 = vrcp.f32 %v1868_v56  ;;  %1915 = vadd.xlane.f32.xlu0 %v1914_v21  ;;  %v1535_v31 = vpop.xlane.xlu0 %1534 }
 0x3a6   : > { %4690 = vmatmul.msk.f32.gmra.mxu2 %vm1463_vm2, %v2109_v4  ;;  %v1679_v54 = vsub.f32 %v6547_v33, %v1535_v31  ;;  %v4943_v33 = vpack.i.bf16 %v5758_v32, %v6022_v17  ;;  %v6710_v32 = vpop.f32.mrf.mxu1 }
 0x3a7   : > { %v1557_v17 = vsel %vm1463_vm2, %v6710_v32, -inf }
 0x3a8   : > { %v1766_v38 = vmul.f32 1.442695, %v1679_v54 }
 0x3ab   : > { %v5057_v2 = vpop.eup %5056 }
 0x3ac   : > { %v1871_v46 = vpop.xlane.xlu1 %1870  ;;  %v2110_v52 = vmul.f32 %v5057_v2, %v6545_v58 }
 0x3ad   : > { %5058 = vrcp.f32 %v1871_v46  ;;  %1630 = vmax.xlane.f32.xlu0 %v1629_v41  ;;  %v6694_v58 = vpop.xlane.xlu0 %1582 }
 0x3ae   : > { %5060 = vpow2.f32 %v1756_v16  ;;  %4691 = vmatmul.msk.f32.gmra.mxu2 %vm1463_vm2, %v2110_v52  ;;  %v8401_v52 = vld [vmem:[#allocation19_spill] sm:$0xff] }
 0x3af   : > { %v4933_v41 = vpack.i.bf16 %v5743_v22, %v8401_v52 }
 0x3b3   : > { %v5059_v7 = vpop.eup %5058 }
 0x3b4   : > { %v6690_v51 = vpop.eup %5060  ;;  %v1898_v30 = vpop.xlane.xlu1 %1897  ;;  %v2111_v56 = vmul.f32 %v5059_v7, %v6554_v14  ;;  %v1665_v7 = vsub.f32 %v6332_v10, %v6504_v44  ;;  %v1705_v44 = vsub.f32 %v6420_v35, %v6573_v19 }
 0x3b5   : > { %5062 = vrcp.f32 %v1898_v30  ;;  %v1902_v4 = vsel %vm1463_vm2, %v6690_v51, 0.0 }
 0x3b6   : > { %5064 = vpow2.f32 %v1766_v38  ;;  %4692 = vmatmul.msk.f32.gmra.mxu2 %vm1463_vm2, %v2111_v56  ;;  %v1738_v22 = vmul.f32 1.442695, %v1665_v7  ;;  %v8402_v56 = vld [vmem:[#allocation18_spill] sm:$0xff] }
 0x3b7   : > { %1903 = vadd.xlane.f32.xlu2 %v1902_v4  ;;  %v4938_v4 = vpack.i.bf16 %v8402_v56, %v8354_v45  ;;  %v6733_v45 = vpop.f32.mrf.mxu1  ;;  %v1691_v56 = vsub.f32 %v6474_v28, %v6616_v3 }
 0x3b8   : > { %v1632_v19 = vsel %vm1463_vm2, %v6733_v45, -inf }
 0x3b9   : > { %4944 = vrot.lane.b32.xlu1 %v4943_v33, %s5372_s23  ;;  %v1790_v28 = vmul.f32 1.442695, %v1691_v56  ;;  %v1708_v56 = vsub.f32 %v6476_v42, %v6621_v53  ;;  %v1690_v42 = vsub.f32 %v6454_v50, %v6598_v60  ;;  %v1709_v53 = vsub.f32 %v6502_v57, %v6650_v61 }
 0x3bb   : > { %v5063_v21 = vpop.eup %5062 }
 0x3bc   : > { %v6701_v34 = vpop.eup %5064  ;;  %v2120_v14 = vmul.f32 %v5063_v21, %v6566_v37  ;;  %v1682_v21 = vsub.f32 %v6413_v63, %v6571_v36  ;;  %v1706_v63 = vsub.f32 %v6439_v59, %v6585_v27 }
 0x3bd   : > { %v1917_v2 = vsel %vm1463_vm2, %v6701_v34, 0.0 }
 0x3be   : > { %4701 = vmatmul.msk.f32.vlgmr.msra.gmra.mxu0 %vm1463_vm2, %v2120_v14 }
 0x3bf   : > { %1918 = vadd.xlane.f32.xlu2 %v1917_v2  ;;  %v1818_v2 = vmul.f32 1.442695, %v1705_v44 }
 0x3c0   : > { %v4915_v16 = vpop.permute.xlu0 %4914 }
 0x3c1   : > { %v4917_v31 = vunpack.i.h.bf16 %v4915_v16  ;;  %v4916_v46 = vunpack.i.l.bf16 %v4915_v16  ;;  %4934 = vrot.lane.b32.xlu0 %v4933_v41, %s5372_s23  ;;  %v1772_v16 = vmul.f32 1.442695, %v1682_v21 }
 0x3c3   : > { %2315 = vmatpush.msra.mxu3 %v4916_v46  ;;  %2586 = vmatpush.msrb.mxu2 %v4917_v31  ;;  %v6735_v31 = vpop.f32.mrf.mxu3 }
 0x3c7   : > { %1558 = vmax.xlane.f32.xlu2 %v1557_v17  ;;  %v1584_v17 = vsel %vm1463_vm2, %v6735_v31, -inf }
 0x3c8   : > { %v1901_v37 = vpop.xlane.xlu1 %1900 }
 0x3c9   : > { %5066 = vrcp.f32 %v1901_v37 }
 0x3ca   : > { %5068 = vpow2.f32 %v1738_v22 }
 0x3cb   : > { %5070 = vpow2.f32 %v1772_v16 }
 0x3cc   : > { %5072 = vpow2.f32 %v1818_v2  ;;  %v1681_v2 = vsub.f32 %v6385_v25, %v6539_v29  ;;  %v1707_v29 = vsub.f32 %v6456_v49, %v6603_v13  ;;  %v6784_v13 = vpop.f32.mrf.mxu1 }
 0x3cf   : > { %v5067_v54 = vpop.eup %5066 }
 0x3d0   : > { %v2121_v38 = vmul.f32 %v5067_v54, %v6587_v39  ;;  %v6723_v33 = vpop.eup %5068  ;;  %v6729_v10 = vpop.xlane.xlu1 %1873 }
 0x3d1   : > { %v1875_v14 = vsel %vm1463_vm2, %v6723_v33, 0.0  ;;  %v6745_v7 = vpop.eup %5070 }
 0x3d2   : > { %4702 = vmatmul.msk.f32.gmra.mxu0 %vm1463_vm2, %v2121_v38  ;;  %v1820_v38 = vmul.f32 1.442695, %v1706_v63  ;;  %v6747_v59 = vpop.eup %5072  ;;  %v1926_v21 = vsel %vm1463_vm2, %v6745_v7, 0.0 }
 0x3d9   : > { %v6718_v30 = vpop.xlane.xlu2 %1921 }
 0x3df   : > { %4939 = vrot.lane.b32.xlu2 %v4938_v4, %s5372_s23 }
 0x3e1   : > { %v1946_v39 = vpop.xlane.xlu2 %1945 }
 0x3e2   : > { %5074 = vrcp.f32 %v1946_v39 }
 0x3e3   : > { %1876 = vadd.xlane.f32.xlu1 %v1875_v14  ;;  %5076 = vpow2.f32 %v1820_v38  ;;  %v1995_v14 = vsel %vm1463_vm2, %v6747_v59, 0.0 }
 0x3e8   : > { %v4930_v35 = vpop.permute.xlu1 %4929  ;;  %v5075_v27 = vpop.eup %5074 }
 0x3e9   : > { %v4920_v36 = vpop.permute.xlu2 %4919  ;;  %v4932_v37 = vunpack.i.h.bf16 %v4930_v35  ;;  %v4931_v54 = vunpack.i.l.bf16 %v4930_v35  ;;  %v2136_v16 = vmul.f32 %v5075_v27, %v6611_v0  ;;  %v6759_v3 = vpop.eup %5076  ;;  %v1770_v35 = vmul.f32 1.442695, %v1681_v2 }
 0x3ea   : > { %v4922_v52 = vunpack.i.h.bf16 %v4920_v36  ;;  %v4921_v41 = vunpack.i.l.bf16 %v4920_v36  ;;  %v1998_v36 = vsel %vm1463_vm2, %v6759_v3, 0.0 }
 0x3eb   : > { %v6737_v46 = vpop.xlane.xlu0 %1993  ;;  %1633 = vmax.xlane.f32.xlu1 %v1632_v19  ;;  %1585 = vmax.xlane.f32.xlu0 %v1584_v17  ;;  %v6764_v19 = vpop.f32.mrf.mxu3  ;;  %v8403_v17 = vld [vmem:[#allocation28_spill] sm:$0xff] }
 0x3ec   : > { %2494 = vmatpush.msrb.mxu1 %v4921_v41  ;;  %2761 = vmatpush.msrb.mxu0 %v4922_v52 }
 0x3ee   : > { %2495 = vmatpush.msrb.mxu1 %v4931_v54  ;;  %2762 = vmatpush.msrb.mxu0 %v4932_v37  ;;  %v4948_v37 = vpack.i.bf16 %v5984_v9, %v8403_v17 }
 0x3f1   : > { %v4925_v4 = vpop.permute.xlu2 %4924 }
 0x3f2   : > { %v4927_v39 = vunpack.i.h.bf16 %v4925_v4  ;;  %v4926_v44 = vunpack.i.l.bf16 %v4925_v4 }
 0x3f3   : > { %v1949_v22 = vpop.xlane.xlu0 %1948  ;;  %1927 = vadd.xlane.f32.xlu1 %v1926_v21  ;;  %1996 = vadd.xlane.f32.xlu0 %v1995_v14  ;;  %v6779_v38 = vpop.f32.mrf.mxu3  ;;  %v1824_v21 = vmul.f32 1.442695, %v1708_v56 }
 0x3f4   : > { %5078 = vrcp.f32 %v1949_v22  ;;  %2316 = vmatpush.msra.mxu3 %v4926_v44  ;;  %2587 = vmatpush.msrb.mxu2 %v4927_v39  ;;  %v1590_v49 = vsel %vm1463_vm2, %v6779_v38, -inf  ;;  %v6792_v39 = vpop.f32.mrf.mxu1 }
 0x3f5   : > { %4717 = vmatmul.msk.f32.vlgmr.msrb.gmra.mxu2 %vm1463_vm2, %v2136_v16  ;;  %5080 = vpow2.f32 %v1790_v28  ;;  %v1638_v14 = vsel %vm1463_vm2, %v6792_v39, -inf  ;;  %v8404_v16 = vld [vmem:[#allocation25_spill] sm:$0xff] }
 0x3f6   : > { %5082 = vpow2.f32 %v1770_v35  ;;  %v4953_v2 = vpack.i.bf16 %v8404_v16, %v5718_v12  ;;  %v8405_v12 = vld [vmem:[#allocation29_spill] sm:$0xff] }
 0x3fa   : > { %v5079_v63 = vpop.eup %5078 }
 0x3fb   : > { %1999 = vadd.xlane.f32.xlu1 %v1998_v36  ;;  %v2137_v0 = vmul.f32 %v5079_v63, %v6632_v26  ;;  %v6767_v25 = vpop.eup %5080  ;;  %v1822_v26 = vmul.f32 1.442695, %v1707_v29  ;;  %v1907_v27 = vpop.xlane.xlu0 %1906  ;;  %v1788_v36 = vmul.f32 1.442695, %v1690_v42  ;;  %v1666_v29 = vsub.f32 %v8405_v12, %v6521_v24  ;;  %v8408_v12 = vld [vmem:[#allocation40_spill] sm:$0xff] }
 0x3fc   : > { %v1953_v52 = vsel %vm1463_vm2, %v6767_v25, 0.0  ;;  %v6773_v41 = vpop.eup %5082 }
 0x3fd   : > { %4718 = vmatmul.msk.f32.gmra.mxu2 %vm1463_vm2, %v2137_v0  ;;  %v1923_v54 = vsel %vm1463_vm2, %v6773_v41, 0.0  ;;  %5084 = vpow2.f32 %v1822_v26  ;;  %v1826_v0 = vmul.f32 1.442695, %v1709_v53  ;;  %v1740_v60 = vmul.f32 1.442695, %v1666_v29 }
 0x3fe   : > { %5086 = vpow2.f32 %v1824_v21 }
 0x3ff   : > { %5088 = vpow2.f32 %v1788_v36 }
 0x400   : > { %5090 = vpow2.f32 %v1826_v0 }
 0x403   : > { %1954 = vadd.xlane.f32.xlu1 %v1953_v52  ;;  %v6786_v22 = vpop.eup %5084  ;;  %v6813_v52 = vpop.f32.mrf.mxu1 }
 0x404   : > { %v2001_v4 = vsel %vm1463_vm2, %v6786_v22, 0.0  ;;  %v6800_v28 = vpop.eup %5086  ;;  %v1641_v57 = vsel %vm1463_vm2, %v6813_v52, -inf }
 0x405   : > { %v1910_v9 = vpop.xlane.xlu0 %1909  ;;  %v2004_v35 = vsel %vm1463_vm2, %v6800_v28, 0.0 }
 0x407   : > { %4949 = vrot.lane.b32.xlu0 %v4948_v37, %s5372_s23  ;;  %v6821_v37 = vpop.eup %5088 }
 0x408   : > { %1924 = vadd.xlane.f32.xlu2 %v1923_v54  ;;  %v6823_v26 = vpop.eup %5090  ;;  %v1950_v54 = vsel %vm1463_vm2, %v6821_v37, 0.0 }
 0x40b   : > { %1591 = vmax.xlane.f32.xlu1 %v1590_v49  ;;  %v8406_v49 = vld [vmem:[#allocation55_spill] sm:$0xff]  ;;  %v6837_v0 = vpop.f32.mrf.mxu1 }
 0x40c   : > { %v1710_v56 = vsub.f32 %v8406_v49, %v6662_v8 }
 0x410   : > { %v6794_v44 = vpop.xlane.xlu0 %1912 }
 0x413   : > { %2002 = vadd.xlane.f32.xlu1 %v2001_v4  ;;  %v6817_v61 = vpop.xlane.xlu1 %1510 }
 0x418   : > { %v6807_v63 = vpop.xlane.xlu0 %1915 }
 0x41b   : > { %1639 = vmax.xlane.f32.xlu1 %v1638_v14  ;;  %v2007_v14 = vsel %vm1463_vm2, %v6823_v26, 0.0 }
 0x420   : > { %4954 = vrot.lane.b32.xlu2 %v4953_v2, %s5372_s23  ;;  %v6819_v17 = vpop.xlane.xlu0 %1630 }
 0x423   : > { %2005 = vadd.xlane.f32.xlu1 %v2004_v35  ;;  %v1828_v35 = vmul.f32 1.442695, %v1710_v56  ;;  %v8409_v56 = vld [vmem:[#allocation42_spill] sm:$0xff] }
 0x42a   : > { %v1904_v50 = vpop.xlane.xlu2 %1903 }
 0x42b   : > { %5092 = vrcp.f32 %v1904_v50  ;;  %1642 = vmax.xlane.f32.xlu1 %v1641_v57  ;;  %v4945_v16 = vpop.permute.xlu1 %4944 }
 0x42c   : > { %5094 = vpow2.f32 %v1740_v60  ;;  %v4946_v8 = vunpack.i.l.bf16 %v4945_v16 }
 0x42d   : > { %5096 = vrcp.f32 %v1907_v27 }
 0x42e   : > { %5098 = vrcp.f32 %v1910_v9  ;;  %v1692_v9 = vsub.f32 %v8409_v56, %v6636_v40 }
 0x42f   : > { %5100 = vpow2.f32 %v1828_v35 }
 0x431   : > { %v5093_v24 = vpop.eup %5092  ;;  %1951 = vadd.xlane.f32.xlu0 %v1950_v54 }
 0x432   : > { %v6829_v4 = vpop.xlane.xlu2 %1918  ;;  %v2122_v21 = vmul.f32 %v5093_v24, %v6690_v51  ;;  %v6835_v53 = vpop.eup %5094  ;;  %v8407_v51 = vld [vmem:[#allocation22_spill] sm:$0xff]  ;;  %v1644_v24 = vsel %vm1463_vm2, %v6837_v0, -inf }
 0x433   : > { %2008 = vadd.xlane.f32.xlu1 %v2007_v14  ;;  %v4935_v2 = vpop.permute.xlu0 %4934  ;;  %v5097_v36 = vpop.eup %5096  ;;  %v1683_v29 = vsub.f32 %v8408_v12, %v8407_v51  ;;  %v1878_v50 = vsel %vm1463_vm2, %v6835_v53, 0.0  ;;  %v8410_v14 = vld [vmem:[#allocation57_spill] sm:$0xff] }
 0x434   : > { %4703 = vmatmul.msk.f32.gmra.mxu0 %vm1463_vm2, %v2122_v21  ;;  %v4937_v27 = vunpack.i.h.bf16 %v4935_v2  ;;  %v4936_v42 = vunpack.i.l.bf16 %v4935_v2  ;;  %v2123_v60 = vmul.f32 %v5097_v36, %v6638_v11  ;;  %v5099_v49 = vpop.eup %5098  ;;  %v8411_v2 = vld [vmem:[#allocation34_spill] sm:$0xff]  ;;  %v1635_v11 = vsel %vm1463_vm2, %v6784_v13, -inf }
 0x435   : > { %v1774_v54 = vmul.f32 1.442695, %v1683_v29  ;;  %v6849_v21 = vpop.eup %5100  ;;  %v2124_v36 = vmul.f32 %v5099_v49, %v6656_v48 }
 0x436   : > { %2317 = vmatpush.msra.mxu3 %v4936_v42  ;;  %2496 = vmatpush.msrb.mxu1 %v4937_v27  ;;  %v1667_v27 = vsub.f32 %v8411_v2, %v8410_v14  ;;  %v2010_v12 = vsel %vm1463_vm2, %v6849_v21, 0.0  ;;  %v8413_v2 = vld [vmem:[#allocation49_spill] sm:$0xff] }
 0x437   : > { %5102 = vpow2.f32 %v1774_v54  ;;  %v1587_v54 = vsel %vm1463_vm2, %v6764_v19, -inf }
 0x438   : > { %2497 = vmatpush.msrb.mxu1 %v4946_v8  ;;  %5104 = vrcp.f32 %v6794_v44  ;;  %v1792_v8 = vmul.f32 1.442695, %v1692_v9  ;;  %v1742_v29 = vmul.f32 1.442695, %v1667_v27  ;;  %v4947_v44 = vunpack.i.h.bf16 %v4945_v16 }
 0x439   : > { %1879 = vadd.xlane.f32.xlu0 %v1878_v50  ;;  %v1693_v27 = vsub.f32 %v8413_v2, %v6665_v18  ;;  %v8418_v2 = vld [vmem:[#allocation39_spill] sm:$0xff] }
 0x43a   : > { %v1559_v57 = vpop.xlane.xlu2 %1558  ;;  %5106 = vpow2.f32 %v1792_v8 }
 0x43b   : > { %1645 = vmax.xlane.f32.xlu1 %v1644_v24  ;;  %v1687_v42 = vsub.f32 %v6710_v32, %v1559_v57  ;;  %5108 = vpow2.f32 %v1742_v29  ;;  %v6865_v24 = vpop.f32.mrf.mxu1 }
 0x43c   : > { %4704 = vmatmul.msk.f32.gmra.mxu0 %vm1463_vm2, %v2123_v60  ;;  %v8412_v60 = vld [vmem:[#allocation44_spill] sm:$0xff]  ;;  %5110 = vrcp.f32 %v6807_v63 }
 0x43d   : > { %v6861_v50 = vpop.eup %5102  ;;  %v1782_v32 = vmul.f32 1.442695, %v1687_v42  ;;  %v1684_v48 = vsub.f32 %v8412_v60, %v6609_v62  ;;  %v1647_v62 = vsel %vm1463_vm2, %v6865_v24, -inf  ;;  %v8414_v42 = vld [vmem:[#allocation38_spill] sm:$0xff] }
 0x43e   : > { %v5105_v57 = vpop.eup %5104  ;;  %v1929_v16 = vsel %vm1463_vm2, %v6861_v50, 0.0 }
 0x43f   : > { %5112 = vpow2.f32 %v1782_v32  ;;  %v2125_v49 = vmul.f32 %v5105_v57, %v6667_v47  ;;  %v1776_v56 = vmul.f32 1.442695, %v1684_v48  ;;  %v8415_v47 = vld [vmem:[#allocation52_spill] sm:$0xff]  ;;  %v8416_v32 = vld [vmem:[#allocation35_spill] sm:$0xff] }
 0x440   : > { %v6876_v9 = vpop.eup %5106  ;;  %v1685_v57 = vsub.f32 %v8416_v32, %v6630_v5 }
 0x441   : > { %1636 = vmax.xlane.f32.xlu0 %v1635_v11  ;;  %v6878_v14 = vpop.eup %5108  ;;  %5114 = vpow2.f32 %v1776_v56  ;;  %v8417_v56 = vld [vmem:[#allocation56_spill] sm:$0xff] }
 0x442   : > { %v4940_v35 = vpop.permute.xlu2 %4939  ;;  %v5111_v63 = vpop.eup %5110  ;;  %5116 = vrcp.f32 %v6829_v4  ;;  %v1881_v8 = vsel %vm1463_vm2, %v6878_v14, 0.0 }
 0x443   : > { %v4942_v51 = vunpack.i.h.bf16 %v4940_v35  ;;  %v4941_v40 = vunpack.i.l.bf16 %v4940_v35  ;;  %2011 = vadd.xlane.f32.xlu1 %v2010_v12  ;;  %v1668_v35 = vsub.f32 %v8415_v47, %v8414_v42 }
 0x444   : > { %4705 = vmatmul.msk.f32.gmra.mxu0 %vm1463_vm2, %v2124_v36  ;;  %v1956_v36 = vsel %vm1463_vm2, %v6876_v9, 0.0 }
 0x445   : > { %2318 = vmatpush.msra.mxu3 %v4942_v51  ;;  %2763 = vmatpush.msrb.mxu0 %v4941_v40  ;;  %v6882_v11 = vpop.eup %5112  ;;  %v2126_v51 = vmul.f32 %v5111_v63, %v6675_v1  ;;  %v1794_v40 = vmul.f32 1.442695, %v1693_v27  ;;  %v1744_v12 = vmul.f32 1.442695, %v1668_v35  ;;  %v8419_v27 = vld [vmem:[#allocation53_spill] sm:$0xff] }
 0x446   : > { %v1941_v18 = vsel %vm1463_vm2, %v6882_v11, 0.0  ;;  %v1669_v42 = vsub.f32 %v8419_v27, %v8418_v2  ;;  %v8424_v27 = vld [vmem:[#allocation41_spill] sm:$0xff] }
 0x447   : > { %2764 = vmatpush.msrb.mxu0 %v4947_v44  ;;  %v6895_v29 = vpop.eup %5114  ;;  %v6897_v44 = vpop.f32.mrf.mxu3  ;;  %5118 = vpow2.f32 %v1794_v40 }
 0x448   : > { %v5117_v4 = vpop.eup %5116  ;;  %5120 = vpow2.f32 %v1744_v12  ;;  %v1932_v1 = vsel %vm1463_vm2, %v6895_v29, 0.0  ;;  %v1593_v48 = vsel %vm1463_vm2, %v6897_v44, -inf }
 0x449   : > { %1588 = vmax.xlane.f32.xlu2 %v1587_v54  ;;  %1930 = vadd.xlane.f32.xlu0 %v1929_v16  ;;  %v2127_v54 = vmul.f32 %v5117_v4, %v6701_v34  ;;  %v1778_v16 = vmul.f32 1.442695, %v1685_v57  ;;  %v8421_v57 = vld [vmem:[#allocation32_spill] sm:$0xff] }
 0x44b   : > { %1648 = vmax.xlane.f32.xlu1 %v1647_v62  ;;  %5122 = vpow2.f32 %v1778_v16  ;;  %v1694_v62 = vsub.f32 %v8417_v56, %v6671_v15  ;;  %v8420_v15 = vld [vmem:[#allocation45_spill] sm:$0xff]  ;;  %v8423_v56 = vld [vmem:[#allocation58_spill] sm:$0xff] }
 0x44c   : > { %4706 = vmatmul.msk.f32.gmra.mxu0 %vm1463_vm2, %v2125_v49  ;;  %v1686_v40 = vsub.f32 %v8420_v15, %v6648_v43 }
 0x44d   : > { %v6909_v49 = vpop.eup %5118  ;;  %v1796_v35 = vmul.f32 1.442695, %v1694_v62  ;;  %v1695_v62 = vsub.f32 %v8423_v56, %v6694_v58 }
 0x44e   : > { %v6911_v5 = vpop.eup %5120  ;;  %v1959_v47 = vsel %vm1463_vm2, %v6909_v49, 0.0 }
 0x44f   : > { %v1884_v34 = vsel %vm1463_vm2, %v6911_v5, 0.0  ;;  %5124 = vpow2.f32 %v1796_v35  ;;  %v1798_v15 = vmul.f32 1.442695, %v1695_v62 }
 0x451   : > { %1957 = vadd.xlane.f32.xlu2 %v1956_v36  ;;  %1882 = vadd.xlane.f32.xlu0 %v1881_v8  ;;  %v1746_v36 = vmul.f32 1.442695, %v1669_v42  ;;  %v6923_v8 = vpop.eup %5122  ;;  %v8425_v42 = vld [vmem:[#allocation54_spill] sm:$0xff] }
 0x452   : > { %v1935_v4 = vsel %vm1463_vm2, %v6923_v8, 0.0 }
 0x453   : > { %1942 = vadd.xlane.f32.xlu1 %v1941_v18  ;;  %5126 = vpow2.f32 %v1746_v36 }
 0x454   : > { %4707 = vmatmul.msk.f32.gmra.mxu0 %vm1463_vm2, %v2126_v51  ;;  %v6925_v51 = vpop.f32.mrf.mxu3 }
 0x455   : > { %v1596_v32 = vsel %vm1463_vm2, %v6925_v51, -inf  ;;  %v6937_v16 = vpop.eup %5124 }
 0x456   : > { %v6901_v60 = vpop.xlane.xlu1 %1876 }
 0x459   : > { %1933 = vadd.xlane.f32.xlu2 %v1932_v1  ;;  %1594 = vmax.xlane.f32.xlu0 %v1593_v48  ;;  %v8422_v1 = vld [vmem:[#allocation31_spill] sm:$0xff]  ;;  %v6940_v43 = vpop.eup %5126 }
 0x45a   : > { %v4963_v48 = vpack.i.bf16 %v8422_v1, %v8421_v57  ;;  %v1887_v35 = vsel %vm1463_vm2, %v6940_v43, 0.0 }
 0x45c   : > { %4708 = vmatmul.msk.f32.gmra.mxu0 %vm1463_vm2, %v2127_v54  ;;  %v1780_v54 = vmul.f32 1.442695, %v1686_v40  ;;  %v6955_v58 = vpop.f32.mrf.mxu3 }
 0x45e   : > { %v6915_v63 = vpop.xlane.xlu1 %1633  ;;  %v6929_v12 = vpop.xlane.xlu0 %1585  ;;  %5128 = vpow2.f32 %v1780_v54 }
 0x45f   : > { %5130 = vrcp.f32 %v6718_v30 }
 0x460   : > { %5132 = vpow2.f32 %v1798_v15 }
 0x461   : > { %1960 = vadd.xlane.f32.xlu2 %v1959_v47  ;;  %1885 = vadd.xlane.f32.xlu0 %v1884_v34  ;;  %v1670_v47 = vsub.f32 %v8425_v42, %v8424_v27  ;;  %v1962_v34 = vsel %vm1463_vm2, %v6937_v16, 0.0 }
 0x463   : > { %v1748_v40 = vmul.f32 1.442695, %v1670_v47 }
 0x465   : > { %5134 = vpow2.f32 %v1748_v40 }
 0x466   : > { %v1928_v18 = vpop.xlane.xlu1 %1927  ;;  %v1997_v36 = vpop.xlane.xlu0 %1996  ;;  %5136 = vrcp.f32 %v6729_v10 }
 0x469   : > { %1936 = vadd.xlane.f32.xlu2 %v1935_v4  ;;  %1597 = vmax.xlane.f32.xlu0 %v1596_v32  ;;  %v6953_v4 = vpop.eup %5128 }
 0x46a   : > { %v1938_v57 = vsel %vm1463_vm2, %v6953_v4, 0.0  ;;  %v5131_v1 = vpop.eup %5130 }
 0x46b   : > { %v2128_v27 = vmul.f32 %v5131_v1, %v6600_v6  ;;  %v6965_v42 = vpop.eup %5132 }
 0x46c   : > { %4964 = vrot.lane.b32.xlu1 %v4963_v48, %s5372_s23  ;;  %v1599_v48 = vsel %vm1463_vm2, %v6955_v58, -inf  ;;  %v6968_v47 = vpop.eup %5134 }
 0x46d   : > { %v5137_v6 = vpop.eup %5136  ;;  %v1890_v15 = vsel %vm1463_vm2, %v6968_v47, 0.0 }
 0x46e   : > { %v6944_v2 = vpop.xlane.xlu1 %1999 }
 0x471   : > { %1963 = vadd.xlane.f32.xlu2 %v1962_v34  ;;  %1888 = vadd.xlane.f32.xlu0 %v1887_v35  ;;  %v1711_v34 = vsub.f32 %v6683_v20, %v6819_v17  ;;  %v1965_v35 = vsel %vm1463_vm2, %v6965_v42, 0.0 }
 0x476   : > { %v6957_v32 = vpop.xlane.xlu1 %1954 }
 0x479   : > { %1939 = vadd.xlane.f32.xlu2 %v1938_v57  ;;  %1600 = vmax.xlane.f32.xlu0 %v1599_v48  ;;  %v4950_v54 = vpop.permute.xlu0 %4949  ;;  %v1830_v57 = vmul.f32 1.442695, %v1711_v34 }
 0x47a   : > { %v4952_v30 = vunpack.i.h.bf16 %v4950_v54  ;;  %v4951_v56 = vunpack.i.l.bf16 %v4950_v54  ;;  %v6981_v54 = vpop.f32.mrf.mxu3 }
 0x47b   : > { %v1925_v62 = vpop.xlane.xlu2 %1924 }
 0x47c   : > { %5138 = vrcp.f32 %v1925_v62  ;;  %2319 = vmatpush.msra.mxu3 %v4951_v56  ;;  %2498 = vmatpush.msrb.mxu1 %v4952_v30  ;;  %v8426_v30 = vld [vmem:[#allocation21_spill] sm:$0xff] }
 0x47d   : > { %5140 = vrcp.f32 %v6737_v46  ;;  %4709 = vmatmul.msk.f32.vlgmr.msrb.gmra.mxu1 %vm1463_vm2, %v2128_v27  ;;  %v2112_v56 = vmul.f32 %v5137_v6, %v8426_v30 }
 0x47e   : > { %v6973_v10 = vpop.xlane.xlu1 %1591  ;;  %5142 = vrcp.f32 %v1928_v18  ;;  %v1671_v18 = vsub.f32 %v6395_v55, %v6817_v61 }
 0x47f   : > { %5144 = vrcp.f32 %v6901_v60 }
 0x480   : > { %5146 = vrcp.f32 %v1997_v36  ;;  %v1750_v34 = vmul.f32 1.442695, %v1671_v18 }
 0x481   : > { %1966 = vadd.xlane.f32.xlu2 %v1965_v35  ;;  %1891 = vadd.xlane.f32.xlu0 %v1890_v15  ;;  %5148 = vpow2.f32 %v1830_v57 }
 0x482   : > { %v5139_v46 = vpop.eup %5138  ;;  %5150 = vrcp.f32 %v6944_v2  ;;  %v8427_v2 = vld [vmem:[#allocation36_spill] sm:$0xff] }
 0x483   : > { %v5141_v40 = vpop.eup %5140  ;;  %v4955_v1 = vpop.permute.xlu2 %4954  ;;  %v2129_v48 = vmul.f32 %v5139_v46, %v6773_v41  ;;  %v1602_v41 = vsel %vm1463_vm2, %v6981_v54, -inf  ;;  %5152 = vpow2.f32 %v1750_v34  ;;  %v8429_v34 = vld [vmem:[#allocation33_spill] sm:$0xff] }
 0x484   : > { %v4957_v20 = vunpack.i.h.bf16 %v4955_v1  ;;  %v4956_v17 = vunpack.i.l.bf16 %v4955_v1  ;;  %v2152_v62 = vmul.f32 %v5141_v40, %v6618_v23  ;;  %v5143_v60 = vpop.eup %5142  ;;  %v7005_v40 = vpop.f32.mrf.mxu1 }
 0x485   : > { %4710 = vmatmul.msk.f32.gmra.mxu1 %vm1463_vm2, %v2129_v48  ;;  %v5145_v36 = vpop.eup %5144  ;;  %v2130_v35 = vmul.f32 %v5143_v60, %v6745_v7 }
 0x486   : > { %2320 = vmatpush.msra.mxu3 %v4957_v20  ;;  %v2003_v27 = vpop.xlane.xlu1 %2002  ;;  %2765 = vmatpush.msrb.mxu0 %v4956_v17  ;;  %v5147_v23 = vpop.eup %5146  ;;  %v2113_v55 = vmul.f32 %v5145_v36, %v6723_v33  ;;  %v8428_v33 = vld [vmem:[#allocation43_spill] sm:$0xff] }
 0x487   : > { %4693 = vmatmul.msk.f32.vlgmr.msra.gmra.mxu3 %vm1463_vm2, %v2112_v56  ;;  %4733 = vmatmul.msk.f32.vlgmr.msrb.gmra.mxu0 %vm1463_vm2, %v2152_v62  ;;  %v6993_v6 = vpop.eup %5148  ;;  %v2153_v61 = vmul.f32 %v5147_v23, %v6747_v59  ;;  %v4958_v57 = vpack.i.bf16 %v8428_v33, %v8427_v2  ;;  %5154 = vrcp.f32 %v2003_v27  ;;  %v1650_v59 = vsel %vm1463_vm2, %v7005_v40, -inf }
 0x488   : > { %v2013_v7 = vsel %vm1463_vm2, %v6993_v6, 0.0  ;;  %v5151_v46 = vpop.eup %5150 }
 0x489   : > { %1603 = vmax.xlane.f32.xlu2 %v1602_v41  ;;  %v7009_v1 = vpop.eup %5152  ;;  %v2154_v48 = vmul.f32 %v5151_v46, %v6759_v3 }
 0x48a   : > { %v1893_v17 = vsel %vm1463_vm2, %v7009_v1, 0.0 }
 0x48d   : > { %4711 = vmatmul.msk.f32.gmra.mxu1 %vm1463_vm2, %v2130_v35  ;;  %v5155_v30 = vpop.eup %5154  ;;  %v8430_v35 = vld [vmem:[#allocation48_spill] sm:$0xff] }
 0x48e   : > { %v6999_v15 = vpop.xlane.xlu1 %1639  ;;  %v2155_v56 = vmul.f32 %v5155_v30, %v6786_v22 }
 0x48f   : > { %4694 = vmatmul.msk.f32.gmra.mxu3 %vm1463_vm2, %v2113_v55  ;;  %4734 = vmatmul.msk.f32.gmra.mxu0 %vm1463_vm2, %v2153_v61  ;;  %v4978_v55 = vpack.i.bf16 %v8430_v35, %v8429_v34  ;;  %v1696_v61 = vsub.f32 %v6735_v31, %v6929_v12 }
 0x491   : > { %2014 = vadd.xlane.f32.xlu2 %v2013_v7  ;;  %v8431_v7 = vld [vmem:[#allocation47_spill] sm:$0xff] }
 0x495   : > { %4959 = vrot.lane.b32.xlu0 %v4958_v57, %s5372_s23 }
 0x496   : > { %v2006_v20 = vpop.xlane.xlu1 %2005  ;;  %1651 = vmax.xlane.f32.xlu1 %v1650_v59 }
 0x497   : > { %4735 = vmatmul.msk.f32.gmra.mxu0 %vm1463_vm2, %v2154_v48  ;;  %5156 = vrcp.f32 %v2006_v20  ;;  %v8433_v48 = vld [vmem:[#allocation27_spill] sm:$0xff]  ;;  %v8434_v20 = vld [vmem:[#allocation24_spill] sm:$0xff] }
 0x499   : > { %1894 = vadd.xlane.f32.xlu2 %v1893_v17  ;;  %v4988_v17 = vpack.i.bf16 %v8434_v20, %v8433_v48 }
 0x49d   : > { %v5157_v18 = vpop.eup %5156 }
 0x49e   : > { %v7019_v62 = vpop.xlane.xlu1 %1642  ;;  %v2156_v3 = vmul.f32 %v5157_v18, %v6800_v28  ;;  %v8432_v28 = vld [vmem:[#allocation26_spill] sm:$0xff] }
 0x49f   : > { %4736 = vmatmul.msk.f32.gmra.mxu0 %vm1463_vm2, %v2155_v56  ;;  %v4968_v46 = vpack.i.bf16 %v8432_v28, %v8431_v7  ;;  %v8436_v7 = vld [vmem:[#allocation23_spill] sm:$0xff] }
 0x4a4   : > { %v1952_v27 = vpop.xlane.xlu0 %1951 }
 0x4a5   : > { %5158 = vrcp.f32 %v1952_v27 }
 0x4a6   : > { %v2009_v41 = vpop.xlane.xlu1 %2008 }
 0x4a7   : > { %5160 = vrcp.f32 %v2009_v41  ;;  %4737 = vmatmul.msk.f32.gmra.mxu0 %vm1463_vm2, %v2156_v3 }
 0x4a8   : > { %5162 = vrcp.f32 %v6957_v32  ;;  %v1800_v32 = vmul.f32 1.442695, %v1696_v61 }
 0x4ab   : > { %v5159_v60 = vpop.eup %5158 }
 0x4ac   : > { %v1880_v36 = vpop.xlane.xlu0 %1879  ;;  %v2138_v23 = vmul.f32 %v5159_v60, %v6821_v37 }
 0x4ad   : > { %v5161_v22 = vpop.eup %5160  ;;  %5164 = vrcp.f32 %v1880_v36 }
 0x4ae   : > { %v1646_v2 = vpop.xlane.xlu1 %1645  ;;  %4719 = vmatmul.msk.f32.gmra.mxu2 %vm1463_vm2, %v2138_v23  ;;  %v2157_v33 = vmul.f32 %v5161_v22, %v6823_v26  ;;  %v5163_v37 = vpop.eup %5162  ;;  %5166 = vpow2.f32 %v1800_v32 }
 0x4af   : > { %4979 = vrot.lane.b32.xlu1 %v4978_v55, %s5372_s23  ;;  %v2139_v12 = vmul.f32 %v5163_v37, %v6767_v25 }
 0x4b0   : > { %4738 = vmatmul.msk.f32.gmra.mxu0 %vm1463_vm2, %v2157_v33 }
 0x4b1   : > { %4969 = vrot.lane.b32.xlu2 %v4968_v46, %s5372_s23 }
 0x4b3   : > { %v5165_v57 = vpop.eup %5164 }
 0x4b4   : > { %v7037_v59 = vpop.xlane.xlu0 %1636  ;;  %v2114_v31 = vmul.f32 %v5165_v57, %v6835_v53  ;;  %v7046_v30 = vpop.eup %5166 }
 0x4b5   : > { %v1968_v25 = vsel %vm1463_vm2, %v7046_v30, 0.0  ;;  %v7065_v57 = vpop.f32.mrf.mxu3 }
 0x4b6   : > { %v2012_v26 = vpop.xlane.xlu1 %2011  ;;  %4695 = vmatmul.msk.f32.gmra.mxu3 %vm1463_vm2, %v2114_v31  ;;  %4720 = vmatmul.msk.f32.gmra.mxu2 %vm1463_vm2, %v2139_v12 }
 0x4b7   : > { %5168 = vrcp.f32 %v2012_v26  ;;  %4989 = vrot.lane.b32.xlu1 %v4988_v17, %s5372_s23 }
 0x4bc   : > { %v1589_v56 = vpop.xlane.xlu2 %1588  ;;  %v1931_v18 = vpop.xlane.xlu0 %1930 }
 0x4bd   : > { %v5169_v27 = vpop.eup %5168  ;;  %5170 = vrcp.f32 %v1931_v18  ;;  %v1697_v61 = vsub.f32 %v6764_v19, %v1589_v56  ;;  %v1605_v19 = vsel %vm1463_vm2, %v7065_v57, -inf }
 0x4be   : > { %v2158_v53 = vmul.f32 %v5169_v27, %v6849_v21  ;;  %v1649_v17 = vpop.xlane.xlu1 %1648 }
 0x4bf   : > { %1969 = vadd.xlane.f32.xlu0 %v1968_v25  ;;  %v1802_v33 = vmul.f32 1.442695, %v1697_v61 }
 0x4c0   : > { %4739 = vmatmul.msk.f32.gmra.mxu0 %vm1463_vm2, %v2158_v53 }
 0x4c3   : > { %v5171_v3 = vpop.eup %5170 }
 0x4c4   : > { %v1958_v41 = vpop.xlane.xlu2 %1957  ;;  %v1883_v60 = vpop.xlane.xlu0 %1882  ;;  %v2131_v36 = vmul.f32 %v5171_v3, %v6861_v50  ;;  %v8435_v50 = vld [vmem:[#allocation37_spill] sm:$0xff] }
 0x4c5   : > { %5172 = vrcp.f32 %v1958_v41  ;;  %v4973_v28 = vpack.i.bf16 %v8436_v7, %v8435_v50 }
 0x4c6   : > { %5174 = vrcp.f32 %v1883_v60  ;;  %4712 = vmatmul.msk.f32.gmra.mxu1 %vm1463_vm2, %v2131_v36  ;;  %v1943_v7 = vpop.xlane.xlu1 %1942 }
 0x4cb   : > { %v5173_v23 = vpop.eup %5172 }
 0x4cc   : > { %v5175_v22 = vpop.eup %5174  ;;  %v1934_v34 = vpop.xlane.xlu2 %1933  ;;  %v2140_v35 = vmul.f32 %v5173_v23, %v6876_v9 }
 0x4cd   : > { %v7055_v55 = vpop.xlane.xlu0 %1594  ;;  %5176 = vrcp.f32 %v1934_v34  ;;  %v2115_v21 = vmul.f32 %v5175_v22, %v6878_v14  ;;  %v1716_v14 = vsub.f32 %v6837_v0, %v1646_v2  ;;  %v7077_v0 = vpop.f32.mrf.mxu1  ;;  %v1717_v2 = vsub.f32 %v6865_v24, %v1649_v17 }
 0x4ce   : > { %4721 = vmatmul.msk.f32.gmra.mxu2 %vm1463_vm2, %v2140_v35  ;;  %v1712_v22 = vsub.f32 %v6733_v45, %v6915_v63  ;;  %v1713_v63 = vsub.f32 %v6784_v13, %v7037_v59  ;;  %v1714_v13 = vsub.f32 %v6792_v39, %v6999_v15  ;;  %v8439_v39 = vld [vmem:[#allocation51_spill] sm:$0xff]  ;;  %v8440_v15 = vld [vmem:[#allocation46_spill] sm:$0xff] }
 0x4cf   : > { %4696 = vmatmul.msk.f32.gmra.mxu3 %vm1463_vm2, %v2115_v21  ;;  %v1840_v48 = vmul.f32 1.442695, %v1716_v14  ;;  %v1842_v25 = vmul.f32 1.442695, %v1717_v2 }
 0x4d0   : > { %v1832_v50 = vmul.f32 1.442695, %v1712_v22 }
 0x4d3   : > { %v5177_v46 = vpop.eup %5176  ;;  %4974 = vrot.lane.b32.xlu0 %v4973_v28, %s5372_s23 }
 0x4d4   : > { %v1961_v37 = vpop.xlane.xlu2 %1960  ;;  %v2132_v9 = vmul.f32 %v5177_v46, %v6895_v29 }
 0x4d5   : > { %v1886_v32 = vpop.xlane.xlu0 %1885  ;;  %5178 = vrcp.f32 %v1961_v37  ;;  %v8438_v37 = vld [vmem:[#allocation50_spill] sm:$0xff] }
 0x4d6   : > { %5180 = vrcp.f32 %v1886_v32  ;;  %4713 = vmatmul.msk.f32.gmra.mxu1 %vm1463_vm2, %v2132_v9  ;;  %v1834_v32 = vmul.f32 1.442695, %v1713_v63 }
 0x4d7   : > { %5182 = vpow2.f32 %v1802_v33  ;;  %v8437_v33 = vld [vmem:[#allocation30_spill] sm:$0xff] }
 0x4d8   : > { %v4983_v9 = vpack.i.bf16 %v8438_v37, %v8437_v33 }
 0x4da   : > { %1606 = vmax.xlane.f32.xlu2 %v1605_v19 }
 0x4db   : > { %v5179_v31 = vpop.eup %5178 }
 0x4dc   : > { %v5181_v12 = vpop.eup %5180  ;;  %v1937_v20 = vpop.xlane.xlu2 %1936  ;;  %v2141_v29 = vmul.f32 %v5179_v31, %v6909_v49  ;;  %v1653_v49 = vsel %vm1463_vm2, %v7077_v0, -inf }
 0x4dd   : > { %v7072_v26 = vpop.xlane.xlu0 %1597  ;;  %5184 = vrcp.f32 %v1937_v20  ;;  %v2116_v56 = vmul.f32 %v5181_v12, %v6911_v5  ;;  %v7075_v18 = vpop.eup %5182 }
 0x4de   : > { %4722 = vmatmul.msk.f32.gmra.mxu2 %vm1463_vm2, %v2141_v29  ;;  %5186 = vpow2.f32 %v1840_v48  ;;  %v1971_v27 = vsel %vm1463_vm2, %v7075_v18, 0.0  ;;  %v7119_v20 = vpop.f32.mrf.mxu0 }
 0x4df   : > { %4697 = vmatmul.msk.f32.gmra.mxu3 %vm1463_vm2, %v2116_v56  ;;  %v4993_v56 = vpack.i.bf16 %v8440_v15, %v8439_v39 }
 0x4e1   : > { %1654 = vmax.xlane.f32.xlu1 %v1653_v49 }
 0x4e2   : > { %1972 = vadd.xlane.f32.xlu2 %v1971_v27 }
 0x4e3   : > { %v5185_v5 = vpop.eup %5184 }
 0x4e4   : > { %v1964_v53 = vpop.xlane.xlu2 %1963  ;;  %v2133_v3 = vmul.f32 %v5185_v5, %v6923_v8  ;;  %v7087_v60 = vpop.eup %5186 }
 0x4e5   : > { %v1889_v41 = vpop.xlane.xlu0 %1888  ;;  %5188 = vrcp.f32 %v1964_v53  ;;  %v2028_v24 = vsel %vm1463_vm2, %v7087_v60, 0.0 }
 0x4e6   : > { %5190 = vrcp.f32 %v1889_v41  ;;  %4714 = vmatmul.msk.f32.gmra.mxu1 %vm1463_vm2, %v2133_v3  ;;  %v7134_v49 = vpop.f32.mrf.mxu0  ;;  %v4965_v41 = vpop.permute.xlu1 %4964 }
 0x4e7   : > { %5192 = vpow2.f32 %v1842_v25 }
 0x4e9   : > { %2029 = vadd.xlane.f32.xlu1 %v2028_v24 }
 0x4eb   : > { %v5189_v36 = vpop.eup %5188 }
 0x4ec   : > { %v5191_v23 = vpop.eup %5190  ;;  %v1940_v34 = vpop.xlane.xlu2 %1939  ;;  %v2142_v8 = vmul.f32 %v5189_v36, %v6937_v16 }
 0x4ed   : > { %v7095_v35 = vpop.xlane.xlu0 %1600  ;;  %5194 = vrcp.f32 %v1940_v34  ;;  %v2117_v21 = vmul.f32 %v5191_v23, %v6940_v43  ;;  %v7098_v61 = vpop.eup %5192  ;;  %v4966_v34 = vunpack.i.l.bf16 %v4965_v41 }
 0x4ee   : > { %4723 = vmatmul.msk.f32.gmra.mxu2 %vm1463_vm2, %v2142_v8  ;;  %v2031_v28 = vsel %vm1463_vm2, %v7098_v61, 0.0  ;;  %5196 = vrcp.f32 %v1943_v7  ;;  %v7143_v22 = vpop.f32.mrf.mxu0 }
 0x4ef   : > { %4698 = vmatmul.msk.f32.gmra.mxu3 %vm1463_vm2, %v2117_v21  ;;  %5198 = vpow2.f32 %v1832_v50  ;;  %v4967_v21 = vunpack.i.h.bf16 %v4965_v41  ;;  %v1700_v50 = vsub.f32 %v6925_v51, %v7072_v26  ;;  %v1698_v51 = vsub.f32 %v6779_v38, %v6973_v10 }
 0x4f1   : > { %2032 = vadd.xlane.f32.xlu1 %v2031_v28  ;;  %v1804_v33 = vmul.f32 1.442695, %v1698_v51 }
 0x4f3   : > { %v5195_v45 = vpop.eup %5194 }
 0x4f4   : > { %v1967_v16 = vpop.xlane.xlu2 %1966  ;;  %v2134_v43 = vmul.f32 %v5195_v45, %v6953_v4  ;;  %v5197_v14 = vpop.eup %5196 }
 0x4f5   : > { %v1892_v46 = vpop.xlane.xlu0 %1891  ;;  %5200 = vrcp.f32 %v1967_v16  ;;  %v7110_v19 = vpop.eup %5198  ;;  %v2135_v59 = vmul.f32 %v5197_v14, %v6882_v11  ;;  %v1836_v11 = vmul.f32 1.442695, %v1714_v13 }
 0x4f6   : > { %5202 = vrcp.f32 %v1892_v46  ;;  %4715 = vmatmul.msk.f32.gmra.mxu1 %vm1463_vm2, %v2134_v43  ;;  %v2016_v29 = vsel %vm1463_vm2, %v7110_v19, 0.0  ;;  %v7156_v43 = vpop.f32.mrf.mxu0  ;;  %v1808_v46 = vmul.f32 1.442695, %v1700_v50  ;;  %v7177_v13 = vpop.f32.mrf.mxu2 }
 0x4f7   : > { %5204 = vpow2.f32 %v1834_v32 }
 0x4f8   : > { %5206 = vpow2.f32 %v1836_v11 }
 0x4fa   : > { %4984 = vrot.lane.b32.xlu2 %v4983_v9, %s5372_s23 }
 0x4fb   : > { %v5201_v31 = vpop.eup %5200 }
 0x4fc   : > { %v5203_v12 = vpop.eup %5202  ;;  %v7115_v4 = vpop.xlane.xlu2 %1603  ;;  %v2143_v48 = vmul.f32 %v5201_v31, %v6965_v42  ;;  %v1699_v42 = vsub.f32 %v6897_v44, %v7055_v55  ;;  %v1715_v44 = vsub.f32 %v6813_v52, %v7019_v62 }
 0x4fd   : > { %v2118_v17 = vmul.f32 %v5203_v12, %v6968_v47  ;;  %2017 = vadd.xlane.f32.xlu0 %v2016_v29  ;;  %v7129_v2 = vpop.eup %5204  ;;  %v1702_v14 = vsub.f32 %v6981_v54, %v7115_v4 }
 0x4fe   : > { %4716 = vmatmul.msk.f32.gmra.mxu1 %vm1463_vm2, %v2135_v59  ;;  %4724 = vmatmul.msk.f32.gmra.mxu2 %vm1463_vm2, %v2143_v48  ;;  %v2019_v27 = vsel %vm1463_vm2, %v7129_v2, 0.0  ;;  %v1806_v5 = vmul.f32 1.442695, %v1699_v42  ;;  %v7138_v3 = vpop.eup %5206  ;;  %v1838_v52 = vmul.f32 1.442695, %v1715_v44  ;;  %v7166_v32 = vpop.f32.mrf.mxu0 }
 0x4ff   : > { %4699 = vmatmul.msk.f32.gmra.mxu3 %vm1463_vm2, %v2118_v17  ;;  %v2022_v8 = vsel %vm1463_vm2, %v7138_v3, 0.0  ;;  %v1812_v12 = vmul.f32 1.442695, %v1702_v14  ;;  %v7189_v17 = vpop.f32.mrf.mxu2 }
 0x502   : > { %4994 = vrot.lane.b32.xlu2 %v4993_v56, %s5372_s23  ;;  %s8091_s23 = scalar_lea.vmem %s8215_s14, %s4799_s26 }
 0x504   : > { %v2015_v47 = vpop.xlane.xlu2 %2014 }
 0x505   : > { %5208 = vrcp.f32 %v2015_v47  ;;  %2020 = vadd.xlane.f32.xlu0 %v2019_v27 }
 0x506   : > { %5210 = vpow2.f32 %v1806_v5  ;;  %v7183_v4 = vpop.f32.mrf.mxu0 }
 0x507   : > { %v4960_v25 = vpop.permute.xlu0 %4959  ;;  %v7199_v42 = vpop.f32.mrf.mxu2 }
 0x508   : > { %v4961_v53 = vunpack.i.l.bf16 %v4960_v25  ;;  %v4962_v36 = vunpack.i.h.bf16 %v4960_v25 }
 0x509   : > { %v1652_v31 = vpop.xlane.xlu1 %1651 }
 0x50a   : > { %2669 = vmatpush.msra.mxu2 %v4961_v53  ;;  %4813 = vmatpush.msrb.mxu3 %v4961_v53  ;;  %v1718_v10 = vsub.f32 %v7005_v40, %v1652_v31 }
 0x50b   : > { %v5209_v24 = vpop.eup %5208 }
 0x50c   : > { %v1895_v55 = vpop.xlane.xlu2 %1894  ;;  %v2159_v23 = vmul.f32 %v5209_v24, %v6993_v6  ;;  %2670 = vmatpush.msra.mxu2 %v4962_v36  ;;  %4814 = vmatpush.msrb.mxu3 %v4962_v36  ;;  %v7148_v62 = vpop.eup %5210  ;;  %v1844_v59 = vmul.f32 1.442695, %v1718_v10 }
 0x50d   : > { %5212 = vrcp.f32 %v1895_v55  ;;  %2023 = vadd.xlane.f32.xlu0 %v2022_v8  ;;  %v1977_v16 = vsel %vm1463_vm2, %v7148_v62, 0.0 }
 0x50e   : > { %4740 = vmatmul.msk.f32.gmra.mxu0 %vm1463_vm2, %v2159_v23  ;;  %2671 = vmatpush.msra.mxu2 %v4966_v34  ;;  %5214 = vpow2.f32 %v1838_v52  ;;  %v7195_v56 = vpop.f32.mrf.mxu0 }
 0x50f   : > { %4815 = vmatpush.msrb.mxu3 %v4966_v34  ;;  %5216 = vpow2.f32 %v1808_v46  ;;  %v7203_v5 = vpop.f32.mrf.mxu2 }
 0x510   : > { %2672 = vmatpush.msra.mxu2 %v4967_v21  ;;  %5218 = vpow2.f32 %v1804_v33 }
 0x511   : > { %4816 = vmatpush.msrb.mxu3 %v4967_v21 }
 0x513   : > { %v5213_v6 = vpop.eup %5212 }
 0x514   : > { %v4970_v7 = vpop.permute.xlu2 %4969  ;;  %v2119_v28 = vmul.f32 %v5213_v6, %v7009_v1  ;;  %v7160_v26 = vpop.eup %5214  ;;  %v1701_v1 = vsub.f32 %v6955_v58, %v7095_v35 }
 0x515   : > { %v4972_v45 = vunpack.i.h.bf16 %v4970_v7  ;;  %v4971_v63 = vunpack.i.l.bf16 %v4970_v7  ;;  %1978 = vadd.xlane.f32.xlu0 %v1977_v16  ;;  %v2025_v37 = vsel %vm1463_vm2, %v7160_v26, 0.0  ;;  %v7170_v38 = vpop.eup %5216 }
 0x516   : > { %4700 = vmatmul.msk.f32.gmra.mxu3 %vm1463_vm2, %v2119_v28  ;;  %v1810_v9 = vmul.f32 1.442695, %v1701_v1  ;;  %v1980_v58 = vsel %vm1463_vm2, %v7170_v38, 0.0  ;;  %v7175_v35 = vpop.eup %5218  ;;  %v7201_v27 = vpop.f32.mrf.mxu0 }
 0x517   : > { %2673 = vmatpush.msra.mxu2 %v4972_v45  ;;  %4817 = vmatpush.msrb.mxu3 %v4972_v45  ;;  %v1974_v54 = vsel %vm1463_vm2, %v7175_v35, 0.0  ;;  %v7207_v55 = vpop.f32.mrf.mxu2 }
 0x518   : > { %2847 = vmatpush.msra.mxu1 %v4971_v63  ;;  %5220 = vpow2.f32 %v1810_v9 }
 0x519   : > { %5222 = vpow2.f32 %v1812_v12 }
 0x51a   : > { %5224 = vpow2.f32 %v1844_v59 }
 0x51d   : > { %2026 = vadd.xlane.f32.xlu0 %v2025_v37 }
 0x51e   : > { %v7179_v48 = vpop.eup %5220  ;;  %v7205_v41 = vpop.f32.mrf.mxu0 }
 0x51f   : > { %v1983_v40 = vsel %vm1463_vm2, %v7179_v48, 0.0  ;;  %v7187_v29 = vpop.eup %5222  ;;  %v7212_v50 = vpop.f32.mrf.mxu2 }
 0x520   : > { %v7191_v39 = vpop.eup %5224  ;;  %v1986_v15 = vsel %vm1463_vm2, %v7187_v29, 0.0 }
 0x521   : > { %v2034_v11 = vsel %vm1463_vm2, %v7191_v39, 0.0  ;;  %v4980_v25 = vpop.permute.xlu1 %4979 }
 0x522   : > { %v4982_v44 = vunpack.i.h.bf16 %v4980_v25  ;;  %v4981_v23 = vunpack.i.l.bf16 %v4980_v25 }
 0x525   : > { %1981 = vadd.xlane.f32.xlu0 %v1980_v58 }
 0x526   : > { %v2770_v6 = vpop.f32.mrf.mxu0 }
 0x529   : > { %v4990_v34 = vpop.permute.xlu1 %4989 }
 0x52a   : > { %v4991_v14 = vunpack.i.l.bf16 %v4990_v34  ;;  %v4992_v12 = vunpack.i.h.bf16 %v4990_v34 }
 0x52b   : > { %1975 = vadd.xlane.f32.xlu2 %v1974_v54 }
 0x52d   : > { %1984 = vadd.xlane.f32.xlu0 %v1983_v40 }
 0x52e   : > { %v2773_v16 = vpop.f32.mrf.mxu0 }
 0x532   : > { %v1970_v47 = vpop.xlane.xlu0 %1969 }
 0x533   : > { %1987 = vadd.xlane.f32.xlu2 %v1986_v15 }
 0x535   : > { %2035 = vadd.xlane.f32.xlu0 %v2034_v11 }
 0x545   : > { %v4975_v53 = vpop.permute.xlu0 %4974 }
 0x546   : > { %v4977_v24 = vunpack.i.h.bf16 %v4975_v53  ;;  %v4976_v36 = vunpack.i.l.bf16 %v4975_v53 }
 0x548   : > { %2674 = vmatpush.msra.mxu2 %v4977_v24  ;;  %4818 = vmatpush.msrb.mxu3 %v4977_v24 }
 0x549   : > { %2848 = vmatpush.msra.mxu1 %v4976_v36  ;;  %2896 = vrot.lane.b32.xlu0 %v7119_v20, %s5373_s24 }
 0x54a   : > { %2675 = vmatpush.msra.mxu2 %v4982_v44  ;;  %4819 = vmatpush.msrb.mxu3 %v4982_v44 }
 0x54b   : > { %2849 = vmatpush.msra.mxu1 %v4981_v23 }
 0x54d   : > { %v1607_v8 = vpop.xlane.xlu2 %1606 }
 0x54e   : > { %v1703_v21 = vsub.f32 %v7065_v57, %v1607_v8 }
 0x550   : > { %v1814_v52 = vmul.f32 1.442695, %v1703_v21 }
 0x551   : > { %2898 = vrot.lane.b32.xlu0 %v7134_v49, %s5373_s24  ;;  %v7222_v49 = vpop.f32.mrf.mxu2 }
 0x552   : > { %5226 = vpow2.f32 %v1814_v52 }
 0x554   : > { %v1655_v7 = vpop.xlane.xlu1 %1654 }
 0x555   : > { %v1973_v28 = vpop.xlane.xlu2 %1972  ;;  %v1719_v45 = vsub.f32 %v7077_v0, %v1655_v7 }
 0x556   : > { %5228 = vrcp.f32 %v1973_v28 }
 0x557   : > { %5230 = vrcp.f32 %v1970_v47  ;;  %v1846_v63 = vmul.f32 1.442695, %v1719_v45 }
 0x558   : > { %v7217_v20 = vpop.eup %5226 }
 0x559   : > { %v1989_v57 = vsel %vm1463_vm2, %v7217_v20, 0.0  ;;  %5232 = vpow2.f32 %v1846_v63  ;;  %3026 = vrot.lane.b32.xlu0 %v2770_v6, %s5374_s25  ;;  %v7233_v59 = vpop.f32.mrf.mxu2 }
 0x55a   : > { %1990 = vadd.xlane.f32.xlu1 %v1989_v57 }
 0x55c   : > { %v5229_v46 = vpop.eup %5228  ;;  %v2030_v28 = vpop.xlane.xlu1 %2029 }
 0x55d   : > { %v4985_v51 = vpop.permute.xlu2 %4984  ;;  %v5231_v1 = vpop.eup %5230  ;;  %v2145_v37 = vmul.f32 %v5229_v46, %v7075_v18 }
 0x55e   : > { %v4987_v0 = vunpack.i.h.bf16 %v4985_v51  ;;  %v4986_v33 = vunpack.i.l.bf16 %v4985_v51  ;;  %v2144_v31 = vmul.f32 %v5231_v1, %v7046_v30  ;;  %v2776_v18 = vpop.f32.mrf.mxu0 }
 0x55f   : > { %v7225_v9 = vpop.eup %5232 }
 0x560   : > { %2676 = vmatpush.msra.mxu2 %v4987_v0  ;;  %4820 = vmatpush.msrb.mxu3 %v4987_v0  ;;  %v2037_v10 = vsel %vm1463_vm2, %v7225_v9, 0.0 }
 0x561   : > { %2850 = vmatpush.msra.mxu1 %v4986_v33  ;;  %4726 = vmatmul.msk.f32.vlgmr.msrb.gmra.mxu3 %vm1463_vm2, %v2145_v37  ;;  %v2589_v40 = vpop.f32.mrf.mxu2 }
 0x562   : > { %2038 = vadd.xlane.f32.xlu2 %v2037_v10  ;;  %3028 = vrot.lane.b32.xlu0 %v2773_v16, %s5374_s25 }
 0x563   : > { %4725 = vmatmul.msk.f32.vlgmr.msra.gmra.mxu2 %vm1463_vm2, %v2144_v31  ;;  %2851 = vmatpush.msra.mxu1 %v4991_v14  ;;  %v7276_v31 = vpop.f32.mrf.mxu3 }
 0x564   : > { %v2033_v57 = vpop.xlane.xlu1 %2032 }
 0x565   : > { %2852 = vmatpush.msra.mxu1 %v4992_v12  ;;  %v4995_v58 = vpop.permute.xlu2 %4994 }
 0x566   : > { %v4996_v54 = vunpack.i.l.bf16 %v4995_v58  ;;  %v4997_v30 = vunpack.i.h.bf16 %v4995_v58  ;;  %v2779_v15 = vpop.f32.mrf.mxu0 }
 0x568   : > { %2853 = vmatpush.msra.mxu1 %v4996_v54 }
 0x569   : > { %v2592_v25 = vpop.f32.mrf.mxu2 }
 0x56a   : > { %3030 = vrot.lane.b32.xlu0 %v2776_v18, %s5374_s25  ;;  %2854 = vmatpush.msra.mxu1 %v4997_v30 }
 0x56b   : > { %v7283_v18 = vpop.f32.mrf.mxu3 }
 0x56e   : > { %v2782_v53 = vpop.f32.mrf.mxu0 }
 0x570   : > { %v2018_v11 = vpop.xlane.xlu0 %2017 }
 0x571   : > { %5234 = vrcp.f32 %v2018_v11  ;;  %v2595_v23 = vpop.f32.mrf.mxu2  ;;  %v3124_v11 = vld [vmem:[%s8205_s4 + $0x10] sm:$0xff] }
 0x572   : > { %3032 = vrot.lane.b32.xlu0 %v2779_v15, %s5374_s25 }
 0x573   : > { %2960 = vrot.lane.b32.xlu1 %v2589_v40, %s5375_s27  ;;  %v7288_v30 = vpop.f32.mrf.mxu3 }
 0x576   : > { %v2785_v34 = vpop.f32.mrf.mxu0 }
 0x577   : > { %v5235_v47 = vpop.eup %5234 }
 0x578   : > { %v2160_v24 = vmul.f32 %v5235_v47, %v7110_v19  ;;  %v2021_v36 = vpop.xlane.xlu0 %2020 }
 0x579   : > { %5236 = vrcp.f32 %v2021_v36  ;;  %v2598_v6 = vpop.f32.mrf.mxu2 }
 0x57a   : > { %3024 = vrot.lane.b32.xlu2 %v7205_v41, %s5374_s25  ;;  %3034 = vrot.lane.b32.xlu0 %v2782_v53, %s5374_s25 }
 0x57b   : > { %4741 = vmatmul.msk.f32.vlgmr.msra.gmra.mxu1 %vm1463_vm2, %v2160_v24  ;;  %2962 = vrot.lane.b32.xlu1 %v2592_v25, %s5375_s27  ;;  %v7299_v47 = vpop.f32.mrf.mxu3  ;;  %v3123_v25 = vld [vmem:[%s8205_s4 + $0x8] sm:$0xff]  ;;  %v3122_v24 = vld [vmem:[%s8205_s4] sm:$0xff] }
 0x57f   : > { %v5237_v44 = vpop.eup %5236 }
 0x580   : > { %v2024_v8 = vpop.xlane.xlu0 %2023  ;;  %v2161_v21 = vmul.f32 %v5237_v44, %v7129_v2 }
 0x581   : > { %5238 = vrcp.f32 %v2024_v8  ;;  %v2601_v7 = vpop.f32.mrf.mxu2 }
 0x582   : > { %2900 = vrot.lane.b32.xlu2 %v7143_v22, %s5373_s24  ;;  %3036 = vrot.lane.b32.xlu0 %v2785_v34, %s5374_s25 }
 0x583   : > { %4742 = vmatmul.msk.f32.gmra.mxu1 %vm1463_vm2, %v2161_v21  ;;  %2964 = vrot.lane.b32.xlu1 %v2595_v23, %s5375_s27  ;;  %v7310_v44 = vpop.f32.mrf.mxu3 }
 0x587   : > { %v5239_v19 = vpop.eup %5238 }
 0x588   : > { %v1979_v41 = vpop.xlane.xlu0 %1978  ;;  %v2162_v52 = vmul.f32 %v5239_v19, %v7138_v3 }
 0x589   : > { %v2604_v63 = vpop.f32.mrf.mxu2 }
 0x58a   : > { %2902 = vrot.lane.b32.xlu2 %v7156_v43, %s5373_s24 }
 0x58b   : > { %4743 = vmatmul.msk.f32.gmra.mxu1 %vm1463_vm2, %v2162_v52  ;;  %v2788_v2 = vpop.f32.mrf.mxu0  ;;  %2966 = vrot.lane.b32.xlu1 %v2598_v6, %s5375_s27  ;;  %v7314_v19 = vpop.f32.mrf.mxu3 }
 0x58c   : > { %3038 = vrot.lane.b32.xlu0 %v2788_v2, %s5374_s25 }
 0x590   : > { %v2027_v22 = vpop.xlane.xlu0 %2026 }
 0x591   : > { %5240 = vrcp.f32 %v2027_v22  ;;  %v2607_v1 = vpop.f32.mrf.mxu2 }
 0x592   : > { %2904 = vrot.lane.b32.xlu2 %v7166_v32, %s5373_s24  ;;  %5242 = vrcp.f32 %v2030_v28 }
 0x593   : > { %2968 = vrot.lane.b32.xlu1 %v2601_v7, %s5375_s27  ;;  %v7319_v22 = vpop.f32.mrf.mxu3 }
 0x597   : > { %v5241_v3 = vpop.eup %5240 }
 0x598   : > { %v1982_v45 = vpop.xlane.xlu0 %1981  ;;  %v2163_v43 = vmul.f32 %v5241_v3, %v7160_v26  ;;  %v5243_v16 = vpop.eup %5242 }
 0x599   : > { %v2164_v51 = vmul.f32 %v5243_v16, %v7087_v60  ;;  %v2610_v14 = vpop.f32.mrf.mxu2 }
 0x59a   : > { %2906 = vrot.lane.b32.xlu2 %v7183_v4, %s5373_s24  ;;  %4744 = vmatmul.msk.f32.gmra.mxu1 %vm1463_vm2, %v2163_v43 }
 0x59b   : > { %2970 = vrot.lane.b32.xlu1 %v2604_v63, %s5375_s27  ;;  %v7325_v43 = vpop.f32.mrf.mxu3 }
 0x59e   : > { %v1976_v46 = vpop.xlane.xlu2 %1975 }
 0x59f   : > { %5244 = vrcp.f32 %v1976_v46 }
 0x5a0   : > { %5246 = vrcp.f32 %v2033_v57  ;;  %v1985_v32 = vpop.xlane.xlu0 %1984 }
 0x5a1   : > { %5248 = vrcp.f32 %v1979_v41 }
 0x5a2   : > { %2908 = vrot.lane.b32.xlu2 %v7195_v56, %s5373_s24  ;;  %4745 = vmatmul.msk.f32.gmra.mxu1 %vm1463_vm2, %v2164_v51  ;;  %v2500_v56 = vpop.f32.mrf.mxu1 }
 0x5a3   : > { %2972 = vrot.lane.b32.xlu1 %v2607_v1, %s5375_s27 }
 0x5a5   : > { %v5245_v26 = vpop.eup %5244 }
 0x5a6   : > { %v5247_v4 = vpop.eup %5246  ;;  %v2146_v0 = vmul.f32 %v5245_v26, %v7175_v35  ;;  %v1988_v54 = vpop.xlane.xlu2 %1987 }
 0x5a7   : > { %v2165_v37 = vmul.f32 %v5247_v4, %v7098_v61  ;;  %v5249_v60 = vpop.eup %5248 }
 0x5a8   : > { %4727 = vmatmul.msk.f32.gmra.mxu3 %vm1463_vm2, %v2146_v0  ;;  %v2036_v33 = vpop.xlane.xlu0 %2035  ;;  %v2147_v35 = vmul.f32 %v5249_v60, %v7148_v62 }
 0x5a9   : > { %5250 = vrcp.f32 %v2036_v33 }
 0x5aa   : > { %2910 = vrot.lane.b32.xlu2 %v7201_v27, %s5373_s24  ;;  %4746 = vmatmul.msk.f32.gmra.mxu1 %vm1463_vm2, %v2165_v37  ;;  %5252 = vrcp.f32 %v1982_v45  ;;  %v2503_v27 = vpop.f32.mrf.mxu1 }
 0x5ab   : > { %2974 = vrot.lane.b32.xlu1 %v2610_v14, %s5375_s27  ;;  %5254 = vrcp.f32 %v1985_v32 }
 0x5ac   : > { %5256 = vrcp.f32 %v1988_v54 }
 0x5af   : > { %v5251_v10 = vpop.eup %5250 }
 0x5b0   : > { %4728 = vmatmul.msk.f32.gmra.mxu3 %vm1463_vm2, %v2147_v35  ;;  %v2166_v61 = vmul.f32 %v5251_v10, %v7191_v39  ;;  %v5253_v12 = vpop.eup %5252 }
 0x5b1   : > { %v2148_v58 = vmul.f32 %v5253_v12, %v7170_v38  ;;  %v5255_v62 = vpop.eup %5254  ;;  %v3125_v38 = vld [vmem:[%s8205_s4 + $0x18] sm:$0xff] }
 0x5b2   : > { %2912 = vrot.lane.b32.xlu2 %v2500_v56, %s5373_s24  ;;  %4747 = vmatmul.msk.f32.gmra.mxu1 %vm1463_vm2, %v2166_v61  ;;  %v2149_v39 = vmul.f32 %v5255_v62, %v7179_v48  ;;  %v2506_v40 = vpop.f32.mrf.mxu1  ;;  %v5257_v15 = vpop.eup %5256 }
 0x5b3   : > { %3190 = vmatpush.msrb.mxu2 %v3125_v38  ;;  %v2150_v48 = vmul.f32 %v5257_v15, %v7187_v29 }
 0x5b5   : > { %3191 = vmatpush.msrb.mxu2 %v3124_v11 }
 0x5b7   : > { %3192 = vmatpush.msrb.mxu2 %v3123_v25 }
 0x5b8   : > { %4729 = vmatmul.msk.f32.gmra.mxu3 %vm1463_vm2, %v2148_v58 }
 0x5b9   : > { %3193 = vmatpush.msrb.mxu2 %v3122_v24 }
 0x5ba   : > { %2914 = vrot.lane.b32.xlu2 %v2503_v27, %s5373_s24  ;;  %v2509_v53 = vpop.f32.mrf.mxu1 }
 0x5bb   : > { %v2897_v23 = vpop.permute.xlu0 %2896 }
 0x5bc   : > { %v3072_v3 = vsel %vm766_vm1, %v7177_v13, %v2897_v23 }
 0x5c0   : > { %4730 = vmatmul.msk.f32.gmra.mxu3 %vm1463_vm2, %v2149_v39 }
 0x5c2   : > { %2916 = vrot.lane.b32.xlu2 %v2506_v40, %s5373_s24  ;;  %v2512_v29 = vpop.f32.mrf.mxu1 }
 0x5c3   : > { %v2899_v52 = vpop.permute.xlu0 %2898 }
 0x5c4   : > { %v3073_v32 = vsel %vm766_vm1, %v7189_v17, %v2899_v52 }
 0x5c8   : > { %4731 = vmatmul.msk.f32.gmra.mxu3 %vm1463_vm2, %v2150_v48 }
 0x5ca   : > { %2918 = vrot.lane.b32.xlu2 %v2509_v53, %s5373_s24  ;;  %v2515_v41 = vpop.f32.mrf.mxu1 }
 0x5cd   : > { %v1991_v36 = vpop.xlane.xlu1 %1990 }
 0x5ce   : > { %5258 = vrcp.f32 %v1991_v36 }
 0x5d2   : > { %2920 = vrot.lane.b32.xlu2 %v2512_v29, %s5373_s24  ;;  %v2518_v28 = vpop.f32.mrf.mxu1 }
 0x5d4   : > { %v5259_v34 = vpop.eup %5258 }
 0x5d5   : > { %v2039_v8 = vpop.xlane.xlu2 %2038  ;;  %v2151_v21 = vmul.f32 %v5259_v34, %v7217_v20  ;;  %v3027_v20 = vpop.permute.xlu0 %3026 }
 0x5d6   : > { %5260 = vrcp.f32 %v2039_v8 }
 0x5d7   : > { %4732 = vmatmul.msk.f32.gmra.mxu3 %vm1463_vm2, %v2151_v21 }
 0x5da   : > { %2922 = vrot.lane.b32.xlu2 %v2515_v41, %s5373_s24  ;;  %v2521_v46 = vpop.f32.mrf.mxu1 }
 0x5dc   : > { %v5261_v6 = vpop.eup %5260 }
 0x5dd   : > { %v2167_v2 = vmul.f32 %v5261_v6, %v7225_v9  ;;  %v3025_v7 = vpop.permute.xlu2 %3024  ;;  %v3029_v51 = vpop.permute.xlu0 %3028 }
 0x5df   : > { %4748 = vmatmul.msk.f32.gmra.mxu1 %vm1463_vm2, %v2167_v2 }
 0x5e2   : > { %2924 = vrot.lane.b32.xlu2 %v2518_v28, %s5373_s24 }
 0x5e4   : > { %v2681_v1 = vpop.f32.mrf.mxu3 }
 0x5e5   : > { %v2961_v45 = vpop.permute.xlu1 %2960  ;;  %v2901_v16 = vpop.permute.xlu2 %2900 }
 0x5e6   : > { %v2678_v63 = vpop.f32.mrf.mxu2  ;;  %v3089_v9 = vsel %vm3088_vm3, %v3072_v3, %v2961_v45  ;;  %v3074_v33 = vsel %vm766_vm1, %v7199_v42, %v2901_v16  ;;  %v3031_v60 = vpop.permute.xlu0 %3030 }
 0x5e7   : > { %v3106_v57 = vsel %vm3105_vm4, %v3089_v9, %v3025_v7  ;;  %2976 = vrot.lane.b32.xlu1 %v2678_v63, %s5375_s27 }
 0x5e8   : > { %4749 = vmatmul.msk.f32.vlgmr.msrb.gmra.mxu2 %vm524_vm0, %v3106_v57 }
 0x5ea   : > { %2926 = vrot.lane.b32.xlu2 %v2521_v46, %s5373_s24 }
 0x5ed   : > { %v2963_v13 = vpop.permute.xlu1 %2962  ;;  %v2903_v0 = vpop.permute.xlu2 %2902 }
 0x5ee   : > { %v3090_v26 = vsel %vm3088_vm3, %v3073_v32, %v2963_v13  ;;  %v3075_v10 = vsel %vm766_vm1, %v7203_v5, %v2903_v0  ;;  %v3033_v58 = vpop.permute.xlu0 %3032  ;;  %v7385_v32 = vld [vmem:[%s8206_s5] ss:$0 sm:$0xff] }
 0x5ef   : > { %2978 = vrot.lane.b32.xlu1 %v2681_v1, %s5375_s27  ;;  %v3107_v4 = vsel %vm3105_vm4, %v3090_v26, %v3027_v20 }
 0x5f0   : > { %4750 = vmatmul.msk.f32.gmra.mxu2 %vm524_vm0, %v3107_v4 }
 0x5f5   : > { %v2965_v37 = vpop.permute.xlu1 %2964  ;;  %v2905_v35 = vpop.permute.xlu2 %2904 }
 0x5f6   : > { %v3091_v14 = vsel %vm3088_vm3, %v3074_v33, %v2965_v37  ;;  %v3076_v54 = vsel %vm766_vm1, %v7207_v55, %v2905_v35  ;;  %v3035_v15 = vpop.permute.xlu0 %3034  ;;  %v8441_v33 = vld [vmem:[#allocation2_spill] sm:$0xff] }
 0x5f7   : > { %v3108_v17 = vsel %vm3105_vm4, %v3091_v14, %v3029_v51 }
 0x5f8   : > { %v2856_v56 = vpop.f32.mrf.mxu1  ;;  %4751 = vmatmul.msk.f32.gmra.mxu2 %vm524_vm0, %v3108_v17 }
 0x5f9   : > { %3040 = vrot.lane.b32.xlu0 %v2856_v56, %s5374_s25 }
 0x5fd   : > { %v2967_v61 = vpop.permute.xlu1 %2966  ;;  %v2907_v39 = vpop.permute.xlu2 %2906 }
 0x5fe   : > { %v3092_v12 = vsel %vm3088_vm3, %v3075_v10, %v2967_v61  ;;  %v3077_v11 = vsel %vm766_vm1, %v7212_v50, %v2907_v39  ;;  %v3037_v29 = vpop.permute.xlu0 %3036 }
 0x5ff   : > { %v3109_v42 = vsel %vm3105_vm4, %v3092_v12, %v3031_v60 }
 0x600   : > { %v2859_v27 = vpop.f32.mrf.mxu1  ;;  %4752 = vmatmul.msk.f32.gmra.mxu2 %vm524_vm0, %v3109_v42 }
 0x601   : > { %3042 = vrot.lane.b32.xlu0 %v2859_v27, %s5374_s25 }
 0x605   : > { %v2969_v62 = vpop.permute.xlu1 %2968  ;;  %v2909_v53 = vpop.permute.xlu2 %2908 }
 0x606   : > { %v3093_v40 = vsel %vm3088_vm3, %v3076_v54, %v2969_v62  ;;  %v3078_v24 = vsel %vm766_vm1, %v7222_v49, %v2909_v53  ;;  %v3039_v52 = vpop.permute.xlu0 %3038  ;;  %v8443_v62 = vld [vmem:[#allocation6_spill] sm:$0xff]  ;;  %v8445_v53 = vld [vmem:[#allocation11_spill] sm:$0xff] }
 0x607   : > { %v3110_v5 = vsel %vm3105_vm4, %v3093_v40, %v3033_v58  ;;  %v8442_v58 = vld [vmem:[#allocation5_spill] sm:$0xff] }
 0x608   : > { %v2862_v38 = vpop.f32.mrf.mxu1  ;;  %4753 = vmatmul.msk.f32.gmra.mxu2 %vm524_vm0, %v3110_v5 }
 0x609   : > { %3044 = vrot.lane.b32.xlu0 %v2862_v38, %s5374_s25  ;;  %v8444_v38 = vld [vmem:[#allocation8_spill] sm:$0xff] }
 0x60d   : > { %v2971_v48 = vpop.permute.xlu1 %2970  ;;  %v2911_v50 = vpop.permute.xlu2 %2910 }
 0x60e   : > { %v3094_v25 = vsel %vm3088_vm3, %v3077_v11, %v2971_v48  ;;  %v3079_v21 = vsel %vm766_vm1, %v7233_v59, %v2911_v50 }
 0x60f   : > { %v3111_v55 = vsel %vm3105_vm4, %v3094_v25, %v3035_v15 }
 0x610   : > { %4754 = vmatmul.msk.f32.gmra.mxu2 %vm524_vm0, %v3111_v55 }
 0x615   : > { %v2973_v36 = vpop.permute.xlu1 %2972  ;;  %v2913_v16 = vpop.permute.xlu2 %2912 }
 0x616   : > { %v3095_v23 = vsel %vm3088_vm3, %v3078_v24, %v2973_v36  ;;  %v3080_v13 = vsel %vm766_vm1, %v7276_v31, %v2913_v16 }
 0x617   : > { %v3112_v34 = vsel %vm3105_vm4, %v3095_v23, %v3037_v29  ;;  %v2865_v8 = vpop.f32.mrf.mxu1 }
 0x618   : > { %4755 = vmatmul.msk.f32.gmra.mxu2 %vm524_vm0, %v3112_v34  ;;  %3046 = vrot.lane.b32.xlu0 %v2865_v8, %s5374_s25  ;;  %v8446_v8 = vld [vmem:[#allocation13_spill] sm:$0xff] }
 0x61d   : > { %v2975_v41 = vpop.permute.xlu1 %2974  ;;  %v2915_v14 = vpop.permute.xlu2 %2914 }
 0x61e   : > { %v3096_v6 = vsel %vm3088_vm3, %v3079_v21, %v2975_v41  ;;  %v3081_v31 = vsel %vm766_vm1, %v7283_v18, %v2915_v14 }
 0x61f   : > { %v3113_v49 = vsel %vm3105_vm4, %v3096_v6, %v3039_v52  ;;  %v2868_v2 = vpop.f32.mrf.mxu1 }
 0x620   : > { %4756 = vmatmul.msk.f32.gmra.mxu2 %vm524_vm0, %v3113_v49  ;;  %3048 = vrot.lane.b32.xlu0 %v2868_v2, %s5374_s25 }
 0x625   : > { %v2917_v29 = vpop.permute.xlu2 %2916 }
 0x626   : > { %v3082_v2 = vsel %vm766_vm1, %v7288_v30, %v2917_v29 }
 0x627   : > { %v2871_v7 = vpop.f32.mrf.mxu1 }
 0x628   : > { %3050 = vrot.lane.b32.xlu0 %v2871_v7, %s5374_s25  ;;  %v8447_v7 = vld [vmem:[#allocation14_spill] sm:$0xff] }
 0x62b   : > { %v2684_v28 = vpop.f32.mrf.mxu3 }
 0x62c   : > { %2980 = vrot.lane.b32.xlu1 %v2684_v28, %s5375_s27 }
 0x62d   : > { %v2919_v49 = vpop.permute.xlu2 %2918 }
 0x62f   : > { %v2874_v20 = vpop.f32.mrf.mxu1 }
 0x630   : > { %3052 = vrot.lane.b32.xlu0 %v2874_v20, %s5374_s25 }
 0x633   : > { %v2687_v59 = vpop.f32.mrf.mxu3 }
 0x634   : > { %2982 = vrot.lane.b32.xlu1 %v2687_v59, %s5375_s27 }
 0x635   : > { %v2921_v30 = vpop.permute.xlu2 %2920 }
 0x63b   : > { %v2690_v3 = vpop.f32.mrf.mxu3 }
 0x63c   : > { %2984 = vrot.lane.b32.xlu1 %v2690_v3, %s5375_s27 }
 0x643   : > { %v2693_v45 = vpop.f32.mrf.mxu3 }
 0x644   : > { %2986 = vrot.lane.b32.xlu1 %v2693_v45, %s5375_s27 }
 0x64b   : > { %v2696_v63 = vpop.f32.mrf.mxu3 }
 0x64c   : > { %2988 = vrot.lane.b32.xlu1 %v2696_v63, %s5375_s27 }
 0x659   : > { %v2977_v46 = vpop.permute.xlu1 %2976 }
 0x65a   : > { %v2699_v9 = vpop.f32.mrf.mxu3  ;;  %v3097_v51 = vsel %vm3088_vm3, %v3080_v13, %v2977_v46 }
 0x65b   : > { %2990 = vrot.lane.b32.xlu1 %v2699_v9, %s5375_s27  ;;  %v3083_v9 = vsel %vm766_vm1, %v7299_v47, %v2919_v49 }
 0x65c   : > { %v2877_v57 = vpop.f32.mrf.mxu1 }
 0x65d   : > { %3054 = vrot.lane.b32.xlu0 %v2877_v57, %s5374_s25 }
 0x661   : > { %v2979_v17 = vpop.permute.xlu1 %2978 }
 0x662   : > { %v3098_v56 = vsel %vm3088_vm3, %v3081_v31, %v2979_v17 }
 0x66b   : > { %v3041_v1 = vpop.permute.xlu0 %3040  ;;  %v3195_v26 = vpop.f32.mrf.mxu2 }
 0x66c   : > { %v3114_v4 = vsel %vm3105_vm4, %v3097_v51, %v3041_v1  ;;  %v3196_v0 = vadd.f32 %v7385_v32, %v3195_v26  ;;  %v3084_v51 = vsel %vm766_vm1, %v7310_v44, %v2921_v30 }
 0x66d   : > { %4757 = vmatmul.msk.f32.gmra.mxu2 %vm524_vm0, %v3114_v4 }
 0x66e   : > { %v7394_v37 = vadd.f32 %v3196_v0, %v8441_v33  ;;  %v2923_v0 = vpop.permute.xlu2 %2922 }
 0x66f   : > { %v3085_v33 = vsel %vm766_vm1, %v7314_v19, %v2923_v0  ;;  %v5376_v19 = vmov 32.0  }
 0x670   : > { %v3261_v60 = vsel %vm524_vm0, %v7394_v37, 0.0  ;;  %5262 = vrcp.f32 %v5376_v19 }
 0x671   : > { %3262 = vadd.xlane.f32.xlu2 %v3261_v60 }
 0x673   : > { %v3043_v35 = vpop.permute.xlu0 %3042  ;;  %v3198_v10 = vpop.f32.mrf.mxu2 }
 0x674   : > { %v3115_v61 = vsel %vm3105_vm4, %v3098_v56, %v3043_v35  ;;  %v3199_v42 = vadd.f32 %v7385_v32, %v3198_v10 }
 0x675   : > { %4758 = vmatmul.msk.f32.gmra.mxu2 %vm524_vm0, %v3115_v61 }
 0x676   : > { %v7406_v54 = vadd.f32 %v3199_v42, %v8442_v58  ;;  %v2925_v44 = vpop.permute.xlu2 %2924 }
 0x677   : > { %v3086_v31 = vsel %vm766_vm1, %v7319_v22, %v2925_v44 }
 0x678   : > { %v3264_v5 = vsel %vm524_vm0, %v7406_v54, 0.0 }
 0x67b   : > { %v3201_v12 = vpop.f32.mrf.mxu2  ;;  %v3045_v41 = vpop.permute.xlu0 %3044 }
 0x67c   : > { %v3202_v27 = vadd.f32 %v7385_v32, %v3201_v12 }
 0x67e   : > { %v7409_v39 = vadd.f32 %v3202_v27, %v8443_v62  ;;  %v2927_v12 = vpop.permute.xlu2 %2926  ;;  %v5263_v62 = vpop.eup %5262 }
 0x67f   : > { %v3087_v42 = vsel %vm766_vm1, %v7325_v43, %v2927_v12  ;;  %vm3314_vm5 = vweird.f32 %v5263_v62  ;;  %v8451_v12 = vld [vmem:[#allocation3_spill] sm:$0xff] }
 0x680   : > { %v3267_v11 = vsel %vm524_vm0, %v7409_v39, 0.0 }
 0x683   : > { %v3204_v18 = vpop.f32.mrf.mxu2 }
 0x684   : > { %v3205_v40 = vadd.f32 %v7385_v32, %v3204_v18 }
 0x685   : > { %3265 = vadd.xlane.f32.xlu1 %v3264_v5 }
 0x686   : > { %v7415_v15 = vadd.f32 %v3205_v40, %v8444_v38  ;;  %v3310_v40 = vmul.f32 32.0, %v5263_v62 }
 0x687   : > { %3268 = vadd.xlane.f32.xlu0 %v3267_v11 }
 0x688   : > { %v3270_v48 = vsel %vm524_vm0, %v7415_v15, 0.0  ;;  %v3311_v5 = vsub.f32 1.0, %v3310_v40 }
 0x689   : > { %3271 = vadd.xlane.f32.xlu2 %v3270_v48 }
 0x68a   : > { %v3047_v63 = vpop.permute.xlu0 %3046  ;;  %v3312_v38 = vmul.f32 %v5263_v62, %v3311_v5 }
 0x68b   : > { %v3207_v25 = vpop.f32.mrf.mxu2 }
 0x68c   : > { %v3208_v55 = vadd.f32 %v7385_v32, %v3207_v25  ;;  %v3313_v11 = vadd.f32 %v5263_v62, %v3312_v38 }
 0x68e   : > { %v7423_v24 = vadd.f32 %v3208_v55, %v8445_v53  ;;  %v7469_v48 = vsel %vm3314_vm5, %v5263_v62, %v3313_v11 }
 0x690   : > { %v3273_v36 = vsel %vm524_vm0, %v7423_v24, 0.0 }
 0x691   : > { %3274 = vadd.xlane.f32.xlu1 %v3273_v36 }
 0x692   : > { %v3049_v13 = vpop.permute.xlu0 %3048 }
 0x693   : > { %v3210_v23 = vpop.f32.mrf.mxu2 }
 0x694   : > { %v3211_v34 = vadd.f32 %v7385_v32, %v3210_v23 }
 0x696   : > { %v7429_v50 = vadd.f32 %v3211_v34, %v8446_v8  ;;  %v8448_v34 = vld [vmem:[#allocation15_spill] sm:$0xff] }
 0x698   : > { %v3276_v21 = vsel %vm524_vm0, %v7429_v50, 0.0 }
 0x699   : > { %3277 = vadd.xlane.f32.xlu0 %v3276_v21 }
 0x69a   : > { %v3051_v47 = vpop.permute.xlu0 %3050 }
 0x69b   : > { %v3213_v52 = vpop.f32.mrf.mxu2 }
 0x69c   : > { %v3214_v6 = vadd.f32 %v7385_v32, %v3213_v52 }
 0x69e   : > { %v7437_v28 = vadd.f32 %v3214_v6, %v8447_v7  ;;  %v2981_v20 = vpop.permute.xlu1 %2980 }
 0x69f   : > { %v3099_v59 = vsel %vm3088_vm3, %v3082_v2, %v2981_v20 }
 0x6a0   : > { %v3116_v3 = vsel %vm3105_vm4, %v3099_v59, %v3045_v41  ;;  %v3279_v45 = vsel %vm524_vm0, %v7437_v28, 0.0 }
 0x6a1   : > { %4759 = vmatmul.msk.f32.gmra.mxu2 %vm524_vm0, %v3116_v3  ;;  %3280 = vadd.xlane.f32.xlu1 %v3279_v45 }
 0x6a2   : > { %v3053_v35 = vpop.permute.xlu0 %3052 }
 0x6a3   : > { %v3216_v53 = vpop.f32.mrf.mxu2 }
 0x6a4   : > { %v3217_v29 = vadd.f32 %v7385_v32, %v3216_v53 }
 0x6a6   : > { %v2983_v57 = vpop.permute.xlu1 %2982  ;;  %v7480_v8 = vadd.f32 %v3217_v29, %v8448_v34 }
 0x6a7   : > { %v3100_v16 = vsel %vm3088_vm3, %v3083_v9, %v2983_v57 }
 0x6a8   : > { %v3117_v46 = vsel %vm3105_vm4, %v3100_v16, %v3047_v63  ;;  %v3282_v21 = vsel %vm524_vm0, %v7480_v8, 0.0 }
 0x6a9   : > { %4760 = vmatmul.msk.f32.gmra.mxu2 %vm524_vm0, %v3117_v46  ;;  %v8449_v46 = vld [vmem:[#allocation16_spill] sm:$0xff] }
 0x6ae   : > { %v2985_v1 = vpop.permute.xlu1 %2984 }
 0x6af   : > { %v3101_v26 = vsel %vm3088_vm3, %v3084_v51, %v2985_v1  ;;  %v8450_v1 = vld [vmem:[#allocation17_spill] sm:$0xff] }
 0x6b0   : > { %v3118_v4 = vsel %vm3105_vm4, %v3101_v26, %v3049_v13 }
 0x6b1   : > { %4761 = vmatmul.msk.f32.gmra.mxu2 %vm524_vm0, %v3118_v4 }
 0x6b6   : > { %v2987_v14 = vpop.permute.xlu1 %2986 }
 0x6b7   : > { %v3102_v17 = vsel %vm3088_vm3, %v3085_v33, %v2987_v14 }
 0x6b8   : > { %v3119_v60 = vsel %vm3105_vm4, %v3102_v17, %v3051_v47 }
 0x6b9   : > { %4762 = vmatmul.msk.f32.gmra.mxu2 %vm524_vm0, %v3119_v60 }
 0x6be   : > { %v2989_v56 = vpop.permute.xlu1 %2988 }
 0x6bf   : > { %v3103_v10 = vsel %vm3088_vm3, %v3086_v31, %v2989_v56 }
 0x6c0   : > { %v3120_v61 = vsel %vm3105_vm4, %v3103_v10, %v3053_v35 }
 0x6c1   : > { %4763 = vmatmul.msk.f32.gmra.mxu2 %vm524_vm0, %v3120_v61 }
 0x6cd   : > { %v2991_v27 = vpop.permute.xlu1 %2990 }
 0x6ce   : > { %v3104_v58 = vsel %vm3088_vm3, %v3087_v42, %v2991_v27 }
 0x6cf   : > { %v3055_v18 = vpop.permute.xlu0 %3054 }
 0x6d0   : > { %v3121_v22 = vsel %vm3105_vm4, %v3104_v58, %v3055_v18 }
 0x6d1   : > { %4764 = vmatmul.msk.f32.gmra.mxu2 %vm524_vm0, %v3121_v22  ;;  %v8452_v22 = vld [vmem:[#allocation4_spill] sm:$0xff] }
 0x6e4   : > { %v3263_v25 = vpop.xlane.xlu2 %3262 }
 0x6e5   : > { %v3316_v55 = vmul.f32 %v7469_v48, %v3263_v25  ;;  %v8453_v25 = vld [vmem:[#allocation7_spill] sm:$0xff] }
 0x6e7   : > { %v7473_v43 = vsub.f32 %v7394_v37, %v3316_v55 }
 0x6e9   : > { %v3348_v36 = vmul.f32 %v7473_v43, %v7473_v43 }
 0x6eb   : > { %v3364_v23 = vsel %vm524_vm0, %v3348_v36, 0.0 }
 0x6ec   : > { %3365 = vadd.xlane.f32.xlu2 %v3364_v23  ;;  %v8454_v23 = vld [vmem:[#allocation9_spill] sm:$0xff] }
 0x6f0   : > { %v3219_v41 = vpop.f32.mrf.mxu2 }
 0x6f1   : > { %v3220_v63 = vadd.f32 %v7385_v32, %v3219_v41  ;;  %v3661_v41 = vld [vmem:[%s8207_s6 + $0x18] sm:$0xff] }
 0x6f2   : > { %3726 = vmatpush.msra.mxu3 %v3661_v41 }
 0x6f3   : > { %v7507_v13 = vadd.f32 %v3220_v63, %v8449_v46 }
 0x6f4   : > { %3283 = vadd.xlane.f32.xlu2 %v3282_v21 }
 0x6f5   : > { %v3285_v47 = vsel %vm524_vm0, %v7507_v13, 0.0 }
 0x6f8   : > { %v3266_v52 = vpop.xlane.xlu1 %3265  ;;  %v3222_v45 = vpop.f32.mrf.mxu2 }
 0x6f9   : > { %v3317_v37 = vmul.f32 %v7469_v48, %v3266_v52  ;;  %v3660_v52 = vld [vmem:[%s8207_s6 + $0x10] sm:$0xff] }
 0x6fa   : > { %v3269_v6 = vpop.xlane.xlu0 %3268  ;;  %3727 = vmatpush.msra.mxu3 %v3660_v52 }
 0x6fb   : > { %v7486_v49 = vsub.f32 %v7406_v54, %v3317_v37  ;;  %v3318_v2 = vmul.f32 %v7469_v48, %v3269_v6  ;;  %v3659_v37 = vld [vmem:[%s8207_s6 + $0x8] sm:$0xff]  ;;  %v3658_v6 = vld [vmem:[%s8207_s6] sm:$0xff] }
 0x6fc   : > { %v3272_v7 = vpop.xlane.xlu2 %3271  ;;  %3728 = vmatpush.msra.mxu3 %v3659_v37 }
 0x6fd   : > { %v7490_v20 = vsub.f32 %v7409_v39, %v3318_v2  ;;  %v3319_v59 = vmul.f32 %v7469_v48, %v3272_v7  ;;  %v3349_v3 = vmul.f32 %v7486_v49, %v7486_v49  ;;  %v3223_v39 = vadd.f32 %v7385_v32, %v3222_v45 }
 0x6fe   : > { %3729 = vmatpush.msra.mxu3 %v3658_v6 }
 0x6ff   : > { %v7497_v9 = vsub.f32 %v7415_v15, %v3319_v59  ;;  %v3367_v54 = vsel %vm524_vm0, %v3349_v3, 0.0  ;;  %v3350_v57 = vmul.f32 %v7490_v20, %v7490_v20  ;;  %v7511_v26 = vadd.f32 %v3223_v39, %v8450_v1 }
 0x700   : > { %3368 = vadd.xlane.f32.xlu0 %v3367_v54 }
 0x701   : > { %v3370_v30 = vsel %vm524_vm0, %v3350_v57, 0.0  ;;  %v3351_v16 = vmul.f32 %v7497_v9, %v7497_v9  ;;  %v3288_v33 = vsel %vm524_vm0, %v7511_v26, 0.0 }
 0x702   : > { %3371 = vadd.xlane.f32.xlu1 %v3370_v30 }
 0x703   : > { %v3373_v15 = vsel %vm524_vm0, %v3351_v16, 0.0 }
 0x704   : > { %v3275_v51 = vpop.xlane.xlu1 %3274  ;;  %3374 = vadd.xlane.f32.xlu2 %v3373_v15 }
 0x705   : > { %v3320_v4 = vmul.f32 %v7469_v48, %v3275_v51 }
 0x707   : > { %v7515_v0 = vsub.f32 %v7423_v24, %v3320_v4  ;;  %v8455_v4 = vld [vmem:[#allocation10_spill] sm:$0xff] }
 0x708   : > { %3286 = vadd.xlane.f32.xlu0 %v3285_v47 }
 0x709   : > { %v3352_v14 = vmul.f32 %v7515_v0, %v7515_v0 }
 0x70a   : > { %3289 = vadd.xlane.f32.xlu1 %v3288_v33 }
 0x70b   : > { %v3376_v24 = vsel %vm524_vm0, %v3352_v14, 0.0  ;;  %v7589_v14 = vld [vmem:[%s8211_s10] ss:$0 sm:$0xff] }
 0x70c   : > { %v3278_v17 = vpop.xlane.xlu0 %3277 }
 0x70d   : > { %v3321_v60 = vmul.f32 %v7469_v48, %v3278_v17 }
 0x70f   : > { %v7525_v44 = vsub.f32 %v7429_v50, %v3321_v60 }
 0x710   : > { %3377 = vadd.xlane.f32.xlu0 %v3376_v24 }
 0x711   : > { %v3353_v31 = vmul.f32 %v7525_v44, %v7525_v44 }
 0x713   : > { %v3379_v56 = vsel %vm524_vm0, %v3353_v31, 0.0  ;;  %v7595_v31 = vld [vmem:[%s8212_s11] ss:$0 sm:$0xff] }
 0x714   : > { %3380 = vadd.xlane.f32.xlu1 %v3379_v56  ;;  %v3281_v35 = vpop.xlane.xlu1 %3280 }
 0x715   : > { %v3322_v61 = vmul.f32 %v7469_v48, %v3281_v35 }
 0x717   : > { %v7537_v50 = vsub.f32 %v7437_v28, %v3322_v61 }
 0x719   : > { %v3354_v18 = vmul.f32 %v7537_v50, %v7537_v50 }
 0x71b   : > { %v3382_v38 = vsel %vm524_vm0, %v3354_v18, 0.0 }
 0x724   : > { %v3225_v10 = vpop.f32.mrf.mxu2 }
 0x725   : > { %v3226_v19 = vadd.f32 %v7385_v32, %v3225_v10 }
 0x727   : > { %v7534_v42 = vadd.f32 %v3226_v19, %v8451_v12 }
 0x729   : > { %v3291_v27 = vsel %vm524_vm0, %v7534_v42, 0.0 }
 0x72a   : > { %3292 = vadd.xlane.f32.xlu2 %v3291_v27 }
 0x72c   : > { %v3228_v58 = vpop.f32.mrf.mxu2 }
 0x72d   : > { %v3229_v62 = vadd.f32 %v7385_v32, %v3228_v58 }
 0x72f   : > { %v7545_v40 = vadd.f32 %v3229_v62, %v8452_v22 }
 0x731   : > { %v3294_v5 = vsel %vm524_vm0, %v7545_v40, 0.0 }
 0x732   : > { %3295 = vadd.xlane.f32.xlu0 %v3294_v5  ;;  %3383 = vadd.xlane.f32.xlu2 %v3382_v38 }
 0x734   : > { %v3231_v28 = vpop.f32.mrf.mxu2 }
 0x735   : > { %v3232_v11 = vadd.f32 %v7385_v32, %v3231_v28 }
 0x737   : > { %v7552_v55 = vadd.f32 %v3232_v11, %v8453_v25 }
 0x739   : > { %v3297_v53 = vsel %vm524_vm0, %v7552_v55, 0.0 }
 0x73a   : > { %3298 = vadd.xlane.f32.xlu1 %v3297_v53 }
 0x73c   : > { %v3234_v36 = vpop.f32.mrf.mxu2 }
 0x73d   : > { %v3235_v29 = vadd.f32 %v7385_v32, %v3234_v36 }
 0x73f   : > { %v7558_v34 = vadd.f32 %v3235_v29, %v8454_v23 }
 0x741   : > { %v3300_v21 = vsel %vm524_vm0, %v7558_v34, 0.0 }
 0x742   : > { %3301 = vadd.xlane.f32.xlu2 %v3300_v21 }
 0x744   : > { %v3237_v57 = vpop.f32.mrf.mxu2 }
 0x745   : > { %v3238_v46 = vadd.f32 %v7385_v32, %v3237_v57 }
 0x747   : > { %v7584_v47 = vadd.f32 %v3238_v46, %v8455_v4 }
 0x749   : > { %v3303_v61 = vsel %vm524_vm0, %v7584_v47, 0.0 }
 0x754   : > { %v3240_v25 = vpop.f32.mrf.mxu2 }
 0x755   : > { %v3241_v52 = vadd.f32 %v7385_v32, %v3240_v25  ;;  %v8456_v32 = vld [vmem:[#allocation12_spill] sm:$0xff] }
 0x75f   : > { %v3366_v2 = vpop.xlane.xlu2 %3365 }
 0x760   : > { %v3412_v7 = vmul.f32 %v3366_v2, %v7469_v48 }
 0x762   : > { %v3428_v59 = vadd.f32 1e-05, %v3412_v7 }
 0x764   : > { %5264 = vrsqrt.f32 %v3428_v59  ;;  %vm3450_vm7 = vweird.f32 %v3428_v59 }
 0x767   : > { %v3284_v3 = vpop.xlane.xlu2 %3283 }
 0x768   : > { %v3323_v45 = vmul.f32 %v7469_v48, %v3284_v3 }
 0x76a   : > { %v5265_v63 = vpop.eup %5264  ;;  %v7577_v54 = vsub.f32 %v7480_v8, %v3323_v45 }
 0x76b   : > { %v3445_v39 = vmul.f32 %v5265_v63, %v3428_v59  ;;  %vm3451_vm6 = vweird.f32 %v5265_v63 }
 0x76c   : > { %v3355_v30 = vmul.f32 %v7577_v54, %v7577_v54  ;;  %vm3452_vm8 = vmor %vm3450_vm7, %vm3451_vm6 }
 0x76d   : > { %v3446_v16 = vmul.f32 %v5265_v63, %v3445_v39  ;;  %v7629_v39 = vadd.f32 %v3241_v52, %v8456_v32 }
 0x76e   : > { %v3385_v15 = vsel %vm524_vm0, %v3355_v30, 0.0 }
 0x76f   : > { %v3447_v51 = vmul.f32 0.5, %v3446_v16  ;;  %3386 = vadd.xlane.f32.xlu0 %v3385_v15 }
 0x771   : > { %v3448_v1 = vsub.f32 1.5, %v3447_v51 }
 0x773   : > { %v3449_v33 = vmul.f32 %v5265_v63, %v3448_v1  ;;  %v3369_v8 = vpop.xlane.xlu0 %3368 }
 0x774   : > { %v3413_v17 = vmul.f32 %v3369_v8, %v7469_v48 }
 0x775   : > { %v3453_v60 = vsel %vm3452_vm8, %v5265_v63, %v3449_v33  ;;  %v3372_v24 = vpop.xlane.xlu1 %3371 }
 0x776   : > { %v3604_v56 = vmul.f32 %v3453_v60, %v7473_v43  ;;  %v3429_v35 = vadd.f32 1e-05, %v3413_v17  ;;  %v3414_v10 = vmul.f32 %v3372_v24, %v7469_v48  ;;  %v3306_v24 = vsel %vm524_vm0, %v7629_v39, 0.0 }
 0x777   : > { %3304 = vadd.xlane.f32.xlu0 %v3303_v61  ;;  %v3375_v19 = vpop.xlane.xlu2 %3374 }
 0x778   : > { %v3623_v12 = vmul.f32 %v7589_v14, %v3604_v56  ;;  %5266 = vrsqrt.f32 %v3429_v35  ;;  %v3430_v27 = vadd.f32 1e-05, %v3414_v10  ;;  %v3415_v58 = vmul.f32 %v3375_v19, %v7469_v48 }
 0x779   : > { %vm3460_vm10 = vweird.f32 %v3429_v35 }
 0x77a   : > { %v7604_v62 = vadd.f32 %v7595_v31, %v3623_v12  ;;  %5268 = vrsqrt.f32 %v3430_v27  ;;  %v7606_v18 = vadd.f32 1e-05, %v3415_v58  ;;  %vm3470_vm13 = vweird.f32 %v3430_v27 }
 0x77b   : > { %v3287_v43 = vpop.xlane.xlu0 %3286 }
 0x77c   : > { %v3324_v22 = vmul.f32 %v7469_v48, %v3287_v43  ;;  %4765 = vmatmul.msk.f32.vlgmr.msra.gmra.mxu3 %vm524_vm0, %v7604_v62  ;;  %5270 = vrsqrt.f32 %v7606_v18  ;;  %vm3480_vm1 = vweird.f32 %v7606_v18 }
 0x77d   : > { %v3290_v5 = vpop.xlane.xlu1 %3289 }
 0x77e   : > { %v5267_v38 = vpop.eup %5266  ;;  %v7613_v28 = vsub.f32 %v7507_v13, %v3324_v22  ;;  %v3325_v11 = vmul.f32 %v7469_v48, %v3290_v5 }
 0x77f   : > { %v3455_v53 = vmul.f32 %v5267_v38, %v3429_v35  ;;  %vm3461_vm9 = vweird.f32 %v5267_v38 }
 0x780   : > { %v5269_v36 = vpop.eup %5268  ;;  %v7617_v29 = vsub.f32 %v7511_v26, %v3325_v11  ;;  %v3356_v23 = vmul.f32 %v7613_v28, %v7613_v28  ;;  %vm3462_vm11 = vmor %vm3460_vm10, %vm3461_vm9 }
 0x781   : > { %v3456_v21 = vmul.f32 %v5267_v38, %v3455_v53  ;;  %v3465_v41 = vmul.f32 %v5269_v36, %v3430_v27  ;;  %vm3471_vm12 = vweird.f32 %v5269_v36 }
 0x782   : > { %v3388_v37 = vsel %vm524_vm0, %v3356_v23, 0.0  ;;  %v3357_v13 = vmul.f32 %v7617_v29, %v7617_v29  ;;  %v5271_v6 = vpop.eup %5270  ;;  %vm3472_vm14 = vmor %vm3470_vm13, %vm3471_vm12 }
 0x783   : > { %v3457_v2 = vmul.f32 0.5, %v3456_v21  ;;  %v3466_v7 = vmul.f32 %v5269_v36, %v3465_v41  ;;  %3389 = vadd.xlane.f32.xlu1 %v3388_v37  ;;  %v3378_v59 = vpop.xlane.xlu0 %3377  ;;  %v3475_v26 = vmul.f32 %v5271_v6, %v7606_v18  ;;  %vm3481_vm15 = vweird.f32 %v5271_v6 }
 0x784   : > { %v3416_v3 = vmul.f32 %v3378_v59, %v7469_v48  ;;  %v3391_v45 = vsel %vm524_vm0, %v3357_v13, 0.0  ;;  %vm3482_vm3 = vmor %vm3480_vm1, %vm3481_vm15 }
 0x785   : > { %v3458_v63 = vsub.f32 1.5, %v3457_v2  ;;  %v3467_v57 = vmul.f32 0.5, %v3466_v7  ;;  %3392 = vadd.xlane.f32.xlu2 %v3391_v45  ;;  %v3476_v30 = vmul.f32 %v5271_v6, %v3475_v26 }
 0x786   : > { %v3432_v16 = vadd.f32 1e-05, %v3416_v3 }
 0x787   : > { %v3459_v46 = vmul.f32 %v5267_v38, %v3458_v63  ;;  %v3468_v15 = vsub.f32 1.5, %v3467_v57  ;;  %v3381_v51 = vpop.xlane.xlu1 %3380  ;;  %v3477_v1 = vmul.f32 0.5, %v3476_v30 }
 0x788   : > { %5272 = vrsqrt.f32 %v3432_v16  ;;  %v3417_v4 = vmul.f32 %v3381_v51, %v7469_v48  ;;  %vm3490_vm5 = vweird.f32 %v3432_v16 }
 0x789   : > { %v3463_v33 = vsel %vm3462_vm11, %v5267_v38, %v3459_v46  ;;  %v3469_v8 = vmul.f32 %v5269_v36, %v3468_v15  ;;  %v3478_v35 = vsub.f32 1.5, %v3477_v1 }
 0x78a   : > { %v3605_v17 = vmul.f32 %v3463_v33, %v7486_v49  ;;  %v3433_v60 = vadd.f32 1e-05, %v3417_v4 }
 0x78b   : > { %3307 = vadd.xlane.f32.xlu1 %v3306_v24  ;;  %v3473_v56 = vsel %vm3472_vm14, %v5269_v36, %v3469_v8  ;;  %v3479_v49 = vmul.f32 %v5271_v6, %v3478_v35 }
 0x78c   : > { %5274 = vrsqrt.f32 %v3433_v60  ;;  %v3624_v10 = vmul.f32 %v7589_v14, %v3605_v17  ;;  %v3606_v19 = vmul.f32 %v3473_v56, %v7490_v20  ;;  %vm3500_vm8 = vweird.f32 %v3433_v60 }
 0x78d   : > { %v3483_v11 = vsel %vm3482_vm3, %v5271_v6, %v3479_v49 }
 0x78e   : > { %v5273_v61 = vpop.eup %5272  ;;  %v7638_v58 = vadd.f32 %v7595_v31, %v3624_v10  ;;  %v3625_v38 = vmul.f32 %v7589_v14, %v3606_v19  ;;  %v3607_v53 = vmul.f32 %v3483_v11, %v7497_v9 }
 0x78f   : > { %v3485_v12 = vmul.f32 %v5273_v61, %v3432_v16  ;;  %vm3491_vm4 = vweird.f32 %v5273_v61 }
 0x790   : > { %4766 = vmatmul.msk.f32.gmra.mxu3 %vm524_vm0, %v7638_v58  ;;  %v7646_v36 = vadd.f32 %v7595_v31, %v3625_v38  ;;  %vm3492_vm6 = vmor %vm3490_vm5, %vm3491_vm4  ;;  %v3626_v18 = vmul.f32 %v7589_v14, %v3607_v53 }
 0x791   : > { %v3486_v27 = vmul.f32 %v5273_v61, %v3485_v12 }
 0x792   : > { %v5275_v43 = vpop.eup %5274  ;;  %v7654_v6 = vadd.f32 %v7595_v31, %v3626_v18 }
 0x793   : > { %v3487_v22 = vmul.f32 0.5, %v3486_v27  ;;  %v3495_v5 = vmul.f32 %v5275_v43, %v3433_v60  ;;  %vm3501_vm7 = vweird.f32 %v5275_v43 }
 0x794   : > { %vm3502_vm9 = vmor %vm3500_vm8, %vm3501_vm7 }
 0x795   : > { %v3488_v20 = vsub.f32 1.5, %v3487_v22  ;;  %v3496_v25 = vmul.f32 %v5275_v43, %v3495_v5 }
 0x797   : > { %v3489_v23 = vmul.f32 %v5273_v61, %v3488_v20  ;;  %v3497_v21 = vmul.f32 0.5, %v3496_v25 }
 0x798   : > { %4767 = vmatmul.msk.f32.gmra.mxu3 %vm524_vm0, %v7646_v36 }
 0x799   : > { %v3493_v41 = vsel %vm3492_vm6, %v5273_v61, %v3489_v23  ;;  %v3498_v52 = vsub.f32 1.5, %v3497_v21  ;;  %v3929_v23 = vld [vmem:[%s8209_s8 + $0x30] sm:$0xff] }
 0x79a   : > { %v3608_v9 = vmul.f32 %v3493_v41, %v7515_v0  ;;  %v3928_v41 = vld [vmem:[%s8209_s8 + $0x28] sm:$0xff] }
 0x79b   : > { %v3499_v2 = vmul.f32 %v5275_v43, %v3498_v52 }
 0x79c   : > { %v3627_v26 = vmul.f32 %v7589_v14, %v3608_v9 }
 0x79d   : > { %v3293_v37 = vpop.xlane.xlu2 %3292  ;;  %v3503_v3 = vsel %vm3502_vm9, %v5275_v43, %v3499_v2 }
 0x79e   : > { %v3326_v13 = vmul.f32 %v7469_v48, %v3293_v37  ;;  %v3609_v32 = vmul.f32 %v3503_v3, %v7525_v44  ;;  %v7669_v30 = vadd.f32 %v7595_v31, %v3627_v26  ;;  %v3925_v26 = vld [vmem:[%s8209_s8 + $0x10] sm:$0xff] }
 0x7a0   : > { %v7657_v7 = vsub.f32 %v7534_v42, %v3326_v13  ;;  %4768 = vmatmul.msk.f32.gmra.mxu3 %vm524_vm0, %v7654_v6  ;;  %v3628_v51 = vmul.f32 %v7589_v14, %v3609_v32  ;;  %v3927_v13 = vld [vmem:[%s8209_s8 + $0x20] sm:$0xff] }
 0x7a2   : > { %v3358_v59 = vmul.f32 %v7657_v7, %v7657_v7  ;;  %v7682_v33 = vadd.f32 %v7595_v31, %v3628_v51 }
 0x7a4   : > { %v3394_v0 = vsel %vm524_vm0, %v3358_v59, 0.0 }
 0x7a5   : > { %v3296_v45 = vpop.xlane.xlu0 %3295  ;;  %3395 = vadd.xlane.f32.xlu0 %v3394_v0  ;;  %v3384_v63 = vpop.xlane.xlu2 %3383  ;;  %v3924_v0 = vld [vmem:[%s8209_s8 + $0x8] sm:$0xff] }
 0x7a6   : > { %v3327_v57 = vmul.f32 %v7469_v48, %v3296_v45  ;;  %v3418_v42 = vmul.f32 %v3384_v63, %v7469_v48 }
 0x7a8   : > { %v7672_v16 = vsub.f32 %v7545_v40, %v3327_v57  ;;  %v3434_v46 = vadd.f32 1e-05, %v3418_v42  ;;  %4769 = vmatmul.msk.f32.gmra.mxu3 %vm524_vm0, %v7669_v30  ;;  %v3923_v42 = vld [vmem:[%s8209_s8] sm:$0xff] }
 0x7aa   : > { %5276 = vrsqrt.f32 %v3434_v46  ;;  %v3359_v15 = vmul.f32 %v7672_v16, %v7672_v16  ;;  %vm3510_vm11 = vweird.f32 %v3434_v46 }
 0x7ac   : > { %v3397_v1 = vsel %vm524_vm0, %v3359_v15, 0.0 }
 0x7ad   : > { %v3299_v4 = vpop.xlane.xlu1 %3298  ;;  %3398 = vadd.xlane.f32.xlu2 %v3397_v1 }
 0x7ae   : > { %v3328_v44 = vmul.f32 %v7469_v48, %v3299_v4 }
 0x7b0   : > { %v5277_v40 = vpop.eup %5276  ;;  %v7685_v8 = vsub.f32 %v7552_v55, %v3328_v44  ;;  %4770 = vmatmul.msk.f32.gmra.mxu3 %vm524_vm0, %v7682_v33 }
 0x7b1   : > { %v3505_v17 = vmul.f32 %v5277_v40, %v3434_v46  ;;  %vm3511_vm10 = vweird.f32 %v5277_v40 }
 0x7b2   : > { %v3360_v60 = vmul.f32 %v7685_v8, %v7685_v8  ;;  %vm3512_vm12 = vmor %vm3510_vm11, %vm3511_vm10 }
 0x7b3   : > { %v3506_v24 = vmul.f32 %v5277_v40, %v3505_v17 }
 0x7b4   : > { %v3400_v56 = vsel %vm524_vm0, %v3360_v60, 0.0 }
 0x7b5   : > { %v3507_v35 = vmul.f32 0.5, %v3506_v24  ;;  %3401 = vadd.xlane.f32.xlu1 %v3400_v56  ;;  %v3302_v10 = vpop.xlane.xlu2 %3301 }
 0x7b6   : > { %v3329_v61 = vmul.f32 %v7469_v48, %v3302_v10 }
 0x7b7   : > { %v3508_v19 = vsub.f32 1.5, %v3507_v35 }
 0x7b8   : > { %v7694_v55 = vsub.f32 %v7558_v34, %v3329_v61 }
 0x7b9   : > { %v3509_v12 = vmul.f32 %v5277_v40, %v3508_v19 }
 0x7ba   : > { %v3361_v49 = vmul.f32 %v7694_v55, %v7694_v55 }
 0x7bb   : > { %v3513_v27 = vsel %vm3512_vm12, %v5277_v40, %v3509_v12  ;;  %v7745_v40 = vld [vmem:[%s8208_s7] ss:$0 sm:$0xff] }
 0x7bc   : > { %v3610_v43 = vmul.f32 %v3513_v27, %v7537_v50  ;;  %v3403_v22 = vsel %vm524_vm0, %v3361_v49, 0.0  ;;  %v3930_v50 = vld [vmem:[%s8209_s8 + $0x38] sm:$0xff] }
 0x7bd   : > { %3404 = vadd.xlane.f32.xlu0 %v3403_v22  ;;  %3991 = vmatpush.msra.mxu0 %v3930_v50 }
 0x7be   : > { %v3629_v5 = vmul.f32 %v7589_v14, %v3610_v43 }
 0x7bf   : > { %3992 = vmatpush.msra.mxu0 %v3929_v23 }
 0x7c0   : > { %v7702_v38 = vadd.f32 %v7595_v31, %v3629_v5 }
 0x7c1   : > { %3993 = vmatpush.msra.mxu0 %v3928_v41 }
 0x7c2   : > { %4771 = vmatmul.msk.f32.gmra.mxu3 %vm524_vm0, %v7702_v38 }
 0x7c3   : > { %3994 = vmatpush.msra.mxu0 %v3927_v13 }
 0x7e2   : > { %v3387_v34 = vpop.xlane.xlu0 %3386 }
 0x7e3   : > { %v3419_v11 = vmul.f32 %v3387_v34, %v7469_v48 }
 0x7e5   : > { %v3435_v20 = vadd.f32 1e-05, %v3419_v11 }
 0x7e7   : > { %5278 = vrsqrt.f32 %v3435_v20  ;;  %vm3520_vm14 = vweird.f32 %v3435_v20 }
 0x7ea   : > { %v3305_v25 = vpop.xlane.xlu0 %3304 }
 0x7eb   : > { %v3330_v53 = vmul.f32 %v7469_v48, %v3305_v25 }
 0x7ed   : > { %v5279_v21 = vpop.eup %5278  ;;  %v7715_v18 = vsub.f32 %v7584_v47, %v3330_v53  ;;  %v3926_v47 = vld [vmem:[%s8209_s8 + $0x18] sm:$0xff] }
 0x7ee   : > { %v3515_v52 = vmul.f32 %v5279_v21, %v3435_v20  ;;  %3995 = vmatpush.msra.mxu0 %v3926_v47  ;;  %vm3521_vm13 = vweird.f32 %v5279_v21 }
 0x7ef   : > { %v3362_v37 = vmul.f32 %v7715_v18, %v7715_v18  ;;  %vm3522_vm15 = vmor %vm3520_vm14, %vm3521_vm13 }
 0x7f0   : > { %v3516_v9 = vmul.f32 %v5279_v21, %v3515_v52  ;;  %3996 = vmatpush.msra.mxu0 %v3925_v26 }
 0x7f1   : > { %v3406_v2 = vsel %vm524_vm0, %v3362_v37, 0.0 }
 0x7f2   : > { %v3517_v59 = vmul.f32 0.5, %v3516_v9  ;;  %3407 = vadd.xlane.f32.xlu2 %v3406_v2  ;;  %3997 = vmatpush.msra.mxu0 %v3924_v0 }
 0x7f4   : > { %v3518_v3 = vsub.f32 1.5, %v3517_v59  ;;  %3998 = vmatpush.msra.mxu0 %v3923_v42 }
 0x7f6   : > { %v3519_v45 = vmul.f32 %v5279_v21, %v3518_v3  ;;  %v3390_v63 = vpop.xlane.xlu1 %3389 }
 0x7f7   : > { %v3420_v57 = vmul.f32 %v3390_v63, %v7469_v48 }
 0x7f8   : > { %v3523_v32 = vsel %vm3522_vm15, %v5279_v21, %v3519_v45  ;;  %v3393_v46 = vpop.xlane.xlu2 %3392 }
 0x7f9   : > { %v3611_v15 = vmul.f32 %v3523_v32, %v7577_v54  ;;  %v3436_v51 = vadd.f32 1e-05, %v3420_v57  ;;  %v3421_v1 = vmul.f32 %v3393_v46, %v7469_v48 }
 0x7fb   : > { %5280 = vrsqrt.f32 %v3436_v51  ;;  %v3437_v4 = vadd.f32 1e-05, %v3421_v1  ;;  %v3630_v44 = vmul.f32 %v7589_v14, %v3611_v15  ;;  %vm3530_vm3 = vweird.f32 %v3436_v51 }
 0x7fd   : > { %5282 = vrsqrt.f32 %v3437_v4  ;;  %v7748_v17 = vadd.f32 %v7595_v31, %v3630_v44  ;;  %vm3540_vm6 = vweird.f32 %v3437_v4 }
 0x7fe   : > { %v3308_v60 = vpop.xlane.xlu1 %3307 }
 0x7ff   : > { %v3331_v24 = vmul.f32 %v7469_v48, %v3308_v60  ;;  %v3731_v54 = vpop.f32.mrf.mxu3  ;;  %4772 = vmatmul.msk.f32.gmra.mxu3 %vm524_vm0, %v7748_v17 }
 0x800   : > { %v3732_v56 = vadd.f32 %v7745_v40, %v3731_v54 }
 0x801   : > { %v5281_v35 = vpop.eup %5280  ;;  %v7755_v10 = vsub.f32 %v7629_v39, %v3331_v24 }
 0x802   : > { %v3525_v61 = vmul.f32 %v5281_v35, %v3436_v51  ;;  %v3795_v19 = vmul.f32 0.044715, %v3732_v56  ;;  %vm3531_vm1 = vweird.f32 %v5281_v35  ;;  %v3779_v26 = vmul.f32 0.5, %v3732_v56 }
 0x803   : > { %v5283_v12 = vpop.eup %5282  ;;  %v3363_v49 = vmul.f32 %v7755_v10, %v7755_v10  ;;  %vm3532_vm5 = vmor %vm3530_vm3, %vm3531_vm1 }
 0x804   : > { %v3526_v27 = vmul.f32 %v5281_v35, %v3525_v61  ;;  %v3535_v43 = vmul.f32 %v5283_v12, %v3437_v4  ;;  %v3811_v22 = vmul.f32 %v3795_v19, %v3732_v56  ;;  %vm3541_vm4 = vweird.f32 %v5283_v12 }
 0x805   : > { %v3409_v5 = vsel %vm524_vm0, %v3363_v49, 0.0  ;;  %vm3542_vm7 = vmor %vm3540_vm6, %vm3541_vm4 }
 0x806   : > { %v3527_v34 = vmul.f32 0.5, %v3526_v27  ;;  %v3536_v11 = vmul.f32 %v5283_v12, %v3535_v43  ;;  %v3827_v20 = vmul.f32 %v3811_v22, %v3732_v56  ;;  %3410 = vadd.xlane.f32.xlu1 %v3409_v5 }
 0x808   : > { %v3528_v50 = vsub.f32 1.5, %v3527_v34  ;;  %v3537_v25 = vmul.f32 0.5, %v3536_v11  ;;  %v3843_v39 = vadd.f32 %v3827_v20, %v3732_v56 }
 0x80a   : > { %v3529_v53 = vmul.f32 %v5281_v35, %v3528_v50  ;;  %v3538_v23 = vsub.f32 1.5, %v3537_v25  ;;  %v3859_v21 = vmul.f32 0.7978846, %v3843_v39 }
 0x80c   : > { %v3533_v41 = vsel %vm3532_vm5, %v5281_v35, %v3529_v53  ;;  %v3539_v52 = vmul.f32 %v5283_v12, %v3538_v23  ;;  %5284 = vtanh.f32 %v3859_v21 }
 0x80d   : > { %v3612_v37 = vmul.f32 %v3533_v41, %v7613_v28 }
 0x80e   : > { %v3543_v13 = vsel %vm3542_vm7, %v5283_v12, %v3539_v52 }
 0x80f   : > { %v3631_v9 = vmul.f32 %v7589_v14, %v3612_v37  ;;  %v3613_v2 = vmul.f32 %v3543_v13, %v7617_v29 }
 0x811   : > { %v7764_v47 = vadd.f32 %v7595_v31, %v3631_v9  ;;  %v3632_v28 = vmul.f32 %v7589_v14, %v3613_v2 }
 0x812   : > { %v5285_v59 = vpop.eup %5284 }
 0x813   : > { %v3891_v3 = vadd.f32 1.0, %v5285_v59  ;;  %4773 = vmatmul.msk.f32.gmra.mxu3 %vm524_vm0, %v7764_v47  ;;  %v3734_v0 = vpop.f32.mrf.mxu3  ;;  %v7773_v46 = vadd.f32 %v7595_v31, %v3632_v28 }
 0x814   : > { %v3735_v63 = vadd.f32 %v7745_v40, %v3734_v0 }
 0x815   : > { %v3907_v45 = vmul.f32 %v3891_v3, %v3779_v26 }
 0x816   : > { %v3796_v57 = vmul.f32 0.044715, %v3735_v63  ;;  %v3780_v39 = vmul.f32 0.5, %v3735_v63 }
 0x817   : > { %4781 = vmatmul.msk.f32.vlgmr.msra.gmra.mxu0 %vm1463_vm2, %v3907_v45 }
 0x818   : > { %v3396_v42 = vpop.xlane.xlu0 %3395  ;;  %v3812_v29 = vmul.f32 %v3796_v57, %v3735_v63 }
 0x819   : > { %v3422_v32 = vmul.f32 %v3396_v42, %v7469_v48 }
 0x81a   : > { %v3828_v15 = vmul.f32 %v3812_v29, %v3735_v63 }
 0x81b   : > { %v3438_v51 = vadd.f32 1e-05, %v3422_v32  ;;  %4774 = vmatmul.msk.f32.gmra.mxu3 %vm524_vm0, %v7773_v46  ;;  %v3737_v1 = vpop.f32.mrf.mxu3 }
 0x81c   : > { %v3738_v4 = vadd.f32 %v7745_v40, %v3737_v1  ;;  %v3844_v44 = vadd.f32 %v3828_v15, %v3735_v63 }
 0x81d   : > { %5286 = vrsqrt.f32 %v3438_v51  ;;  %vm3550_vm9 = vweird.f32 %v3438_v51 }
 0x81e   : > { %v3797_v60 = vmul.f32 0.044715, %v3738_v4  ;;  %v3860_v24 = vmul.f32 0.7978846, %v3844_v44 }
 0x820   : > { %v3399_v54 = vpop.xlane.xlu2 %3398  ;;  %v3813_v56 = vmul.f32 %v3797_v60, %v3738_v4  ;;  %5288 = vtanh.f32 %v3860_v24 }
 0x821   : > { %v3423_v35 = vmul.f32 %v3399_v54, %v7469_v48 }
 0x822   : > { %v3829_v19 = vmul.f32 %v3813_v56, %v3738_v4 }
 0x823   : > { %v5287_v61 = vpop.eup %5286  ;;  %v3439_v12 = vadd.f32 1e-05, %v3423_v35  ;;  %v3740_v27 = vpop.f32.mrf.mxu3 }
 0x824   : > { %v3545_v49 = vmul.f32 %v5287_v61, %v3438_v51  ;;  %v7780_v43 = vadd.f32 %v7745_v40, %v3740_v27  ;;  %v3845_v22 = vadd.f32 %v3829_v19, %v3738_v4  ;;  %vm3551_vm8 = vweird.f32 %v5287_v61 }
 0x825   : > { %5290 = vrsqrt.f32 %v3439_v12  ;;  %vm3552_vm10 = vmor %vm3550_vm9, %vm3551_vm8  ;;  %v3781_v51 = vmul.f32 0.5, %v3738_v4  ;;  %vm3560_vm12 = vweird.f32 %v3439_v12 }
 0x826   : > { %v3546_v5 = vmul.f32 %v5287_v61, %v3545_v49  ;;  %v5289_v34 = vpop.eup %5288  ;;  %v3798_v11 = vmul.f32 0.044715, %v7780_v43  ;;  %v3861_v20 = vmul.f32 0.7978846, %v3845_v22 }
 0x827   : > { %v3892_v53 = vadd.f32 1.0, %v5289_v34 }
 0x828   : > { %v3547_v50 = vmul.f32 0.5, %v3546_v5  ;;  %v3402_v25 = vpop.xlane.xlu1 %3401  ;;  %v3814_v23 = vmul.f32 %v3798_v11, %v7780_v43  ;;  %5292 = vtanh.f32 %v3861_v20 }
 0x829   : > { %v3424_v21 = vmul.f32 %v3402_v25, %v7469_v48  ;;  %v3908_v52 = vmul.f32 %v3892_v53, %v3780_v39  ;;  %v3782_v53 = vmul.f32 0.5, %v7780_v43 }
 0x82a   : > { %v3548_v41 = vsub.f32 1.5, %v3547_v50  ;;  %v3830_v13 = vmul.f32 %v3814_v23, %v7780_v43 }
 0x82b   : > { %v5291_v37 = vpop.eup %5290  ;;  %v7786_v9 = vadd.f32 1e-05, %v3424_v21  ;;  %v3743_v26 = vpop.f32.mrf.mxu3  ;;  %4782 = vmatmul.msk.f32.gmra.mxu0 %vm1463_vm2, %v3908_v52 }
 0x82c   : > { %v3549_v2 = vmul.f32 %v5287_v61, %v3548_v41  ;;  %v3555_v59 = vmul.f32 %v5291_v37, %v3439_v12  ;;  %v7791_v3 = vadd.f32 %v7745_v40, %v3743_v26  ;;  %v3846_v0 = vadd.f32 %v3830_v13, %v7780_v43 }
 0x82d   : > { %5294 = vrsqrt.f32 %v7786_v9  ;;  %vm3561_vm11 = vweird.f32 %v5291_v37  ;;  %vm3570_vm15 = vweird.f32 %v7786_v9 }
 0x82e   : > { %v3553_v45 = vsel %vm3552_vm10, %v5287_v61, %v3549_v2  ;;  %v3556_v63 = vmul.f32 %v5291_v37, %v3555_v59  ;;  %v5293_v28 = vpop.eup %5292  ;;  %v3799_v42 = vmul.f32 0.044715, %v7791_v3  ;;  %v3862_v29 = vmul.f32 0.7978846, %v3846_v0  ;;  %vm3562_vm13 = vmor %vm3560_vm12, %vm3561_vm11 }
 0x82f   : > { %v3614_v57 = vmul.f32 %v3553_v45, %v7657_v7  ;;  %v3893_v1 = vadd.f32 1.0, %v5293_v28 }
 0x830   : > { %v3557_v32 = vmul.f32 0.5, %v3556_v63  ;;  %v3405_v15 = vpop.xlane.xlu0 %3404  ;;  %v3815_v44 = vmul.f32 %v3799_v42, %v7791_v3  ;;  %5296 = vtanh.f32 %v3862_v29  ;;  %v3783_v29 = vmul.f32 0.5, %v7791_v3 }
 0x831   : > { %v3425_v60 = vmul.f32 %v3405_v15, %v7469_v48  ;;  %v3633_v24 = vmul.f32 %v7589_v14, %v3614_v57  ;;  %v3909_v56 = vmul.f32 %v3893_v1, %v3781_v51 }
 0x832   : > { %v3558_v54 = vsub.f32 1.5, %v3557_v32  ;;  %v3831_v7 = vmul.f32 %v3815_v44, %v7791_v3 }
 0x833   : > { %v5295_v35 = vpop.eup %5294  ;;  %v3441_v61 = vadd.f32 1e-05, %v3425_v60  ;;  %v7801_v19 = vadd.f32 %v7595_v31, %v3633_v24  ;;  %v3746_v27 = vpop.f32.mrf.mxu3  ;;  %4783 = vmatmul.msk.f32.gmra.mxu0 %vm1463_vm2, %v3909_v56 }
 0x834   : > { %v3559_v49 = vmul.f32 %v5291_v37, %v3558_v54  ;;  %v3565_v4 = vmul.f32 %v5295_v35, %v7786_v9  ;;  %v3747_v22 = vadd.f32 %v7745_v40, %v3746_v27  ;;  %v3847_v5 = vadd.f32 %v3831_v7, %v7791_v3 }
 0x835   : > { %5298 = vrsqrt.f32 %v3441_v61  ;;  %4775 = vmatmul.msk.f32.gmra.mxu3 %vm524_vm0, %v7801_v19  ;;  %vm3571_vm14 = vweird.f32 %v5295_v35  ;;  %vm3580_vm4 = vweird.f32 %v3441_v61 }
 0x836   : > { %v3563_v34 = vsel %vm3562_vm13, %v5291_v37, %v3559_v49  ;;  %v3566_v11 = vmul.f32 %v5295_v35, %v3565_v4  ;;  %v5297_v20 = vpop.eup %5296  ;;  %v3800_v12 = vmul.f32 0.044715, %v3747_v22  ;;  %v3863_v25 = vmul.f32 0.7978846, %v3847_v5  ;;  %vm3572_vm1 = vmor %vm3570_vm15, %vm3571_vm14 }
 0x837   : > { %v3615_v50 = vmul.f32 %v3563_v34, %v7672_v16  ;;  %v3894_v23 = vadd.f32 1.0, %v5297_v20 }
 0x838   : > { %v3567_v39 = vmul.f32 0.5, %v3566_v11  ;;  %v3816_v21 = vmul.f32 %v3800_v12, %v3747_v22  ;;  %5300 = vtanh.f32 %v3863_v25 }
 0x839   : > { %v3634_v41 = vmul.f32 %v7589_v14, %v3615_v50  ;;  %v3910_v13 = vmul.f32 %v3894_v23, %v3782_v53 }
 0x83a   : > { %v3568_v52 = vsub.f32 1.5, %v3567_v39  ;;  %v3832_v59 = vmul.f32 %v3816_v21, %v3747_v22 }
 0x83b   : > { %v5299_v2 = vpop.eup %5298  ;;  %v7813_v37 = vadd.f32 %v7595_v31, %v3634_v41  ;;  %4784 = vmatmul.msk.f32.gmra.mxu0 %vm1463_vm2, %v3910_v13 }
 0x83c   : > { %v3569_v26 = vmul.f32 %v5295_v35, %v3568_v52  ;;  %v3575_v16 = vmul.f32 %v5299_v2, %v3441_v61  ;;  %v3848_v43 = vadd.f32 %v3832_v59, %v3747_v22  ;;  %vm3581_vm3 = vweird.f32 %v5299_v2 }
 0x83d   : > { %4776 = vmatmul.msk.f32.gmra.mxu3 %vm524_vm0, %v7813_v37  ;;  %vm3582_vm5 = vmor %vm3580_vm4, %vm3581_vm3 }
 0x83e   : > { %v3573_v0 = vsel %vm3572_vm1, %v5295_v35, %v3569_v26  ;;  %v3576_v45 = vmul.f32 %v5299_v2, %v3575_v16  ;;  %v5301_v63 = vpop.eup %5300  ;;  %v3864_v57 = vmul.f32 0.7978846, %v3848_v43  ;;  %v3784_v35 = vmul.f32 0.5, %v3747_v22 }
 0x83f   : > { %v3616_v28 = vmul.f32 %v3573_v0, %v7685_v8  ;;  %v3895_v32 = vadd.f32 1.0, %v5301_v63 }
 0x840   : > { %v3577_v42 = vmul.f32 0.5, %v3576_v45  ;;  %5302 = vtanh.f32 %v3864_v57 }
 0x841   : > { %v3635_v9 = vmul.f32 %v7589_v14, %v3616_v28  ;;  %v3911_v51 = vmul.f32 %v3895_v32, %v3783_v29 }
 0x842   : > { %v3578_v15 = vsub.f32 1.5, %v3577_v42 }
 0x843   : > { %v7823_v1 = vadd.f32 %v7595_v31, %v3635_v9  ;;  %4785 = vmatmul.msk.f32.gmra.mxu0 %vm1463_vm2, %v3911_v51 }
 0x844   : > { %v3579_v44 = vmul.f32 %v5299_v2, %v3578_v15 }
 0x845   : > { %v3749_v8 = vpop.f32.mrf.mxu3  ;;  %4777 = vmatmul.msk.f32.gmra.mxu3 %vm524_vm0, %v7823_v1 }
 0x846   : > { %v3583_v3 = vsel %vm3582_vm5, %v5299_v2, %v3579_v44  ;;  %v3750_v60 = vadd.f32 %v7745_v40, %v3749_v8  ;;  %v5303_v24 = vpop.eup %5302 }
 0x847   : > { %v3617_v54 = vmul.f32 %v3583_v3, %v7694_v55  ;;  %v3896_v7 = vadd.f32 1.0, %v5303_v24 }
 0x848   : > { %v3801_v56 = vmul.f32 0.044715, %v3750_v60  ;;  %v3785_v20 = vmul.f32 0.5, %v3750_v60 }
 0x849   : > { %v3636_v49 = vmul.f32 %v7589_v14, %v3617_v54  ;;  %v3912_v61 = vmul.f32 %v3896_v7, %v3784_v35  ;;  %v7852_v54 = vld [vmem:[%s8210_s9] ss:$0 sm:$0xff] }
 0x84a   : > { %v3817_v4 = vmul.f32 %v3801_v56, %v3750_v60 }
 0x84b   : > { %v7832_v27 = vadd.f32 %v7595_v31, %v3636_v49  ;;  %4786 = vmatmul.msk.f32.gmra.mxu0 %vm1463_vm2, %v3912_v61 }
 0x84c   : > { %v3833_v5 = vmul.f32 %v3817_v4, %v3750_v60 }
 0x84d   : > { %4778 = vmatmul.msk.f32.gmra.mxu3 %vm524_vm0, %v7832_v27 }
 0x84e   : > { %v3849_v34 = vadd.f32 %v3833_v5, %v3750_v60 }
 0x850   : > { %v3865_v11 = vmul.f32 0.7978846, %v3849_v34 }
 0x852   : > { %5304 = vtanh.f32 %v3865_v11 }
 0x858   : > { %v5305_v55 = vpop.eup %5304 }
 0x859   : > { %v3897_v22 = vadd.f32 1.0, %v5305_v55 }
 0x85b   : > { %v3913_v50 = vmul.f32 %v3897_v22, %v3785_v20 }
 0x85d   : > { %4787 = vmatmul.msk.f32.gmra.mxu0 %vm1463_vm2, %v3913_v50 }
 0x865   : > { %v3408_v12 = vpop.xlane.xlu2 %3407 }
 0x866   : > { %v3426_v25 = vmul.f32 %v3408_v12, %v7469_v48 }
 0x868   : > { %v3442_v39 = vadd.f32 1e-05, %v3426_v25 }
 0x86a   : > { %5306 = vrsqrt.f32 %v3442_v39  ;;  %vm3590_vm7 = vweird.f32 %v3442_v39 }
 0x870   : > { %v5307_v53 = vpop.eup %5306 }
 0x871   : > { %v3585_v23 = vmul.f32 %v5307_v53, %v3442_v39  ;;  %vm3591_vm6 = vweird.f32 %v5307_v53 }
 0x872   : > { %vm3592_vm8 = vmor %vm3590_vm7, %vm3591_vm6 }
 0x873   : > { %v3586_v21 = vmul.f32 %v5307_v53, %v3585_v23 }
 0x875   : > { %v3587_v41 = vmul.f32 0.5, %v3586_v21 }
 0x877   : > { %v3588_v52 = vsub.f32 1.5, %v3587_v41 }
 0x879   : > { %v3589_v13 = vmul.f32 %v5307_v53, %v3588_v52  ;;  %v3411_v2 = vpop.xlane.xlu1 %3410 }
 0x87a   : > { %v3427_v59 = vmul.f32 %v3411_v2, %v7469_v48 }
 0x87b   : > { %v3593_v26 = vsel %vm3592_vm8, %v5307_v53, %v3589_v13 }
 0x87c   : > { %v3618_v16 = vmul.f32 %v3593_v26, %v7715_v18  ;;  %v3443_v43 = vadd.f32 1e-05, %v3427_v59 }
 0x87e   : > { %5308 = vrsqrt.f32 %v3443_v43  ;;  %v3637_v0 = vmul.f32 %v7589_v14, %v3618_v16  ;;  %vm3600_vm10 = vweird.f32 %v3443_v43 }
 0x880   : > { %v7843_v45 = vadd.f32 %v7595_v31, %v3637_v0 }
 0x882   : > { %v3752_v63 = vpop.f32.mrf.mxu3  ;;  %4779 = vmatmul.msk.f32.gmra.mxu3 %vm524_vm0, %v7843_v45 }
 0x883   : > { %v3753_v28 = vadd.f32 %v7745_v40, %v3752_v63 }
 0x884   : > { %v5309_v57 = vpop.eup %5308 }
 0x885   : > { %v3595_v42 = vmul.f32 %v5309_v57, %v3443_v43  ;;  %v3802_v29 = vmul.f32 0.044715, %v3753_v28  ;;  %vm3601_vm9 = vweird.f32 %v5309_v57  ;;  %v3786_v5 = vmul.f32 0.5, %v3753_v28 }
 0x886   : > { %vm3602_vm11 = vmor %vm3600_vm10, %vm3601_vm9 }
 0x887   : > { %v3596_v32 = vmul.f32 %v5309_v57, %v3595_v42  ;;  %v3818_v9 = vmul.f32 %v3802_v29, %v3753_v28 }
 0x889   : > { %v3597_v15 = vmul.f32 0.5, %v3596_v32  ;;  %v3834_v18 = vmul.f32 %v3818_v9, %v3753_v28 }
 0x88b   : > { %v3598_v51 = vsub.f32 1.5, %v3597_v15  ;;  %v3850_v44 = vadd.f32 %v3834_v18, %v3753_v28 }
 0x88d   : > { %v3599_v8 = vmul.f32 %v5309_v57, %v3598_v51  ;;  %v3866_v3 = vmul.f32 0.7978846, %v3850_v44 }
 0x88f   : > { %v3603_v60 = vsel %vm3602_vm11, %v5309_v57, %v3599_v8  ;;  %5310 = vtanh.f32 %v3866_v3 }
 0x890   : > { %v3619_v24 = vmul.f32 %v3603_v60, %v7755_v10 }
 0x892   : > { %v3638_v56 = vmul.f32 %v7589_v14, %v3619_v24 }
 0x894   : > { %v4000_v35 = vpop.f32.mrf.mxu0  ;;  %v7856_v7 = vadd.f32 %v7595_v31, %v3638_v56 }
 0x895   : > { %v5311_v49 = vpop.eup %5310  ;;  %v4001_v4 = vadd.f32 %v7852_v54, %v4000_v35 }
 0x896   : > { %v3755_v61 = vpop.f32.mrf.mxu3  ;;  %4780 = vmatmul.msk.f32.gmra.mxu3 %vm524_vm0, %v7856_v7  ;;  %v3898_v10 = vadd.f32 1.0, %v5311_v49 }
 0x897   : > { %v7862_v34 = vadd.f32 %v4001_v4, %v7604_v62  ;;  %v3756_v11 = vadd.f32 %v7745_v40, %v3755_v61 }
 0x898   : > { %v3914_v55 = vmul.f32 %v3898_v10, %v3786_v5 }
 0x899   : > { %v3803_v14 = vmul.f32 0.044715, %v3756_v11  ;;  %v4066_v31 = vsel %vm524_vm0, %v7862_v34, 0.0  ;;  %v3787_v59 = vmul.f32 0.5, %v3756_v11 }
 0x89a   : > { %4788 = vmatmul.msk.f32.gmra.mxu0 %vm1463_vm2, %v3914_v55  ;;  %4067 = vadd.xlane.f32.xlu0 %v4066_v31 }
 0x89b   : > { %v3819_v20 = vmul.f32 %v3803_v14, %v3756_v11 }
 0x89d   : > { %v3835_v22 = vmul.f32 %v3819_v20, %v3756_v11 }
 0x89e   : > { %v3758_v50 = vpop.f32.mrf.mxu3 }
 0x89f   : > { %v3759_v12 = vadd.f32 %v7745_v40, %v3758_v50  ;;  %v3851_v25 = vadd.f32 %v3835_v22, %v3756_v11 }
 0x8a1   : > { %v3804_v39 = vmul.f32 0.044715, %v3759_v12  ;;  %v3867_v53 = vmul.f32 0.7978846, %v3851_v25  ;;  %v3788_v42 = vmul.f32 0.5, %v3759_v12 }
 0x8a3   : > { %v3820_v62 = vmul.f32 %v3804_v39, %v3759_v12  ;;  %5312 = vtanh.f32 %v3867_v53 }
 0x8a5   : > { %v3836_v23 = vmul.f32 %v3820_v62, %v3759_v12 }
 0x8a7   : > { %v3852_v21 = vadd.f32 %v3836_v23, %v3759_v12 }
 0x8a8   : > { %v4003_v52 = vpop.f32.mrf.mxu0 }
 0x8a9   : > { %v5313_v41 = vpop.eup %5312  ;;  %v3868_v13 = vmul.f32 0.7978846, %v3852_v21  ;;  %v4004_v2 = vadd.f32 %v7852_v54, %v4003_v52 }
 0x8aa   : > { %v3899_v26 = vadd.f32 1.0, %v5313_v41 }
 0x8ab   : > { %5314 = vtanh.f32 %v3868_v13  ;;  %v7871_v16 = vadd.f32 %v4004_v2, %v7638_v58 }
 0x8ac   : > { %v3915_v43 = vmul.f32 %v3899_v26, %v3787_v59 }
 0x8ad   : > { %v4069_v0 = vsel %vm524_vm0, %v7871_v16, 0.0 }
 0x8ae   : > { %4789 = vmatmul.msk.f32.gmra.mxu0 %vm1463_vm2, %v3915_v43  ;;  %4070 = vadd.xlane.f32.xlu2 %v4069_v0 }
 0x8b0   : > { %v4006_v28 = vpop.f32.mrf.mxu0 }
 0x8b1   : > { %v5315_v63 = vpop.eup %5314  ;;  %v4007_v57 = vadd.f32 %v7852_v54, %v4006_v28 }
 0x8b2   : > { %v3900_v29 = vadd.f32 1.0, %v5315_v63 }
 0x8b3   : > { %v7878_v32 = vadd.f32 %v4007_v57, %v7646_v36 }
 0x8b4   : > { %v3916_v9 = vmul.f32 %v3900_v29, %v3788_v42 }
 0x8b5   : > { %v4072_v58 = vsel %vm524_vm0, %v7878_v32, 0.0 }
 0x8b6   : > { %4790 = vmatmul.msk.f32.gmra.mxu0 %vm1463_vm2, %v3916_v9  ;;  %4073 = vadd.xlane.f32.xlu1 %v4072_v58 }
 0x8b8   : > { %v3761_v15 = vpop.f32.mrf.mxu3  ;;  %v4009_v51 = vpop.f32.mrf.mxu0 }
 0x8b9   : > { %v3762_v18 = vadd.f32 %v7745_v40, %v3761_v15  ;;  %v4010_v44 = vadd.f32 %v7852_v54, %v4009_v51 }
 0x8bb   : > { %v3805_v8 = vmul.f32 0.044715, %v3762_v18  ;;  %v7886_v3 = vadd.f32 %v4010_v44, %v7654_v6  ;;  %v3789_v62 = vmul.f32 0.5, %v3762_v18 }
 0x8bd   : > { %v3821_v60 = vmul.f32 %v3805_v8, %v3762_v18  ;;  %v4075_v36 = vsel %vm524_vm0, %v7886_v3, 0.0 }
 0x8be   : > { %4076 = vadd.xlane.f32.xlu0 %v4075_v36 }
 0x8bf   : > { %v3837_v24 = vmul.f32 %v3821_v60, %v3762_v18 }
 0x8c0   : > { %v3764_v56 = vpop.f32.mrf.mxu3  ;;  %v4012_v49 = vpop.f32.mrf.mxu0 }
 0x8c1   : > { %v3765_v35 = vadd.f32 %v7745_v40, %v3764_v56  ;;  %v3853_v4 = vadd.f32 %v3837_v24, %v3762_v18  ;;  %v4013_v61 = vadd.f32 %v7852_v54, %v4012_v49 }
 0x8c3   : > { %v3806_v5 = vmul.f32 0.044715, %v3765_v35  ;;  %v3869_v10 = vmul.f32 0.7978846, %v3853_v4  ;;  %v7893_v11 = vadd.f32 %v4013_v61, %v7669_v30  ;;  %v3790_v63 = vmul.f32 0.5, %v3765_v35 }
 0x8c5   : > { %v3822_v6 = vmul.f32 %v3806_v5, %v3765_v35  ;;  %5316 = vtanh.f32 %v3869_v10  ;;  %v4078_v55 = vsel %vm524_vm0, %v7893_v11, 0.0 }
 0x8c6   : > { %4079 = vadd.xlane.f32.xlu2 %v4078_v55 }
 0x8c7   : > { %v3838_v14 = vmul.f32 %v3822_v6, %v3765_v35 }
 0x8c8   : > { %v3767_v31 = vpop.f32.mrf.mxu3  ;;  %v4015_v22 = vpop.f32.mrf.mxu0 }
 0x8c9   : > { %v3768_v20 = vadd.f32 %v7745_v40, %v3767_v31  ;;  %v3854_v50 = vadd.f32 %v3838_v14, %v3765_v35  ;;  %v4016_v12 = vadd.f32 %v7852_v54, %v4015_v22 }
 0x8cb   : > { %v5317_v25 = vpop.eup %5316  ;;  %v3807_v39 = vmul.f32 0.044715, %v3768_v20  ;;  %v3870_v53 = vmul.f32 0.7978846, %v3854_v50  ;;  %v7900_v30 = vadd.f32 %v4016_v12, %v7682_v33  ;;  %v3791_v44 = vmul.f32 0.5, %v3768_v20 }
 0x8cc   : > { %v3901_v23 = vadd.f32 1.0, %v5317_v25 }
 0x8cd   : > { %v3823_v21 = vmul.f32 %v3807_v39, %v3768_v20  ;;  %5318 = vtanh.f32 %v3870_v53  ;;  %v4081_v41 = vsel %vm524_vm0, %v7900_v30, 0.0 }
 0x8ce   : > { %v3917_v52 = vmul.f32 %v3901_v23, %v3789_v62  ;;  %4082 = vadd.xlane.f32.xlu1 %v4081_v41 }
 0x8cf   : > { %v3839_v13 = vmul.f32 %v3823_v21, %v3768_v20 }
 0x8d0   : > { %v3770_v2 = vpop.f32.mrf.mxu3  ;;  %4791 = vmatmul.msk.f32.gmra.mxu0 %vm1463_vm2, %v3917_v52 }
 0x8d1   : > { %v3771_v59 = vadd.f32 %v7745_v40, %v3770_v2  ;;  %v3855_v26 = vadd.f32 %v3839_v13, %v3768_v20 }
 0x8d3   : > { %v5319_v43 = vpop.eup %5318  ;;  %v3808_v0 = vmul.f32 0.044715, %v3771_v59  ;;  %v3871_v33 = vmul.f32 0.7978846, %v3855_v26  ;;  %v3792_v35 = vmul.f32 0.5, %v3771_v59 }
 0x8d4   : > { %v3902_v28 = vadd.f32 1.0, %v5319_v43 }
 0x8d5   : > { %v3824_v57 = vmul.f32 %v3808_v0, %v3771_v59  ;;  %5320 = vtanh.f32 %v3871_v33 }
 0x8d6   : > { %v3918_v42 = vmul.f32 %v3902_v28, %v3790_v63 }
 0x8d7   : > { %v3840_v29 = vmul.f32 %v3824_v57, %v3771_v59 }
 0x8d8   : > { %4792 = vmatmul.msk.f32.gmra.mxu0 %vm1463_vm2, %v3918_v42 }
 0x8d9   : > { %v3856_v9 = vadd.f32 %v3840_v29, %v3771_v59 }
 0x8da   : > { %v4018_v58 = vpop.f32.mrf.mxu0 }
 0x8db   : > { %v5321_v15 = vpop.eup %5320  ;;  %v4019_v18 = vadd.f32 %v7852_v54, %v4018_v58  ;;  %v3872_v51 = vmul.f32 0.7978846, %v3856_v9 }
 0x8dc   : > { %v3903_v8 = vadd.f32 1.0, %v5321_v15 }
 0x8dd   : > { %v7909_v60 = vadd.f32 %v4019_v18, %v7702_v38  ;;  %5322 = vtanh.f32 %v3872_v51 }
 0x8de   : > { %v3919_v36 = vmul.f32 %v3903_v8, %v3791_v44 }
 0x8df   : > { %v4084_v24 = vsel %vm524_vm0, %v7909_v60, 0.0 }
 0x8e0   : > { %4085 = vadd.xlane.f32.xlu0 %v4084_v24  ;;  %4793 = vmatmul.msk.f32.gmra.mxu0 %vm1463_vm2, %v3919_v36 }
 0x8e3   : > { %v5323_v56 = vpop.eup %5322 }
 0x8e4   : > { %v3904_v49 = vadd.f32 1.0, %v5323_v56 }
 0x8e6   : > { %v3920_v4 = vmul.f32 %v3904_v49, %v3792_v35 }
 0x8e8   : > { %4794 = vmatmul.msk.f32.gmra.mxu0 %vm1463_vm2, %v3920_v4 }
 0x905   : > { %v3773_v61 = vpop.f32.mrf.mxu3 }
 0x906   : > { %v3774_v5 = vadd.f32 %v7745_v40, %v3773_v61 }
 0x908   : > { %v3809_v10 = vmul.f32 0.044715, %v3774_v5  ;;  %v3793_v12 = vmul.f32 0.5, %v3774_v5 }
 0x90a   : > { %v3825_v38 = vmul.f32 %v3809_v10, %v3774_v5 }
 0x90c   : > { %v3841_v6 = vmul.f32 %v3825_v38, %v3774_v5 }
 0x90d   : > { %v4068_v56 = vpop.xlane.xlu0 %4067 }
 0x90e   : > { %v3857_v55 = vadd.f32 %v3841_v6, %v3774_v5  ;;  %v4114_v49 = vmul.f32 %v4068_v56, %v7469_v48 }
 0x910   : > { %v3873_v14 = vmul.f32 0.7978846, %v3857_v55  ;;  %v7961_v61 = vsub.f32 %v7862_v34, %v4114_v49 }
 0x912   : > { %5324 = vtanh.f32 %v3873_v14  ;;  %v4146_v38 = vmul.f32 %v7961_v61, %v7961_v61 }
 0x914   : > { %v4162_v55 = vsel %vm524_vm0, %v4146_v38, 0.0 }
 0x917   : > { %v4021_v31 = vpop.f32.mrf.mxu0 }
 0x918   : > { %v5325_v20 = vpop.eup %5324  ;;  %v4022_v22 = vadd.f32 %v7852_v54, %v4021_v31 }
 0x919   : > { %v3776_v50 = vpop.f32.mrf.mxu3  ;;  %v3905_v25 = vadd.f32 1.0, %v5325_v20 }
 0x91a   : > { %v7918_v39 = vadd.f32 %v4022_v22, %v7748_v17  ;;  %v3777_v53 = vadd.f32 %v7745_v40, %v3776_v50 }
 0x91b   : > { %v3921_v62 = vmul.f32 %v3905_v25, %v3793_v12 }
 0x91c   : > { %v3810_v23 = vmul.f32 0.044715, %v3777_v53  ;;  %v4087_v21 = vsel %vm524_vm0, %v7918_v39, 0.0  ;;  %v3794_v43 = vmul.f32 0.5, %v3777_v53 }
 0x91d   : > { %4088 = vadd.xlane.f32.xlu2 %v4087_v21  ;;  %4795 = vmatmul.msk.f32.gmra.mxu0 %vm1463_vm2, %v3921_v62 }
 0x91e   : > { %v3826_v41 = vmul.f32 %v3810_v23, %v3777_v53 }
 0x920   : > { %v3842_v52 = vmul.f32 %v3826_v41, %v3777_v53 }
 0x921   : > { %v4071_v50 = vpop.xlane.xlu2 %4070 }
 0x922   : > { %v3858_v13 = vadd.f32 %v3842_v52, %v3777_v53  ;;  %v4115_v25 = vmul.f32 %v4071_v50, %v7469_v48 }
 0x924   : > { %v3874_v2 = vmul.f32 0.7978846, %v3858_v13 }
 0x926   : > { %5326 = vtanh.f32 %v3874_v2 }
 0x92b   : > { %v4024_v59 = vpop.f32.mrf.mxu0 }
 0x92c   : > { %v5327_v26 = vpop.eup %5326  ;;  %v4025_v17 = vadd.f32 %v7852_v54, %v4024_v59  ;;  %v4074_v59 = vpop.xlane.xlu1 %4073 }
 0x92d   : > { %v3906_v0 = vadd.f32 1.0, %v5327_v26 }
 0x92e   : > { %v7926_v40 = vadd.f32 %v4025_v17, %v7764_v47 }
 0x92f   : > { %v3922_v33 = vmul.f32 %v3906_v0, %v3794_v43  ;;  %v4116_v0 = vmul.f32 %v4074_v59, %v7469_v48 }
 0x930   : > { %v4090_v63 = vsel %vm524_vm0, %v7926_v40, 0.0 }
 0x931   : > { %4091 = vadd.xlane.f32.xlu1 %v4090_v63  ;;  %4796 = vmatmul.msk.f32.gmra.mxu0 %vm1463_vm2, %v3922_v33  ;;  %v4077_v5 = vpop.xlane.xlu0 %4076 }
 0x932   : > { %v4117_v10 = vmul.f32 %v4077_v5, %v7469_v48 }
 0x933   : > { %v4027_v28 = vpop.f32.mrf.mxu0 }
 0x934   : > { %v4028_v57 = vadd.f32 %v7852_v54, %v4027_v28  ;;  %v7969_v6 = vsub.f32 %v7886_v3, %v4117_v10 }
 0x936   : > { %v7933_v42 = vadd.f32 %v4028_v57, %v7773_v46  ;;  %v4149_v14 = vmul.f32 %v7969_v6, %v7969_v6 }
 0x938   : > { %v4093_v29 = vsel %vm524_vm0, %v7933_v42, 0.0  ;;  %v4171_v20 = vsel %vm524_vm0, %v4149_v14, 0.0 }
 0x939   : > { %4094 = vadd.xlane.f32.xlu0 %v4093_v29  ;;  %v4080_v21 = vpop.xlane.xlu2 %4079 }
 0x93a   : > { %v4118_v41 = vmul.f32 %v4080_v21, %v7469_v48 }
 0x93c   : > { %v7996_v13 = vsub.f32 %v7893_v11, %v4118_v41 }
 0x93e   : > { %v4150_v26 = vmul.f32 %v7996_v13, %v7996_v13 }
 0x940   : > { %v4174_v57 = vsel %vm524_vm0, %v4150_v26, 0.0 }
 0x94d   : > { %v4030_v9 = vpop.f32.mrf.mxu0 }
 0x94e   : > { %v4031_v47 = vadd.f32 %v7852_v54, %v4030_v9 }
 0x950   : > { %v7939_v58 = vadd.f32 %v4031_v47, %v7801_v19  ;;  %v8018_v47 = vsub.f32 %v7878_v32, %v4116_v0 }
 0x952   : > { %v4096_v15 = vsel %vm524_vm0, %v7939_v58, 0.0 }
 0x953   : > { %4097 = vadd.xlane.f32.xlu2 %v4096_v15  ;;  %v4083_v15 = vpop.xlane.xlu1 %4082 }
 0x955   : > { %v4033_v18 = vpop.f32.mrf.mxu0 }
 0x956   : > { %v4034_v51 = vadd.f32 %v7852_v54, %v4033_v18 }
 0x958   : > { %v7945_v46 = vadd.f32 %v4034_v51, %v7813_v37  ;;  %v4148_v51 = vmul.f32 %v8018_v47, %v8018_v47 }
 0x95a   : > { %v4099_v44 = vsel %vm524_vm0, %v7945_v46, 0.0 }
 0x95b   : > { %4100 = vadd.xlane.f32.xlu1 %v4099_v44  ;;  %v4168_v44 = vsel %vm524_vm0, %v4148_v51, 0.0 }
 0x95d   : > { %v4036_v8 = vpop.f32.mrf.mxu0 }
 0x95e   : > { %v4037_v36 = vadd.f32 %v7852_v54, %v4036_v8 }
 0x960   : > { %v7951_v19 = vadd.f32 %v4037_v36, %v7823_v1 }
 0x962   : > { %v4102_v24 = vsel %vm524_vm0, %v7951_v19, 0.0 }
 0x963   : > { %4103 = vadd.xlane.f32.xlu0 %v4102_v24 }
 0x965   : > { %v4039_v35 = vpop.f32.mrf.mxu0 }
 0x966   : > { %v4040_v37 = vadd.f32 %v7852_v54, %v4039_v35 }
 0x968   : > { %v7958_v4 = vadd.f32 %v4040_v37, %v7832_v27  ;;  %v4086_v27 = vpop.xlane.xlu0 %4085 }
 0x969   : > { %v4120_v34 = vmul.f32 %v4086_v27, %v7469_v48 }
 0x96a   : > { %v4105_v1 = vsel %vm524_vm0, %v7958_v4, 0.0 }
 0x96b   : > { %4106 = vadd.xlane.f32.xlu2 %v4105_v1  ;;  %v7976_v31 = vsub.f32 %v7909_v60, %v4120_v34  ;;  %v7988_v60 = vsub.f32 %v7871_v16, %v4115_v25 }
 0x96d   : > { %v4152_v22 = vmul.f32 %v7976_v31, %v7976_v31  ;;  %v4147_v52 = vmul.f32 %v7988_v60, %v7988_v60 }
 0x96f   : > { %v4180_v3 = vsel %vm524_vm0, %v4152_v22, 0.0  ;;  %v4165_v2 = vsel %vm524_vm0, %v4147_v52, 0.0 }
 0x973   : > { %4163 = vadd.xlane.f32.xlu2 %v4162_v55 }
 0x97b   : > { %4172 = vadd.xlane.f32.xlu2 %v4171_v20 }
 0x983   : > { %4181 = vadd.xlane.f32.xlu2 %v4180_v3 }
 0x99a   : > { %v4042_v12 = vpop.f32.mrf.mxu0 }
 0x99b   : > { %v4043_v53 = vadd.f32 %v7852_v54, %v4042_v12 }
 0x99d   : > { %v7985_v62 = vadd.f32 %v4043_v53, %v7843_v45  ;;  %v4089_v45 = vpop.xlane.xlu2 %4088 }
 0x99e   : > { %v4121_v16 = vmul.f32 %v4089_v45, %v7469_v48 }
 0x99f   : > { %v4108_v23 = vsel %vm524_vm0, %v7985_v62, 0.0 }
 0x9a0   : > { %4109 = vadd.xlane.f32.xlu1 %v4108_v23  ;;  %v8005_v63 = vsub.f32 %v7918_v39, %v4121_v16 }
 0x9a4   : > { %v4092_v8 = vpop.xlane.xlu1 %4091 }
 0x9a5   : > { %v4122_v36 = vmul.f32 %v4092_v8, %v7469_v48 }
 0x9a7   : > { %v8037_v56 = vsub.f32 %v7926_v40, %v4122_v36 }
 0x9a8   : > { %4166 = vadd.xlane.f32.xlu1 %v4165_v2 }
 0x9ac   : > { %v4095_v17 = vpop.xlane.xlu0 %4094 }
 0x9ad   : > { %v4123_v43 = vmul.f32 %v4095_v17, %v7469_v48 }
 0x9ae   : > { %v4045_v33 = vpop.f32.mrf.mxu0 }
 0x9af   : > { %v8008_v11 = vsub.f32 %v7933_v42, %v4123_v43  ;;  %v4046_v28 = vadd.f32 %v7852_v54, %v4045_v33  ;;  %v4153_v54 = vmul.f32 %v8005_v63, %v8005_v63 }
 0x9b0   : > { %4175 = vadd.xlane.f32.xlu1 %v4174_v57 }
 0x9b1   : > { %v8013_v29 = vadd.f32 %v4046_v28, %v7856_v7  ;;  %v4155_v9 = vmul.f32 %v8008_v11, %v8008_v11  ;;  %v4119_v7 = vmul.f32 %v4083_v15, %v7469_v48  ;;  %v4183_v18 = vsel %vm524_vm0, %v4153_v54, 0.0  ;;  %v8082_v15 = vld [vmem:[%s8214_s13] ss:$0 sm:$0xff] }
 0x9b3   : > { %v4189_v39 = vsel %vm524_vm0, %v4155_v9, 0.0  ;;  %v4111_v42 = vsel %vm524_vm0, %v8013_v29, 0.0  ;;  %v8030_v32 = vsub.f32 %v7900_v30, %v4119_v7  ;;  %v4154_v30 = vmul.f32 %v8037_v56, %v8037_v56 }
 0x9b4   : > { %4190 = vadd.xlane.f32.xlu2 %v4189_v39  ;;  %4112 = vadd.xlane.f32.xlu0 %v4111_v42  ;;  %v8077_v39 = vld [vmem:[%s8213_s12] ss:$0 sm:$0xff] }
 0x9b5   : > { %v4151_v24 = vmul.f32 %v8030_v32, %v8030_v32  ;;  %v4186_v5 = vsel %vm524_vm0, %v4154_v30, 0.0 }
 0x9b7   : > { %v4177_v35 = vsel %vm524_vm0, %v4151_v24, 0.0 }
 0x9b8   : > { %4184 = vadd.xlane.f32.xlu1 %v4183_v18 }
 0x9bc   : > { %4169 = vadd.xlane.f32.xlu0 %v4168_v44 }
 0x9c4   : > { %4178 = vadd.xlane.f32.xlu0 %v4177_v35 }
 0x9c6   : > { %v4098_v49 = vpop.xlane.xlu2 %4097 }
 0x9c7   : > { %v4124_v37 = vmul.f32 %v4098_v49, %v7469_v48 }
 0x9c9   : > { %v8044_v1 = vsub.f32 %v7939_v58, %v4124_v37 }
 0x9cb   : > { %v4156_v10 = vmul.f32 %v8044_v1, %v8044_v1 }
 0x9cc   : > { %4187 = vadd.xlane.f32.xlu0 %v4186_v5 }
 0x9cd   : > { %v4192_v40 = vsel %vm524_vm0, %v4156_v10, 0.0 }
 0x9ce   : > { %v4101_v38 = vpop.xlane.xlu1 %4100  ;;  %4193 = vadd.xlane.f32.xlu1 %v4192_v40 }
 0x9cf   : > { %v4125_v55 = vmul.f32 %v4101_v38, %v7469_v48 }
 0x9d1   : > { %v8052_v27 = vsub.f32 %v7945_v46, %v4125_v55 }
 0x9d3   : > { %v4157_v34 = vmul.f32 %v8052_v27, %v8052_v27 }
 0x9d5   : > { %v4195_v58 = vsel %vm524_vm0, %v4157_v34, 0.0 }
 0x9d6   : > { %v4104_v14 = vpop.xlane.xlu0 %4103  ;;  %4196 = vadd.xlane.f32.xlu0 %v4195_v58 }
 0x9d7   : > { %v4126_v20 = vmul.f32 %v4104_v14, %v7469_v48 }
 0x9d9   : > { %v8059_v22 = vsub.f32 %v7951_v19, %v4126_v20 }
 0x9db   : > { %v4158_v3 = vmul.f32 %v8059_v22, %v8059_v22 }
 0x9dd   : > { %v4198_v50 = vsel %vm524_vm0, %v4158_v3, 0.0 }
 0x9de   : > { %4199 = vadd.xlane.f32.xlu2 %v4198_v50  ;;  %v4107_v46 = vpop.xlane.xlu2 %4106 }
 0x9df   : > { %v4127_v12 = vmul.f32 %v4107_v46, %v7469_v48 }
 0x9e1   : > { %v8066_v25 = vsub.f32 %v7958_v4, %v4127_v12 }
 0x9e3   : > { %v4159_v53 = vmul.f32 %v8066_v25, %v8066_v25 }
 0x9e5   : > { %v4201_v23 = vsel %vm524_vm0, %v4159_v53, 0.0 }
 0x9e6   : > { %4202 = vadd.xlane.f32.xlu1 %v4201_v23  ;;  %v4164_v19 = vpop.xlane.xlu2 %4163 }
 0x9e7   : > { %v4210_v21 = vmul.f32 %v4164_v19, %v7469_v48 }
 0x9e9   : > { %v4226_v41 = vadd.f32 1e-05, %v4210_v21 }
 0x9eb   : > { %5328 = vrsqrt.f32 %v4226_v41  ;;  %vm4248_vm12 = vweird.f32 %v4226_v41 }
 0x9ee   : > { %v4173_v52 = vpop.xlane.xlu2 %4172 }
 0x9ef   : > { %v4213_v2 = vmul.f32 %v4173_v52, %v7469_v48 }
 0x9f1   : > { %v5329_v45 = vpop.eup %5328  ;;  %v4229_v59 = vadd.f32 1e-05, %v4213_v2 }
 0x9f2   : > { %v4243_v16 = vmul.f32 %v5329_v45, %v4226_v41  ;;  %vm4249_vm2 = vweird.f32 %v5329_v45 }
 0x9f3   : > { %5330 = vrsqrt.f32 %v4229_v59  ;;  %vm4250_vm13 = vmor %vm4248_vm12, %vm4249_vm2  ;;  %vm4278_vm15 = vweird.f32 %v4229_v59 }
 0x9f4   : > { %v4244_v4 = vmul.f32 %v5329_v45, %v4243_v16 }
 0x9f6   : > { %v4245_v26 = vmul.f32 0.5, %v4244_v4  ;;  %v4182_v17 = vpop.xlane.xlu2 %4181 }
 0x9f7   : > { %v4216_v43 = vmul.f32 %v4182_v17, %v7469_v48 }
 0x9f8   : > { %v4246_v0 = vsub.f32 1.5, %v4245_v26 }
 0x9f9   : > { %v5331_v33 = vpop.eup %5330  ;;  %v4232_v28 = vadd.f32 1e-05, %v4216_v43 }
 0x9fa   : > { %v4247_v57 = vmul.f32 %v5329_v45, %v4246_v0  ;;  %v4273_v9 = vmul.f32 %v5331_v33, %v4229_v59  ;;  %vm4279_vm14 = vweird.f32 %v5331_v33 }
 0x9fb   : > { %5332 = vrsqrt.f32 %v4232_v28  ;;  %vm4280_vm1 = vmor %vm4278_vm15, %vm4279_vm14  ;;  %vm4308_vm4 = vweird.f32 %v4232_v28 }
 0x9fc   : > { %v4251_v42 = vsel %vm4250_vm13, %v5329_v45, %v4247_v57  ;;  %v4274_v54 = vmul.f32 %v5331_v33, %v4273_v9 }
 0x9fd   : > { %v4402_v7 = vmul.f32 %v4251_v42, %v7961_v61 }
 0x9fe   : > { %v4275_v18 = vmul.f32 0.5, %v4274_v54 }
 0x9ff   : > { %v4421_v51 = vmul.f32 %v8077_v39, %v4402_v7 }
 0xa00   : > { %v4276_v44 = vsub.f32 1.5, %v4275_v18 }
 0xa01   : > { %v5333_v8 = vpop.eup %5332  ;;  %v4440_v36 = vadd.f32 %v8082_v15, %v4421_v51 }
 0xa02   : > { %v4277_v24 = vmul.f32 %v5331_v33, %v4276_v44  ;;  %v4303_v35 = vmul.f32 %v5333_v8, %v4232_v28  ;;  %vm4309_vm3 = vweird.f32 %v5333_v8 }
 0xa03   : > { %4456 = vst.msk [vmem:[%s8091_s23] sm:$0xff] %vm524_vm0, %v4440_v36  ;;  %vm4310_vm5 = vmor %vm4308_vm4, %vm4309_vm3 }
 0xa04   : > { %v4281_v61 = vsel %vm4280_vm1, %v5331_v33, %v4277_v24  ;;  %v4304_v49 = vmul.f32 %v5333_v8, %v4303_v35 }
 0xa05   : > { %v4405_v37 = vmul.f32 %v4281_v61, %v7969_v6 }
 0xa06   : > { %v4305_v30 = vmul.f32 0.5, %v4304_v49 }
 0xa07   : > { %v4424_v5 = vmul.f32 %v8077_v39, %v4405_v37 }
 0xa08   : > { %v4306_v10 = vsub.f32 1.5, %v4305_v30 }
 0xa09   : > { %v4443_v40 = vadd.f32 %v8082_v15, %v4424_v5 }
 0xa0a   : > { %v4307_v38 = vmul.f32 %v5333_v8, %v4306_v10 }
 0xa0b   : > { %4459 = vst.msk [vmem:[%s8091_s23 + $0x18] sm:$0xff] %vm524_vm0, %v4443_v40 }
 0xa0c   : > { %v4311_v55 = vsel %vm4310_vm5, %v5333_v8, %v4307_v38 }
 0xa0d   : > { %v4408_v34 = vmul.f32 %v4311_v55, %v7976_v31 }
 0xa0f   : > { %v4427_v58 = vmul.f32 %v8077_v39, %v4408_v34 }
 0xa11   : > { %v4446_v14 = vadd.f32 %v8082_v15, %v4427_v58 }
 0xa13   : > { %4462 = vst.msk [vmem:[%s8091_s23 + $0x30] sm:$0xff] %vm524_vm0, %v4446_v14  ;;  %v4110_v6 = vpop.xlane.xlu1 %4109 }
 0xa14   : > { %v4128_v20 = vmul.f32 %v4110_v6, %v7469_v48 }
 0xa16   : > { %v8108_v3 = vsub.f32 %v7985_v62, %v4128_v20 }
 0xa18   : > { %v4160_v50 = vmul.f32 %v8108_v3, %v8108_v3 }
 0xa1a   : > { %v4204_v46 = vsel %vm524_vm0, %v4160_v50, 0.0 }
 0xa1b   : > { %4205 = vadd.xlane.f32.xlu0 %v4204_v46  ;;  %v4167_v12 = vpop.xlane.xlu1 %4166 }
 0xa1c   : > { %v4211_v31 = vmul.f32 %v4167_v12, %v7469_v48 }
 0xa1e   : > { %v4227_v53 = vadd.f32 1e-05, %v4211_v31 }
 0xa20   : > { %5334 = vrsqrt.f32 %v4227_v53  ;;  %vm4258_vm7 = vweird.f32 %v4227_v53 }
 0xa23   : > { %v4176_v23 = vpop.xlane.xlu1 %4175 }
 0xa24   : > { %v4214_v19 = vmul.f32 %v4176_v23, %v7469_v48 }
 0xa26   : > { %v5335_v21 = vpop.eup %5334  ;;  %v4230_v41 = vadd.f32 1e-05, %v4214_v19 }
 0xa27   : > { %v4253_v52 = vmul.f32 %v5335_v21, %v4227_v53  ;;  %v4113_v2 = vpop.xlane.xlu0 %4112  ;;  %v4191_v62 = vpop.xlane.xlu2 %4190  ;;  %vm4259_vm6 = vweird.f32 %v5335_v21 }
 0xa28   : > { %5336 = vrsqrt.f32 %v4230_v41  ;;  %v4129_v45 = vmul.f32 %v4113_v2, %v7469_v48  ;;  %v4219_v59 = vmul.f32 %v4191_v62, %v7469_v48  ;;  %vm4260_vm8 = vmor %vm4258_vm7, %vm4259_vm6  ;;  %vm4288_vm10 = vweird.f32 %v4230_v41 }
 0xa29   : > { %v4254_v16 = vmul.f32 %v5335_v21, %v4253_v52 }
 0xa2a   : > { %v8118_v4 = vsub.f32 %v8013_v29, %v4129_v45  ;;  %v4235_v26 = vadd.f32 1e-05, %v4219_v59 }
 0xa2b   : > { %v4255_v17 = vmul.f32 0.5, %v4254_v16  ;;  %v4185_v43 = vpop.xlane.xlu1 %4184 }
 0xa2c   : > { %5338 = vrsqrt.f32 %v4235_v26  ;;  %v4217_v0 = vmul.f32 %v4185_v43, %v7469_v48  ;;  %v4161_v33 = vmul.f32 %v8118_v4, %v8118_v4  ;;  %vm4338_vm12 = vweird.f32 %v4235_v26 }
 0xa2d   : > { %v4256_v28 = vsub.f32 1.5, %v4255_v17 }
 0xa2e   : > { %v5337_v57 = vpop.eup %5336  ;;  %v4233_v9 = vadd.f32 1e-05, %v4217_v0  ;;  %v4207_v42 = vsel %vm524_vm0, %v4161_v33, 0.0 }
 0xa2f   : > { %v4257_v54 = vmul.f32 %v5335_v21, %v4256_v28  ;;  %v4283_v7 = vmul.f32 %v5337_v57, %v4230_v41  ;;  %4208 = vadd.xlane.f32.xlu2 %v4207_v42  ;;  %v4170_v29 = vpop.xlane.xlu0 %4169  ;;  %vm4289_vm9 = vweird.f32 %v5337_v57 }
 0xa30   : > { %5340 = vrsqrt.f32 %v4233_v9  ;;  %v4212_v18 = vmul.f32 %v4170_v29, %v7469_v48  ;;  %vm4290_vm11 = vmor %vm4288_vm10, %vm4289_vm9  ;;  %vm4318_vm15 = vweird.f32 %v4233_v9 }
 0xa31   : > { %v4261_v51 = vsel %vm4260_vm8, %v5335_v21, %v4257_v54  ;;  %v4284_v44 = vmul.f32 %v5337_v57, %v4283_v7 }
 0xa32   : > { %v5339_v8 = vpop.eup %5338  ;;  %v4403_v36 = vmul.f32 %v4261_v51, %v7988_v60  ;;  %v4228_v24 = vadd.f32 1e-05, %v4212_v18 }
 0xa33   : > { %v4285_v35 = vmul.f32 0.5, %v4284_v44  ;;  %v4333_v61 = vmul.f32 %v5339_v8, %v4235_v26  ;;  %vm4339_vm2 = vweird.f32 %v5339_v8 }
 0xa34   : > { %v4422_v49 = vmul.f32 %v8077_v39, %v4403_v36  ;;  %5342 = vrsqrt.f32 %v4228_v24  ;;  %vm4340_vm13 = vmor %vm4338_vm12, %vm4339_vm2  ;;  %vm4268_vm4 = vweird.f32 %v4228_v24 }
 0xa35   : > { %v4286_v37 = vsub.f32 1.5, %v4285_v35  ;;  %v4334_v30 = vmul.f32 %v5339_v8, %v4333_v61 }
 0xa36   : > { %v5341_v5 = vpop.eup %5340  ;;  %v4441_v10 = vadd.f32 %v8082_v15, %v4422_v49 }
 0xa37   : > { %v4287_v40 = vmul.f32 %v5337_v57, %v4286_v37  ;;  %v4335_v38 = vmul.f32 0.5, %v4334_v30  ;;  %v4313_v55 = vmul.f32 %v5341_v5, %v4233_v9  ;;  %v4179_v34 = vpop.xlane.xlu0 %4178  ;;  %vm4319_vm14 = vweird.f32 %v5341_v5 }
 0xa38   : > { %4457 = vst.msk [vmem:[%s8091_s23 + $0x8] sm:$0xff] %vm524_vm0, %v4441_v10  ;;  %v4215_v60 = vmul.f32 %v4179_v34, %v7469_v48  ;;  %vm4320_vm1 = vmor %vm4318_vm15, %vm4319_vm14 }
 0xa39   : > { %v4291_v58 = vsel %vm4290_vm11, %v5337_v57, %v4287_v40  ;;  %v4336_v14 = vsub.f32 1.5, %v4335_v38  ;;  %v4314_v6 = vmul.f32 %v5341_v5, %v4313_v55 }
 0xa3a   : > { %v5343_v20 = vpop.eup %5342  ;;  %v4406_v50 = vmul.f32 %v4291_v58, %v7996_v13  ;;  %v4231_v46 = vadd.f32 1e-05, %v4215_v60 }
 0xa3b   : > { %v4337_v12 = vmul.f32 %v5339_v8, %v4336_v14  ;;  %v4315_v31 = vmul.f32 0.5, %v4314_v6  ;;  %v4263_v53 = vmul.f32 %v5343_v20, %v4228_v24  ;;  %vm4269_vm3 = vweird.f32 %v5343_v20 }
 0xa3c   : > { %v4425_v23 = vmul.f32 %v8077_v39, %v4406_v50  ;;  %5344 = vrsqrt.f32 %v4231_v46  ;;  %vm4270_vm5 = vmor %vm4268_vm4, %vm4269_vm3  ;;  %vm4298_vm7 = vweird.f32 %v4231_v46 }
 0xa3d   : > { %v4341_v19 = vsel %vm4340_vm13, %v5339_v8, %v4337_v12  ;;  %v4316_v21 = vsub.f32 1.5, %v4315_v31  ;;  %v4264_v41 = vmul.f32 %v5343_v20, %v4263_v53 }
 0xa3e   : > { %v4444_v52 = vadd.f32 %v8082_v15, %v4425_v23  ;;  %v4411_v2 = vmul.f32 %v4341_v19, %v8008_v11 }
 0xa3f   : > { %v4317_v62 = vmul.f32 %v5341_v5, %v4316_v21  ;;  %v4265_v13 = vmul.f32 0.5, %v4264_v41  ;;  %v4188_v45 = vpop.xlane.xlu0 %4187 }
 0xa40   : > { %4460 = vst.msk [vmem:[%s8091_s23 + $0x20] sm:$0xff] %vm524_vm0, %v4444_v52  ;;  %v4430_v59 = vmul.f32 %v8077_v39, %v4411_v2  ;;  %v4218_v16 = vmul.f32 %v4188_v45, %v7469_v48 }
 0xa41   : > { %v4321_v26 = vsel %vm4320_vm1, %v5341_v5, %v4317_v62  ;;  %v4266_v17 = vsub.f32 1.5, %v4265_v13  ;;  %v4194_v43 = vpop.xlane.xlu1 %4193 }
 0xa42   : > { %v5345_v0 = vpop.eup %5344  ;;  %v4449_v33 = vadd.f32 %v8082_v15, %v4430_v59  ;;  %v4409_v11 = vmul.f32 %v4321_v26, %v8005_v63  ;;  %v4234_v28 = vadd.f32 1e-05, %v4218_v16  ;;  %v4220_v57 = vmul.f32 %v4194_v43, %v7469_v48 }
 0xa43   : > { %v4267_v9 = vmul.f32 %v5343_v20, %v4266_v17  ;;  %v4293_v42 = vmul.f32 %v5345_v0, %v4231_v46  ;;  %vm4299_vm6 = vweird.f32 %v5345_v0 }
 0xa44   : > { %4465 = vst.msk [vmem:[%s8091_s23 + $0x48] sm:$0xff] %vm524_vm0, %v4449_v33  ;;  %v4428_v54 = vmul.f32 %v8077_v39, %v4409_v11  ;;  %5346 = vrsqrt.f32 %v4234_v28  ;;  %v4236_v7 = vadd.f32 1e-05, %v4220_v57  ;;  %vm4300_vm8 = vmor %vm4298_vm7, %vm4299_vm6  ;;  %vm4328_vm10 = vweird.f32 %v4234_v28 }
 0xa45   : > { %v4271_v29 = vsel %vm4270_vm5, %v5343_v20, %v4267_v9  ;;  %v4294_v18 = vmul.f32 %v5345_v0, %v4293_v42 }
 0xa46   : > { %v4447_v51 = vadd.f32 %v8082_v15, %v4428_v54  ;;  %v4404_v63 = vmul.f32 %v4271_v29, %v8018_v47  ;;  %5348 = vrsqrt.f32 %v4236_v7  ;;  %vm4348_vm12 = vweird.f32 %v4236_v7 }
 0xa47   : > { %v4295_v44 = vmul.f32 0.5, %v4294_v18 }
 0xa48   : > { %4463 = vst.msk [vmem:[%s8091_s23 + $0x38] sm:$0xff] %vm524_vm0, %v4447_v51  ;;  %v4423_v8 = vmul.f32 %v8077_v39, %v4404_v63 }
 0xa49   : > { %v4296_v36 = vsub.f32 1.5, %v4295_v44  ;;  %v4197_v24 = vpop.xlane.xlu0 %4196 }
 0xa4a   : > { %v5347_v35 = vpop.eup %5346  ;;  %v4442_v61 = vadd.f32 %v8082_v15, %v4423_v8  ;;  %v4221_v49 = vmul.f32 %v4197_v24, %v7469_v48 }
 0xa4b   : > { %v4297_v37 = vmul.f32 %v5345_v0, %v4296_v36  ;;  %v4323_v30 = vmul.f32 %v5347_v35, %v4234_v28  ;;  %vm4329_vm9 = vweird.f32 %v5347_v35 }
 0xa4c   : > { %v5349_v5 = vpop.eup %5348  ;;  %4458 = vst.msk [vmem:[%s8091_s23 + $0x10] sm:$0xff] %vm524_vm0, %v4442_v61  ;;  %v4237_v47 = vadd.f32 1e-05, %v4221_v49  ;;  %vm4330_vm2 = vmor %vm4328_vm10, %vm4329_vm9 }
 0xa4d   : > { %v4301_v10 = vsel %vm4300_vm8, %v5345_v0, %v4297_v37  ;;  %v4324_v40 = vmul.f32 %v5347_v35, %v4323_v30  ;;  %v4343_v38 = vmul.f32 %v5349_v5, %v4236_v7  ;;  %vm4349_vm11 = vweird.f32 %v5349_v5 }
 0xa4e   : > { %v4407_v55 = vmul.f32 %v4301_v10, %v8030_v32  ;;  %5350 = vrsqrt.f32 %v4237_v47  ;;  %vm4350_vm13 = vmor %vm4348_vm12, %vm4349_vm11  ;;  %vm4358_vm15 = vweird.f32 %v4237_v47 }
 0xa4f   : > { %v4325_v34 = vmul.f32 0.5, %v4324_v40  ;;  %v4344_v60 = vmul.f32 %v5349_v5, %v4343_v38 }
 0xa50   : > { %v4426_v58 = vmul.f32 %v8077_v39, %v4407_v55 }
 0xa51   : > { %v4326_v14 = vsub.f32 1.5, %v4325_v34  ;;  %v4345_v6 = vmul.f32 0.5, %v4344_v60  ;;  %v4200_v20 = vpop.xlane.xlu2 %4199 }
 0xa52   : > { %v4445_v50 = vadd.f32 %v8082_v15, %v4426_v58  ;;  %v4222_v46 = vmul.f32 %v4200_v20, %v7469_v48 }
 0xa53   : > { %v4327_v12 = vmul.f32 %v5347_v35, %v4326_v14  ;;  %v4346_v31 = vsub.f32 1.5, %v4345_v6 }
 0xa54   : > { %v5351_v53 = vpop.eup %5350  ;;  %4461 = vst.msk [vmem:[%s8091_s23 + $0x28] sm:$0xff] %vm524_vm0, %v4445_v50  ;;  %v4238_v32 = vadd.f32 1e-05, %v4222_v46 }
 0xa55   : > { %v4331_v23 = vsel %vm4330_vm2, %v5347_v35, %v4327_v12  ;;  %v4347_v19 = vmul.f32 %v5349_v5, %v4346_v31  ;;  %v4353_v21 = vmul.f32 %v5351_v53, %v4237_v47  ;;  %vm4359_vm14 = vweird.f32 %v5351_v53 }
 0xa56   : > { %v4410_v41 = vmul.f32 %v4331_v23, %v8037_v56  ;;  %5352 = vrsqrt.f32 %v4238_v32  ;;  %vm4360_vm1 = vmor %vm4358_vm15, %vm4359_vm14  ;;  %vm4368_vm4 = vweird.f32 %v4238_v32 }
 0xa57   : > { %v4351_v52 = vsel %vm4350_vm13, %v5349_v5, %v4347_v19  ;;  %v4354_v2 = vmul.f32 %v5351_v53, %v4353_v21 }
 0xa58   : > { %v4429_v62 = vmul.f32 %v8077_v39, %v4410_v41  ;;  %v4412_v13 = vmul.f32 %v4351_v52, %v8044_v1 }
 0xa59   : > { %v4355_v45 = vmul.f32 0.5, %v4354_v2  ;;  %v4203_v59 = vpop.xlane.xlu1 %4202 }
 0xa5a   : > { %v4448_v16 = vadd.f32 %v8082_v15, %v4429_v62  ;;  %v4431_v26 = vmul.f32 %v8077_v39, %v4412_v13  ;;  %v4223_v17 = vmul.f32 %v4203_v59, %v7469_v48 }
 0xa5b   : > { %v4356_v43 = vsub.f32 1.5, %v4355_v45 }
 0xa5c   : > { %v5353_v56 = vpop.eup %5352  ;;  %4464 = vst.msk [vmem:[%s8091_s23 + $0x40] sm:$0xff] %vm524_vm0, %v4448_v16  ;;  %v4450_v0 = vadd.f32 %v8082_v15, %v4431_v26  ;;  %v4239_v33 = vadd.f32 1e-05, %v4223_v17 }
 0xa5d   : > { %v4357_v11 = vmul.f32 %v5351_v53, %v4356_v43  ;;  %v4363_v28 = vmul.f32 %v5353_v56, %v4238_v32  ;;  %vm4369_vm3 = vweird.f32 %v5353_v56 }
 0xa5e   : > { %4466 = vst.msk [vmem:[%s8091_s23 + $0x50] sm:$0xff] %vm524_vm0, %v4450_v0  ;;  %5354 = vrsqrt.f32 %v4239_v33  ;;  %vm4370_vm5 = vmor %vm4368_vm4, %vm4369_vm3  ;;  %vm4378_vm7 = vweird.f32 %v4239_v33 }
 0xa5f   : > { %v4361_v1 = vsel %vm4360_vm1, %v5351_v53, %v4357_v11  ;;  %v4364_v57 = vmul.f32 %v5353_v56, %v4363_v28 }
 0xa60   : > { %v4413_v9 = vmul.f32 %v4361_v1, %v8052_v27 }
 0xa61   : > { %v4365_v42 = vmul.f32 0.5, %v4364_v57 }
 0xa62   : > { %v4432_v54 = vmul.f32 %v8077_v39, %v4413_v9 }
 0xa63   : > { %v4366_v7 = vsub.f32 1.5, %v4365_v42 }
 0xa64   : > { %v5355_v29 = vpop.eup %5354  ;;  %v4451_v18 = vadd.f32 %v8082_v15, %v4432_v54 }
 0xa65   : > { %v4367_v51 = vmul.f32 %v5353_v56, %v4366_v7  ;;  %v4373_v63 = vmul.f32 %v5355_v29, %v4239_v33  ;;  %vm4379_vm6 = vweird.f32 %v5355_v29 }
 0xa66   : > { %4467 = vst.msk [vmem:[%s8091_s23 + $0x58] sm:$0xff] %vm524_vm0, %v4451_v18  ;;  %vm4380_vm8 = vmor %vm4378_vm7, %vm4379_vm6 }
 0xa67   : > { %v4371_v44 = vsel %vm4370_vm5, %v5353_v56, %v4367_v51  ;;  %v4374_v8 = vmul.f32 %v5355_v29, %v4373_v63 }
 0xa68   : > { %v4414_v27 = vmul.f32 %v4371_v44, %v8059_v22 }
 0xa69   : > { %v4375_v36 = vmul.f32 0.5, %v4374_v8 }
 0xa6a   : > { %v4433_v24 = vmul.f32 %v8077_v39, %v4414_v27 }
 0xa6b   : > { %v4376_v35 = vsub.f32 1.5, %v4375_v36 }
 0xa6c   : > { %v4452_v61 = vadd.f32 %v8082_v15, %v4433_v24 }
 0xa6d   : > { %v4377_v49 = vmul.f32 %v5355_v29, %v4376_v35 }
 0xa6e   : > { %4468 = vst.msk [vmem:[%s8091_s23 + $0x60] sm:$0xff] %vm524_vm0, %v4452_v61 }
 0xa6f   : > { %v4381_v37 = vsel %vm4380_vm8, %v5355_v29, %v4377_v49 }
 0xa70   : > { %v4415_v30 = vmul.f32 %v4381_v37, %v8066_v25 }
 0xa72   : > { %v4434_v5 = vmul.f32 %v8077_v39, %v4415_v30 }
 0xa74   : > { %v4453_v47 = vadd.f32 %v8082_v15, %v4434_v5 }
 0xa76   : > { %4469 = vst.msk [vmem:[%s8091_s23 + $0x68] sm:$0xff] %vm524_vm0, %v4453_v47 }
 0xa8e   : > { %v4206_v22 = vpop.xlane.xlu0 %4205 }
 0xa8f   : > { %v4224_v10 = vmul.f32 %v4206_v22, %v7469_v48 }
 0xa91   : > { %v4240_v40 = vadd.f32 1e-05, %v4224_v10 }
 0xa93   : > { %5356 = vrsqrt.f32 %v4240_v40  ;;  %vm4388_vm10 = vweird.f32 %v4240_v40 }
 0xa99   : > { %v5357_v38 = vpop.eup %5356 }
 0xa9a   : > { %v4383_v55 = vmul.f32 %v5357_v38, %v4240_v40  ;;  %vm4389_vm9 = vweird.f32 %v5357_v38 }
 0xa9b   : > { %vm4390_vm11 = vmor %vm4388_vm10, %vm4389_vm9 }
 0xa9c   : > { %v4384_v34 = vmul.f32 %v5357_v38, %v4383_v55 }
 0xa9e   : > { %v4385_v60 = vmul.f32 0.5, %v4384_v34 }
 0xaa0   : > { %v4386_v58 = vsub.f32 1.5, %v4385_v60 }
 0xaa2   : > { %v4387_v14 = vmul.f32 %v5357_v38, %v4386_v58  ;;  %v4209_v25 = vpop.xlane.xlu2 %4208 }
 0xaa3   : > { %v4225_v6 = vmul.f32 %v4209_v25, %v7469_v48 }
 0xaa4   : > { %v4391_v20 = vsel %vm4390_vm11, %v5357_v38, %v4387_v14 }
 0xaa5   : > { %v4416_v50 = vmul.f32 %v4391_v20, %v8108_v3  ;;  %v4241_v46 = vadd.f32 1e-05, %v4225_v6 }
 0xaa7   : > { %v4435_v12 = vmul.f32 %v8077_v39, %v4416_v50  ;;  %5358 = vrsqrt.f32 %v4241_v46  ;;  %vm4398_vm12 = vweird.f32 %v4241_v46 }
 0xaa9   : > { %v4454_v31 = vadd.f32 %v8082_v15, %v4435_v12 }
 0xaab   : > { %4470 = vst.msk [vmem:[%s8091_s23 + $0x70] sm:$0xff] %vm524_vm0, %v4454_v31 }
 0xaad   : > { %v5359_v53 = vpop.eup %5358 }
 0xaae   : > { %v4393_v32 = vmul.f32 %v5359_v53, %v4241_v46  ;;  %vm4399_vm2 = vweird.f32 %v5359_v53 }
 0xaaf   : > { %vm4400_vm13 = vmor %vm4398_vm12, %vm4399_vm2 }
 0xab0   : > { %v4394_v23 = vmul.f32 %v5359_v53, %v4393_v32 }
 0xab2   : > { %v4395_v19 = vmul.f32 0.5, %v4394_v23 }
 0xab4   : > { %v4396_v21 = vsub.f32 1.5, %v4395_v19 }
 0xab6   : > { %v4397_v41 = vmul.f32 %v5359_v53, %v4396_v21 }
 0xab8   : > { %v4401_v48 = vsel %vm4400_vm13, %v5359_v53, %v4397_v41 }
 0xab9   : > { %v4417_v3 = vmul.f32 %v4401_v48, %v8118_v4 }
 0xabb   : > { %v4436_v52 = vmul.f32 %v8077_v39, %v4417_v3 }
 0xabd   : > { %v4455_v2 = vadd.f32 %v8082_v15, %v4436_v52 }
 0xabf   : > { %4471 = vst.msk [vmem:[%s8091_s23 + $0x78] sm:$0xff] %vm524_vm0, %v4455_v2 }
 0xac0 PF: > { %s24_s29 = sadd.s32 1, %s5366_s29  }
 0xac1   : > { %p21_p4 = scmp.ge.s32.totalorder %s24_s29, 6  }
 0xac3   :  { %23 = sbr.rel (!%p21_p4) target bundleno = 1 (0x1), region = 106 }

</bundles_post_ra>
